<compile_context>
chip_gen: v7x
topology: tpu7x:2x2x1
jax: 0.10.0
libtpu: 0.0.40
codegen_flags: <defaults>
</compile_context>

<pallas_src>
import functools

import jax
import jax.numpy as jnp
from jax.experimental import pallas as pl
from jax.experimental.pallas import tpu as pltpu


def _residual_block_kernel(x_ref, w1_ref, w2_ref, mask_ref, o_ref, h_scr, *, H, W):
    """Fused conv1 -> ReLU -> conv2 -> (+residual) for one batch image.

    x_ref  : (1, RPAD, C)  f32, zero-padded image, spatial flattened row-major,
             RPAD = (H+2)*(W+2)+2  (2 slack rows so every tap slice is in range)
    w1_ref : (9, C, C)     bf16, tap-major (i*3+j) conv1 weights
    w2_ref : (9, C, C)     bf16, conv2 weights
    mask   : (RIN, 1)      f32, 1.0 where the flattened row is a real (h, w<W)
    o_ref  : (1, RIN, C)   f32, output in the same flattened padded-width layout
    h_scr  : (RPAD, C)     f32 scratch, padded intermediate activation
    """
    W_pad = W + 2
    RIN = H * W_pad                 # rows of the flattened (padded-width) output
    interior = W_pad + 1            # flat offset of padded coordinate (1, 1)

    x_all = x_ref[0]                # (RPAD, C) f32
    mask = mask_ref[...]            # (RIN, 1)  f32

    # ---- conv1: 3x3, pad=1, no bias -> 9 shifted matmuls, f32 accumulation.
    acc1 = jnp.zeros((RIN, w1_ref.shape[2]), jnp.float32)
    for i in range(3):
        for j in range(3):
            off = i * W_pad + j
            xs = x_all[off:off + RIN, :].astype(jnp.bfloat16)
            acc1 += jnp.dot(xs, w1_ref[i * 3 + j],
                            preferred_element_type=jnp.float32)

    # ReLU; zero the junk rows (they alias the zero-padding ring of the
    # intermediate) and embed into the padded scratch buffer.
    h_val = jnp.maximum(acc1, 0.0) * mask
    h_scr[...] = jnp.zeros_like(h_scr)
    h_scr[interior:interior + RIN, :] = h_val

    # ---- conv2: 3x3, pad=1, no bias.
    acc2 = jnp.zeros((RIN, w2_ref.shape[2]), jnp.float32)
    for i in range(3):
        for j in range(3):
            off = i * W_pad + j
            hs = h_scr[off:off + RIN, :].astype(jnp.bfloat16)
            acc2 += jnp.dot(hs, w2_ref[i * 3 + j],
                            preferred_element_type=jnp.float32)

    # ---- residual add (exact f32) and store.
    o_ref[0] = acc2 + x_all[interior:interior + RIN, :]


def prepare_weights(w1_oihw, w2_oihw):
    """One-time hoisted weight prep: (Cout,Cin,3,3) OIHW -> (9, Cin, Cout) bf16."""
    def prep(w):
        co, ci, kh, kw = w.shape
        return jnp.transpose(w, (2, 3, 1, 0)).reshape(kh * kw, ci, co).astype(jnp.bfloat16)
    return prep(w1_oihw), prep(w2_oihw)


@jax.jit
def residual_block_forward(x_nchw, w1_mat, w2_mat):
    """Pallas-backed ResidualBlock forward. x: (B, C, H, W) -> (B, C, H, W)."""
    B, C_in, H, W = x_nchw.shape
    C_out = w1_mat.shape[2]
    assert C_in == C_out, "residual add requires input_channels == output_channels"
    assert w1_mat.shape == (9, C_in, C_out) and w2_mat.shape == (9, C_out, C_out)

    H_pad, W_pad = H + 2, W + 2
    RIN = H * W_pad
    RPAD = H_pad * W_pad + 2        # +2 slack rows: max tap offset 2*W_pad+2

    # NCHW -> NHWC, zero-pad by 1, flatten spatial row-major, append slack rows.
    x = jnp.transpose(x_nchw, (0, 2, 3, 1)).astype(jnp.float32)
    x = jnp.pad(x, ((0, 0), (1, 1), (1, 1), (0, 0)))
    x_flat = jnp.pad(x.reshape(B, H_pad * W_pad, C_in), ((0, 0), (0, 2), (0, 0)))

    # Validity mask for the flattened padded-width layout (drops w in {W, W+1}).
    rid = jnp.arange(RIN, dtype=jnp.int32)
    mask = ((rid % W_pad) < W).astype(jnp.float32).reshape(RIN, 1)

    kernel = functools.partial(_residual_block_kernel, H=H, W=W)
    out_flat = pl.pallas_call(
        kernel,
        out_shape=jax.ShapeDtypeStruct((B, RIN, C_out), jnp.float32),
        grid_spec=pltpu.PrefetchScalarGridSpec(
            num_scalar_prefetch=0,
            grid=(B,),
            in_specs=[
                pl.BlockSpec((1, RPAD, C_in), lambda b: (b, 0, 0)),
                pl.BlockSpec((9, C_in, C_out), lambda b: (0, 0, 0)),
                pl.BlockSpec((9, C_out, C_out), lambda b: (0, 0, 0)),
                pl.BlockSpec((RIN, 1), lambda b: (0, 0)),
            ],
            out_specs=pl.BlockSpec((1, RIN, C_out), lambda b: (b, 0, 0)),
            scratch_shapes=[pltpu.VMEM((RPAD, C_out), jnp.float32)],
        ),
        compiler_params=pltpu.CompilerParams(
            dimension_semantics=("parallel",),
        ),
    )(x_flat, w1_mat, w2_mat, mask)

    # Strip the 2 junk columns per spatial row and go back to NCHW.
    out = out_flat.reshape(B, H, W_pad, C_out)[:, :, :W, :]
    return jnp.transpose(out, (0, 3, 1, 2))


def ref_forward(x, w1, w2):
    """Pure-JAX (lax.conv) reference matching the PyTorch module, f32."""
    dn = ("NCHW", "OIHW", "NCHW")
    y = jax.lax.conv_general_dilated(x, w1, (1, 1), ((1, 1), (1, 1)),
                                     dimension_numbers=dn)
    y = jnp.maximum(y, 0.0)
    y = jax.lax.conv_general_dilated(y, w2, (1, 1), ((1, 1), (1, 1)),
                                     dimension_numbers=dn)
    return y + x


if __name__ == "__main__":
    key = jax.random.PRNGKey(0)
    kx, k1, k2 = jax.random.split(key, 3)

    # ResidualBlock(input_channels=32, output_channels=32); residual add
    # requires equal in/out channels.
    B, C, H, W = 2, 32, 16, 16
    x = jax.random.normal(kx, (B, C, H, W), jnp.float32)
    fan_in = C * 9
    w1 = jax.random.normal(k1, (C, C, 3, 3), jnp.float32) / jnp.sqrt(fan_in)
    w2 = jax.random.normal(k2, (C, C, 3, 3), jnp.float32) / jnp.sqrt(fan_in)

    # Hoisted one-time weight layout/dtype prep (not re-done per forward).
    w1_mat, w2_mat = prepare_weights(w1, w2)

    out = residual_block_forward(x, w1_mat, w2_mat)
    out = jax.block_until_ready(out)
    assert out.shape == (B, C, H, W), out.shape

    ref = ref_forward(x, w1, w2)
    max_err = float(jnp.max(jnp.abs(out - ref)))
    assert jnp.allclose(out, ref, atol=5e-2, rtol=5e-2), max_err
    print("KERNEL_OK")
</pallas_src>

<mosaic_0001>
module attributes {stable_mosaic.version = 11 : i64} {
  func.func @_residual_block_kernel(%arg0: i32, %arg1: memref<1x326x32xf32, #tpu.memory_space<vmem>>, %arg2: memref<9x32x32xbf16, #tpu.memory_space<vmem>>, %arg3: memref<9x32x32xbf16, #tpu.memory_space<vmem>>, %arg4: memref<288x1xf32, #tpu.memory_space<vmem>>, %arg5: memref<1x288x32xf32, #tpu.memory_space<vmem>>, %arg6: memref<326x32xf32, #tpu.memory_space<vmem>>) attributes {dimension_semantics = [#tpu.dimension_semantics<parallel>], iteration_bounds = array<i64: 2>, scalar_prefetch = 0 : i64, scratch_operands = 1 : i64, tpu.core_type = #tpu.core_type<tc>, window_params = [{transform_indices = @transform_0, window_bounds = array<i64: 1, 326, 32>}, {pipeline_mode = #tpu.pipeline_mode<synchronous>, transform_indices = @transform_1, window_bounds = array<i64: 9, 32, 32>}, {pipeline_mode = #tpu.pipeline_mode<synchronous>, transform_indices = @transform_2, window_bounds = array<i64: 9, 32, 32>}, {pipeline_mode = #tpu.pipeline_mode<synchronous>, transform_indices = @transform_3, window_bounds = array<i64: 288, 1>}, {transform_indices = @transform_4, window_bounds = array<i64: 1, 288, 32>}]} {
    %c0 = arith.constant 0 : index
    %c0_0 = arith.constant 0 : index
    %c0_1 = arith.constant 0 : index
    %0 = vector.load %arg1[%c0, %c0_0, %c0_1] : memref<1x326x32xf32, #tpu.memory_space<vmem>>, vector<1x326x32xf32>
    %1 = vector.shape_cast %0 : vector<1x326x32xf32> to vector<326x32xf32>
    %c0_2 = arith.constant 0 : index
    %c0_3 = arith.constant 0 : index
    %2 = vector.load %arg4[%c0_2, %c0_3] : memref<288x1xf32, #tpu.memory_space<vmem>>, vector<288x1xf32>
    %cst = arith.constant 0.000000e+00 : f32
    %3 = vector.broadcast %cst : f32 to vector<288x32xf32>
    %4 = vector.extract_strided_slice %1 {offsets = [0, 0], sizes = [288, 32], strides = [1, 1]} : vector<326x32xf32> to vector<288x32xf32>
    %5 = arith.truncf %4 : vector<288x32xf32> to vector<288x32xbf16>
    %c0_4 = arith.constant 0 : index
    %c0_5 = arith.constant 0 : index
    %c0_6 = arith.constant 0 : index
    %6 = vector.load %arg2[%c0_4, %c0_5, %c0_6] : memref<9x32x32xbf16, #tpu.memory_space<vmem>>, vector<1x32x32xbf16>
    %7 = vector.shape_cast %6 : vector<1x32x32xbf16> to vector<32x32xbf16>
    %cst_7 = arith.constant dense<0.000000e+00> : vector<288x32xf32>
    %8 = tpu.matmul %5, %7, %cst_7 {dimension_numbers = #tpu.dot_dimension_numbers<[1], [0], [0], [1], [0, 0, 1, 1], [], []>} : vector<288x32xbf16>, vector<32x32xbf16>, vector<288x32xf32> -> vector<288x32xf32>
    %9 = arith.addf %3, %8 : vector<288x32xf32>
    %10 = vector.extract_strided_slice %1 {offsets = [1, 0], sizes = [288, 32], strides = [1, 1]} : vector<326x32xf32> to vector<288x32xf32>
    %11 = arith.truncf %10 : vector<288x32xf32> to vector<288x32xbf16>
    %c1 = arith.constant 1 : index
    %c0_8 = arith.constant 0 : index
    %c0_9 = arith.constant 0 : index
    %12 = vector.load %arg2[%c1, %c0_8, %c0_9] : memref<9x32x32xbf16, #tpu.memory_space<vmem>>, vector<1x32x32xbf16>
    %13 = vector.shape_cast %12 : vector<1x32x32xbf16> to vector<32x32xbf16>
    %cst_10 = arith.constant dense<0.000000e+00> : vector<288x32xf32>
    %14 = tpu.matmul %11, %13, %cst_10 {dimension_numbers = #tpu.dot_dimension_numbers<[1], [0], [0], [1], [0, 0, 1, 1], [], []>} : vector<288x32xbf16>, vector<32x32xbf16>, vector<288x32xf32> -> vector<288x32xf32>
    %15 = arith.addf %9, %14 : vector<288x32xf32>
    %16 = vector.extract_strided_slice %1 {offsets = [2, 0], sizes = [288, 32], strides = [1, 1]} : vector<326x32xf32> to vector<288x32xf32>
    %17 = arith.truncf %16 : vector<288x32xf32> to vector<288x32xbf16>
    %c2 = arith.constant 2 : index
    %c0_11 = arith.constant 0 : index
    %c0_12 = arith.constant 0 : index
    %18 = vector.load %arg2[%c2, %c0_11, %c0_12] : memref<9x32x32xbf16, #tpu.memory_space<vmem>>, vector<1x32x32xbf16>
    %19 = vector.shape_cast %18 : vector<1x32x32xbf16> to vector<32x32xbf16>
    %cst_13 = arith.constant dense<0.000000e+00> : vector<288x32xf32>
    %20 = tpu.matmul %17, %19, %cst_13 {dimension_numbers = #tpu.dot_dimension_numbers<[1], [0], [0], [1], [0, 0, 1, 1], [], []>} : vector<288x32xbf16>, vector<32x32xbf16>, vector<288x32xf32> -> vector<288x32xf32>
    %21 = arith.addf %15, %20 : vector<288x32xf32>
    %22 = vector.extract_strided_slice %1 {offsets = [18, 0], sizes = [288, 32], strides = [1, 1]} : vector<326x32xf32> to vector<288x32xf32>
    %23 = arith.truncf %22 : vector<288x32xf32> to vector<288x32xbf16>
    %c3 = arith.constant 3 : index
    %c0_14 = arith.constant 0 : index
    %c0_15 = arith.constant 0 : index
    %24 = vector.load %arg2[%c3, %c0_14, %c0_15] : memref<9x32x32xbf16, #tpu.memory_space<vmem>>, vector<1x32x32xbf16>
    %25 = vector.shape_cast %24 : vector<1x32x32xbf16> to vector<32x32xbf16>
    %cst_16 = arith.constant dense<0.000000e+00> : vector<288x32xf32>
    %26 = tpu.matmul %23, %25, %cst_16 {dimension_numbers = #tpu.dot_dimension_numbers<[1], [0], [0], [1], [0, 0, 1, 1], [], []>} : vector<288x32xbf16>, vector<32x32xbf16>, vector<288x32xf32> -> vector<288x32xf32>
    %27 = arith.addf %21, %26 : vector<288x32xf32>
    %28 = vector.extract_strided_slice %1 {offsets = [19, 0], sizes = [288, 32], strides = [1, 1]} : vector<326x32xf32> to vector<288x32xf32>
    %29 = arith.truncf %28 : vector<288x32xf32> to vector<288x32xbf16>
    %c4 = arith.constant 4 : index
    %c0_17 = arith.constant 0 : index
    %c0_18 = arith.constant 0 : index
    %30 = vector.load %arg2[%c4, %c0_17, %c0_18] : memref<9x32x32xbf16, #tpu.memory_space<vmem>>, vector<1x32x32xbf16>
    %31 = vector.shape_cast %30 : vector<1x32x32xbf16> to vector<32x32xbf16>
    %cst_19 = arith.constant dense<0.000000e+00> : vector<288x32xf32>
    %32 = tpu.matmul %29, %31, %cst_19 {dimension_numbers = #tpu.dot_dimension_numbers<[1], [0], [0], [1], [0, 0, 1, 1], [], []>} : vector<288x32xbf16>, vector<32x32xbf16>, vector<288x32xf32> -> vector<288x32xf32>
    %33 = arith.addf %27, %32 : vector<288x32xf32>
    %34 = vector.extract_strided_slice %1 {offsets = [20, 0], sizes = [288, 32], strides = [1, 1]} : vector<326x32xf32> to vector<288x32xf32>
    %35 = arith.truncf %34 : vector<288x32xf32> to vector<288x32xbf16>
    %c5 = arith.constant 5 : index
    %c0_20 = arith.constant 0 : index
    %c0_21 = arith.constant 0 : index
    %36 = vector.load %arg2[%c5, %c0_20, %c0_21] : memref<9x32x32xbf16, #tpu.memory_space<vmem>>, vector<1x32x32xbf16>
    %37 = vector.shape_cast %36 : vector<1x32x32xbf16> to vector<32x32xbf16>
    %cst_22 = arith.constant dense<0.000000e+00> : vector<288x32xf32>
    %38 = tpu.matmul %35, %37, %cst_22 {dimension_numbers = #tpu.dot_dimension_numbers<[1], [0], [0], [1], [0, 0, 1, 1], [], []>} : vector<288x32xbf16>, vector<32x32xbf16>, vector<288x32xf32> -> vector<288x32xf32>
    %39 = arith.addf %33, %38 : vector<288x32xf32>
    %40 = vector.extract_strided_slice %1 {offsets = [36, 0], sizes = [288, 32], strides = [1, 1]} : vector<326x32xf32> to vector<288x32xf32>
    %41 = arith.truncf %40 : vector<288x32xf32> to vector<288x32xbf16>
    %c6 = arith.constant 6 : index
    %c0_23 = arith.constant 0 : index
    %c0_24 = arith.constant 0 : index
    %42 = vector.load %arg2[%c6, %c0_23, %c0_24] : memref<9x32x32xbf16, #tpu.memory_space<vmem>>, vector<1x32x32xbf16>
    %43 = vector.shape_cast %42 : vector<1x32x32xbf16> to vector<32x32xbf16>
    %cst_25 = arith.constant dense<0.000000e+00> : vector<288x32xf32>
    %44 = tpu.matmul %41, %43, %cst_25 {dimension_numbers = #tpu.dot_dimension_numbers<[1], [0], [0], [1], [0, 0, 1, 1], [], []>} : vector<288x32xbf16>, vector<32x32xbf16>, vector<288x32xf32> -> vector<288x32xf32>
    %45 = arith.addf %39, %44 : vector<288x32xf32>
    %46 = vector.extract_strided_slice %1 {offsets = [37, 0], sizes = [288, 32], strides = [1, 1]} : vector<326x32xf32> to vector<288x32xf32>
    %47 = arith.truncf %46 : vector<288x32xf32> to vector<288x32xbf16>
    %c7 = arith.constant 7 : index
    %c0_26 = arith.constant 0 : index
    %c0_27 = arith.constant 0 : index
    %48 = vector.load %arg2[%c7, %c0_26, %c0_27] : memref<9x32x32xbf16, #tpu.memory_space<vmem>>, vector<1x32x32xbf16>
    %49 = vector.shape_cast %48 : vector<1x32x32xbf16> to vector<32x32xbf16>
    %cst_28 = arith.constant dense<0.000000e+00> : vector<288x32xf32>
    %50 = tpu.matmul %47, %49, %cst_28 {dimension_numbers = #tpu.dot_dimension_numbers<[1], [0], [0], [1], [0, 0, 1, 1], [], []>} : vector<288x32xbf16>, vector<32x32xbf16>, vector<288x32xf32> -> vector<288x32xf32>
    %51 = arith.addf %45, %50 : vector<288x32xf32>
    %52 = vector.extract_strided_slice %1 {offsets = [38, 0], sizes = [288, 32], strides = [1, 1]} : vector<326x32xf32> to vector<288x32xf32>
    %53 = arith.truncf %52 : vector<288x32xf32> to vector<288x32xbf16>
    %c8 = arith.constant 8 : index
    %c0_29 = arith.constant 0 : index
    %c0_30 = arith.constant 0 : index
    %54 = vector.load %arg2[%c8, %c0_29, %c0_30] : memref<9x32x32xbf16, #tpu.memory_space<vmem>>, vector<1x32x32xbf16>
    %55 = vector.shape_cast %54 : vector<1x32x32xbf16> to vector<32x32xbf16>
    %cst_31 = arith.constant dense<0.000000e+00> : vector<288x32xf32>
    %56 = tpu.matmul %53, %55, %cst_31 {dimension_numbers = #tpu.dot_dimension_numbers<[1], [0], [0], [1], [0, 0, 1, 1], [], []>} : vector<288x32xbf16>, vector<32x32xbf16>, vector<288x32xf32> -> vector<288x32xf32>
    %57 = arith.addf %51, %56 : vector<288x32xf32>
    %cst_32 = arith.constant 0.000000e+00 : f32
    %58 = vector.broadcast %cst_32 : f32 to vector<288x32xf32>
    %59 = arith.maximumf %57, %58 : vector<288x32xf32>
    %60 = vector.broadcast %2 : vector<288x1xf32> to vector<288x32xf32>
    %61 = arith.mulf %59, %60 : vector<288x32xf32>
    %cst_33 = arith.constant 0.000000e+00 : f32
    %62 = vector.broadcast %cst_33 : f32 to vector<326x32xf32>
    %c0_34 = arith.constant 0 : index
    %c0_35 = arith.constant 0 : index
    %63 = vector.load %arg6[%c0_34, %c0_35] : memref<326x32xf32, #tpu.memory_space<vmem>>, vector<326x32xf32>
    tpu.vector_store %arg6[%c0_34, %c0_35], %62 {strides = array<i32>} : memref<326x32xf32, #tpu.memory_space<vmem>>, vector<326x32xf32>,
    %c19 = arith.constant 19 : index
    %c0_36 = arith.constant 0 : index
    %64 = vector.load %arg6[%c19, %c0_36] : memref<326x32xf32, #tpu.memory_space<vmem>>, vector<288x32xf32>
    tpu.vector_store %arg6[%c19, %c0_36], %61 {strides = array<i32>} : memref<326x32xf32, #tpu.memory_space<vmem>>, vector<288x32xf32>,
    %cst_37 = arith.constant 0.000000e+00 : f32
    %65 = vector.broadcast %cst_37 : f32 to vector<288x32xf32>
    %c0_38 = arith.constant 0 : index
    %c0_39 = arith.constant 0 : index
    %66 = vector.load %arg6[%c0_38, %c0_39] : memref<326x32xf32, #tpu.memory_space<vmem>>, vector<288x32xf32>
    %67 = arith.truncf %66 : vector<288x32xf32> to vector<288x32xbf16>
    %c0_40 = arith.constant 0 : index
    %c0_41 = arith.constant 0 : index
    %c0_42 = arith.constant 0 : index
    %68 = vector.load %arg3[%c0_40, %c0_41, %c0_42] : memref<9x32x32xbf16, #tpu.memory_space<vmem>>, vector<1x32x32xbf16>
    %69 = vector.shape_cast %68 : vector<1x32x32xbf16> to vector<32x32xbf16>
    %cst_43 = arith.constant dense<0.000000e+00> : vector<288x32xf32>
    %70 = tpu.matmul %67, %69, %cst_43 {dimension_numbers = #tpu.dot_dimension_numbers<[1], [0], [0], [1], [0, 0, 1, 1], [], []>} : vector<288x32xbf16>, vector<32x32xbf16>, vector<288x32xf32> -> vector<288x32xf32>
    %71 = arith.addf %65, %70 : vector<288x32xf32>
    %c1_44 = arith.constant 1 : index
    %c0_45 = arith.constant 0 : index
    %72 = vector.load %arg6[%c1_44, %c0_45] : memref<326x32xf32, #tpu.memory_space<vmem>>, vector<288x32xf32>
    %73 = arith.truncf %72 : vector<288x32xf32> to vector<288x32xbf16>
    %c1_46 = arith.constant 1 : index
    %c0_47 = arith.constant 0 : index
    %c0_48 = arith.constant 0 : index
    %74 = vector.load %arg3[%c1_46, %c0_47, %c0_48] : memref<9x32x32xbf16, #tpu.memory_space<vmem>>, vector<1x32x32xbf16>
    %75 = vector.shape_cast %74 : vector<1x32x32xbf16> to vector<32x32xbf16>
    %cst_49 = arith.constant dense<0.000000e+00> : vector<288x32xf32>
    %76 = tpu.matmul %73, %75, %cst_49 {dimension_numbers = #tpu.dot_dimension_numbers<[1], [0], [0], [1], [0, 0, 1, 1], [], []>} : vector<288x32xbf16>, vector<32x32xbf16>, vector<288x32xf32> -> vector<288x32xf32>
    %77 = arith.addf %71, %76 : vector<288x32xf32>
    %c2_50 = arith.constant 2 : index
    %c0_51 = arith.constant 0 : index
    %78 = vector.load %arg6[%c2_50, %c0_51] : memref<326x32xf32, #tpu.memory_space<vmem>>, vector<288x32xf32>
    %79 = arith.truncf %78 : vector<288x32xf32> to vector<288x32xbf16>
    %c2_52 = arith.constant 2 : index
    %c0_53 = arith.constant 0 : index
    %c0_54 = arith.constant 0 : index
    %80 = vector.load %arg3[%c2_52, %c0_53, %c0_54] : memref<9x32x32xbf16, #tpu.memory_space<vmem>>, vector<1x32x32xbf16>
    %81 = vector.shape_cast %80 : vector<1x32x32xbf16> to vector<32x32xbf16>
    %cst_55 = arith.constant dense<0.000000e+00> : vector<288x32xf32>
    %82 = tpu.matmul %79, %81, %cst_55 {dimension_numbers = #tpu.dot_dimension_numbers<[1], [0], [0], [1], [0, 0, 1, 1], [], []>} : vector<288x32xbf16>, vector<32x32xbf16>, vector<288x32xf32> -> vector<288x32xf32>
    %83 = arith.addf %77, %82 : vector<288x32xf32>
    %c18 = arith.constant 18 : index
    %c0_56 = arith.constant 0 : index
    %84 = vector.load %arg6[%c18, %c0_56] : memref<326x32xf32, #tpu.memory_space<vmem>>, vector<288x32xf32>
    %85 = arith.truncf %84 : vector<288x32xf32> to vector<288x32xbf16>
    %c3_57 = arith.constant 3 : index
    %c0_58 = arith.constant 0 : index
    %c0_59 = arith.constant 0 : index
    %86 = vector.load %arg3[%c3_57, %c0_58, %c0_59] : memref<9x32x32xbf16, #tpu.memory_space<vmem>>, vector<1x32x32xbf16>
    %87 = vector.shape_cast %86 : vector<1x32x32xbf16> to vector<32x32xbf16>
    %cst_60 = arith.constant dense<0.000000e+00> : vector<288x32xf32>
    %88 = tpu.matmul %85, %87, %cst_60 {dimension_numbers = #tpu.dot_dimension_numbers<[1], [0], [0], [1], [0, 0, 1, 1], [], []>} : vector<288x32xbf16>, vector<32x32xbf16>, vector<288x32xf32> -> vector<288x32xf32>
    %89 = arith.addf %83, %88 : vector<288x32xf32>
    %c19_61 = arith.constant 19 : index
    %c0_62 = arith.constant 0 : index
    %90 = vector.load %arg6[%c19_61, %c0_62] : memref<326x32xf32, #tpu.memory_space<vmem>>, vector<288x32xf32>
    %91 = arith.truncf %90 : vector<288x32xf32> to vector<288x32xbf16>
    %c4_63 = arith.constant 4 : index
    %c0_64 = arith.constant 0 : index
    %c0_65 = arith.constant 0 : index
    %92 = vector.load %arg3[%c4_63, %c0_64, %c0_65] : memref<9x32x32xbf16, #tpu.memory_space<vmem>>, vector<1x32x32xbf16>
    %93 = vector.shape_cast %92 : vector<1x32x32xbf16> to vector<32x32xbf16>
    %cst_66 = arith.constant dense<0.000000e+00> : vector<288x32xf32>
    %94 = tpu.matmul %91, %93, %cst_66 {dimension_numbers = #tpu.dot_dimension_numbers<[1], [0], [0], [1], [0, 0, 1, 1], [], []>} : vector<288x32xbf16>, vector<32x32xbf16>, vector<288x32xf32> -> vector<288x32xf32>
    %95 = arith.addf %89, %94 : vector<288x32xf32>
    %c20 = arith.constant 20 : index
    %c0_67 = arith.constant 0 : index
    %96 = vector.load %arg6[%c20, %c0_67] : memref<326x32xf32, #tpu.memory_space<vmem>>, vector<288x32xf32>
    %97 = arith.truncf %96 : vector<288x32xf32> to vector<288x32xbf16>
    %c5_68 = arith.constant 5 : index
    %c0_69 = arith.constant 0 : index
    %c0_70 = arith.constant 0 : index
    %98 = vector.load %arg3[%c5_68, %c0_69, %c0_70] : memref<9x32x32xbf16, #tpu.memory_space<vmem>>, vector<1x32x32xbf16>
    %99 = vector.shape_cast %98 : vector<1x32x32xbf16> to vector<32x32xbf16>
    %cst_71 = arith.constant dense<0.000000e+00> : vector<288x32xf32>
    %100 = tpu.matmul %97, %99, %cst_71 {dimension_numbers = #tpu.dot_dimension_numbers<[1], [0], [0], [1], [0, 0, 1, 1], [], []>} : vector<288x32xbf16>, vector<32x32xbf16>, vector<288x32xf32> -> vector<288x32xf32>
    %101 = arith.addf %95, %100 : vector<288x32xf32>
    %c36 = arith.constant 36 : index
    %c0_72 = arith.constant 0 : index
    %102 = vector.load %arg6[%c36, %c0_72] : memref<326x32xf32, #tpu.memory_space<vmem>>, vector<288x32xf32>
    %103 = arith.truncf %102 : vector<288x32xf32> to vector<288x32xbf16>
    %c6_73 = arith.constant 6 : index
    %c0_74 = arith.constant 0 : index
    %c0_75 = arith.constant 0 : index
    %104 = vector.load %arg3[%c6_73, %c0_74, %c0_75] : memref<9x32x32xbf16, #tpu.memory_space<vmem>>, vector<1x32x32xbf16>
    %105 = vector.shape_cast %104 : vector<1x32x32xbf16> to vector<32x32xbf16>
    %cst_76 = arith.constant dense<0.000000e+00> : vector<288x32xf32>
    %106 = tpu.matmul %103, %105, %cst_76 {dimension_numbers = #tpu.dot_dimension_numbers<[1], [0], [0], [1], [0, 0, 1, 1], [], []>} : vector<288x32xbf16>, vector<32x32xbf16>, vector<288x32xf32> -> vector<288x32xf32>
    %107 = arith.addf %101, %106 : vector<288x32xf32>
    %c37 = arith.constant 37 : index
    %c0_77 = arith.constant 0 : index
    %108 = vector.load %arg6[%c37, %c0_77] : memref<326x32xf32, #tpu.memory_space<vmem>>, vector<288x32xf32>
    %109 = arith.truncf %108 : vector<288x32xf32> to vector<288x32xbf16>
    %c7_78 = arith.constant 7 : index
    %c0_79 = arith.constant 0 : index
    %c0_80 = arith.constant 0 : index
    %110 = vector.load %arg3[%c7_78, %c0_79, %c0_80] : memref<9x32x32xbf16, #tpu.memory_space<vmem>>, vector<1x32x32xbf16>
    %111 = vector.shape_cast %110 : vector<1x32x32xbf16> to vector<32x32xbf16>
    %cst_81 = arith.constant dense<0.000000e+00> : vector<288x32xf32>
    %112 = tpu.matmul %109, %111, %cst_81 {dimension_numbers = #tpu.dot_dimension_numbers<[1], [0], [0], [1], [0, 0, 1, 1], [], []>} : vector<288x32xbf16>, vector<32x32xbf16>, vector<288x32xf32> -> vector<288x32xf32>
    %113 = arith.addf %107, %112 : vector<288x32xf32>
    %c38 = arith.constant 38 : index
    %c0_82 = arith.constant 0 : index
    %114 = vector.load %arg6[%c38, %c0_82] : memref<326x32xf32, #tpu.memory_space<vmem>>, vector<288x32xf32>
    %115 = arith.truncf %114 : vector<288x32xf32> to vector<288x32xbf16>
    %c8_83 = arith.constant 8 : index
    %c0_84 = arith.constant 0 : index
    %c0_85 = arith.constant 0 : index
    %116 = vector.load %arg3[%c8_83, %c0_84, %c0_85] : memref<9x32x32xbf16, #tpu.memory_space<vmem>>, vector<1x32x32xbf16>
    %117 = vector.shape_cast %116 : vector<1x32x32xbf16> to vector<32x32xbf16>
    %cst_86 = arith.constant dense<0.000000e+00> : vector<288x32xf32>
    %118 = tpu.matmul %115, %117, %cst_86 {dimension_numbers = #tpu.dot_dimension_numbers<[1], [0], [0], [1], [0, 0, 1, 1], [], []>} : vector<288x32xbf16>, vector<32x32xbf16>, vector<288x32xf32> -> vector<288x32xf32>
    %119 = arith.addf %113, %118 : vector<288x32xf32>
    %120 = vector.extract_strided_slice %1 {offsets = [19, 0], sizes = [288, 32], strides = [1, 1]} : vector<326x32xf32> to vector<288x32xf32>
    %121 = arith.addf %119, %120 : vector<288x32xf32>
    %c0_87 = arith.constant 0 : index
    %c0_88 = arith.constant 0 : index
    %c0_89 = arith.constant 0 : index
    %122 = vector.load %arg5[%c0_87, %c0_88, %c0_89] : memref<1x288x32xf32, #tpu.memory_space<vmem>>, vector<1x288x32xf32>
    %123 = vector.shape_cast %122 : vector<1x288x32xf32> to vector<288x32xf32>
    %124 = vector.shape_cast %121 : vector<288x32xf32> to vector<1x288x32xf32>
    tpu.vector_store %arg5[%c0_87, %c0_88, %c0_89], %124 {strides = array<i32>} : memref<1x288x32xf32, #tpu.memory_space<vmem>>, vector<1x288x32xf32>,
    return
  }
  func.func @transform_0(%arg0: i32) -> (i32, i32, i32) {
    %c0_i32 = arith.constant 0 : i32
    %c0_i32_0 = arith.constant 0 : i32
    %c0_i32_1 = arith.constant 0 : i32
    return %arg0, %c0_i32, %c0_i32_0 : i32, i32, i32
  }
  func.func @transform_1(%arg0: i32) -> (i32, i32, i32) {
    %c0_i32 = arith.constant 0 : i32
    %c0_i32_0 = arith.constant 0 : i32
    %c0_i32_1 = arith.constant 0 : i32
    %c0_i32_2 = arith.constant 0 : i32
    return %c0_i32, %c0_i32_0, %c0_i32_1 : i32, i32, i32
  }
  func.func @transform_2(%arg0: i32) -> (i32, i32, i32) {
    %c0_i32 = arith.constant 0 : i32
    %c0_i32_0 = arith.constant 0 : i32
    %c0_i32_1 = arith.constant 0 : i32
    %c0_i32_2 = arith.constant 0 : i32
    return %c0_i32, %c0_i32_0, %c0_i32_1 : i32, i32, i32
  }
  func.func @transform_3(%arg0: i32) -> (i32, i32) {
    %c0_i32 = arith.constant 0 : i32
    %c0_i32_0 = arith.constant 0 : i32
    %c0_i32_1 = arith.constant 0 : i32
    return %c0_i32, %c0_i32_0 : i32, i32
  }
  func.func @transform_4(%arg0: i32) -> (i32, i32, i32) {
    %c0_i32 = arith.constant 0 : i32
    %c0_i32_0 = arith.constant 0 : i32
    %c0_i32_1 = arith.constant 0 : i32
    return %arg0, %c0_i32, %c0_i32_0 : i32, i32, i32
  }
}

</mosaic_0001>

<bundles_post_ra>
// kernel: residual_block_forward.1
= control target key start
LH: loop header
LB: loop body
LE: loop exit
PB: predicated region body
PF: predicated region fallthrough
CT: control target
= control target key end

     0   :  { %s8919_s15 = smov 0   ;;  %s10345_s0 = inlined_call_operand.vmem [shape: f32[2,326,32], index: 0, kind: input, shape index: {}]   ;;  %s10346_s1 = inlined_call_operand.vmem [shape: bf16[9,32,32], index: 1, kind: input, shape index: {}]   ;;  %s10347_s2 = inlined_call_operand.vmem [shape: bf16[9,32,32], index: 2, kind: input, shape index: {}]   ;;  %s10348_s3 = inlined_call_operand.vmem [shape: f32[288,1], index: 3, kind: input, shape index: {}]   ;;  %s10349_s4 = inlined_call_operand.vmem [shape: f32[2,288,32], index: 4, kind: output, shape index: {}]  }
   0x1 LB: > { %s6708_s16 = sadd.s32 4294967295, %s8890_s15   ;;  %p6712_p0 = scmp.ge.s32.totalorder %s8890_s15, 1  ;;  %s8890_s15 = sphi %s8919_s15, %s14_s15  }
   0x2   : > { %p162_p1 = scmp.lt.s32.totalorder %s8890_s15, 3 }
   0x4   : > { %p163_p2 = pnand %p6712_p0, %p162_p1 }
   0x6   : > { %166 = sbr.rel (%p163_p2) target bundleno = 1693 (0x69d), region = 36 }
   0xd   : > { %v8811_v0 = vld [vmem:[%s10346_s1 + $0x10] sm:$0xff]   ;;  %p188_p3 = scmp.lt.s32.totalorder %s6708_s16, 1  ;;  %v8812_v1 = vld [vmem:[%s10346_s1 + $0x18] sm:$0xff]   ;;  %v8813_v2 = vld [vmem:[%s10346_s1] sm:$0xff]   ;;  %vm304_vm0 = vsmask.f32 7424 }
   0xe   : > { %7501 = vmatprep.subr.bf16.mxu0 %v8811_v0  ;;  %vm465_vm1 = vcmask 261120   ;;  %v8814_v42 = vld [vmem:[%s10346_s1 + $0x8] sm:$0xff]   ;;  %v9024_v53 = vld [vmem:[%s10346_s1 + $0x20] sm:$0xff]   ;;  %vm946_vm2 = vcmask 1046528   ;;  %vm1512_vm3 = vsmask.f32 6400 }
   0xf   : > { %s10411_s16 = smov (!%p188_p3, %s6708_s16), 1  ;;  %7502 = vmatpush3.bf16.msra.mxu0 %v8811_v0  ;;  %vm1882_vm4 = vcmask 1045504   ;;  %vm2448_vm5 = vsmask.f32 5376  ;;  %vm2818_vm6 = vcmask 1044480   ;;  %vm3427_vm7 = vcmask 259072  }
  0x10   : > { %7503 = vmatprep.subr.bf16.mxu0 %v8812_v1  ;;  %s8797_s21 = smul.u32 328, %s10411_s16 }
  0x11   : > { %s8798_s27 = smul.u32 288, %s10411_s16 }
  0x12   : > { %s8942_s26 = scalar_lea.vmem %s10345_s0, %s8797_s21 }
  0x13   : > { %7504 = vmatpush3.bf16.msra.mxu0 %v8812_v1  ;;  %v199_v3 = vld [vmem:[%s8942_s26] sm:$0xff]  ;;  %v200_v4 = vld [vmem:[%s8942_s26 + $0x8] sm:$0xff]  ;;  %v201_v5 = vld [vmem:[%s8942_s26 + $0x10] sm:$0xff]  ;;  %s10202_s30 = scalar_lea.vmem %s10349_s4, %s8798_s27 }
  0x14   : > { %v202_v6 = vld [vmem:[%s8942_s26 + $0x18] sm:$0xff]  ;;  %v8948_v7 = vpack.c.bf16 %v200_v4, %v199_v3  ;;  %7541 = vmatprep.subr.bf16.mxu0 %v8813_v2  ;;  %v203_v8 = vld [vmem:[%s8942_s26 + $0x20] sm:$0xff]  ;;  %v204_v9 = vld [vmem:[%s8942_s26 + $0x28] sm:$0xff] }
  0x15   : > { %v8952_v10 = vpack.c.bf16 %v202_v6, %v201_v5  ;;  %v8954_v11 = vpack.c.bf16 %v204_v9, %v203_v8  ;;  %v205_v12 = vld [vmem:[%s8942_s26 + $0x30] sm:$0xff]  ;;  %v206_v13 = vld [vmem:[%s8942_s26 + $0x38] sm:$0xff]  ;;  %v207_v14 = vld [vmem:[%s8942_s26 + $0x40] sm:$0xff] }
  0x16   : > { %v306_v15 = vshrl.u32 %v8948_v7, 16  ;;  %v308_v16 = vshll.u32 %v8948_v7, 16  ;;  %v8961_v17 = vpack.c.bf16 %v206_v13, %v205_v12  ;;  %v208_v18 = vld [vmem:[%s8942_s26 + $0x48] sm:$0xff]  ;;  %v209_v19 = vld [vmem:[%s8942_s26 + $0x50] sm:$0xff]  ;;  %v210_v20 = vld [vmem:[%s8942_s26 + $0x58] sm:$0xff] }
  0x17   : > { %v10351_v21 = vshll.u32 %v8952_v10, 16  ;;  %v10350_v22 = vshrl.u32 %v8952_v10, 16  ;;  %v8969_v23 = vshll.u32 %v8954_v11, 16  ;;  %v8972_v24 = vshrl.u32 %v8954_v11, 16  ;;  %v211_v34 = vld [vmem:[%s8942_s26 + $0x60] sm:$0xff]  ;;  %v212_v35 = vld [vmem:[%s8942_s26 + $0x68] sm:$0xff] }
  0x18   : > { %v310_v25 = vrot.slane %v308_v16, 1  ;;  %v8975_v26 = vshll.u32 %v8961_v17, 16  ;;  %v8977_v27 = vpack.c.bf16 %v208_v18, %v207_v14  ;;  %v8982_v30 = vpack.c.bf16 %v210_v20, %v209_v19  ;;  %v213_v46 = vld [vmem:[%s8942_s26 + $0x70] sm:$0xff]  ;;  %v214_v47 = vld [vmem:[%s8942_s26 + $0x78] sm:$0xff]  ;;  %v215_v55 = vld [vmem:[%s8942_s26 + $0x80] sm:$0xff] }
  0x19   : > { %v315_v28 = vrot.slane %v10351_v21, 1  ;;  %v323_v29 = vrot.slane %v8969_v23, 1  ;;  %v8994_v38 = vshrl.u32 %v8961_v17, 16  ;;  %v9009_v45 = vpack.c.bf16 %v212_v35, %v211_v34  ;;  %v216_v58 = vld [vmem:[%s8942_s26 + $0x88] sm:$0xff]  ;;  %v217_v63 = vld [vmem:[%s8942_s26 + $0x90] sm:$0xff]  ;;  %v218_v0 = vld [vmem:[%s8942_s26 + $0x98] sm:$0xff] }
  0x1a   : > { %10375 = vst [vmem:[#allocation3_spill] sm:$0xff] %v8982_v30  ;;  %v311_v31 = vor.u32 %v310_v25, %v306_v15  ;;  %v331_v32 = vrot.slane %v8975_v26, 1  ;;  %v8986_v33 = vshll.u32 %v8977_v27, 16  ;;  %v8998_v40 = vshrl.u32 %v8977_v27, 16  ;;  %v219_v6 = vld [vmem:[%s8942_s26 + $0xa0] sm:$0xff]  ;;  %v220_v9 = vld [vmem:[%s8942_s26 + $0xa8] sm:$0xff] }
  0x1b   : > { %v319_v36 = vor.u32 %v10350_v22, %v315_v28  ;;  %v327_v37 = vor.u32 %v8972_v24, %v323_v29  ;;  %v9001_v41 = vshll.u32 %v8982_v30, 16  ;;  %10376 = vst [vmem:[#allocation4_spill] sm:$0xff] %v9009_v45  ;;  %v9019_v52 = vpack.c.bf16 %v214_v47, %v213_v46  ;;  %v221_v12 = vld [vmem:[%s8942_s26 + $0xb0] sm:$0xff]  ;;  %v222_v15 = vld [vmem:[%s8942_s26 + $0xb8] sm:$0xff]  ;;  %v224_v35 = vld [vmem:[%s8942_s26 + $0xc8] sm:$0xff] }
  0x1c   : > { %v316_v39 = vsel %vm304_vm0, %v311_v31, %v315_v28  ;;  %v339_v48 = vrot.slane %v8986_v33, 1  ;;  %v335_v49 = vor.u32 %v8994_v38, %v331_v32  ;;  %v9027_v54 = vshll.u32 %v9009_v45, 16  ;;  %v223_v31 = vld [vmem:[%s8942_s26 + $0xc0] sm:$0xff]  ;;  %v225_v46 = vld [vmem:[%s8942_s26 + $0xd0] sm:$0xff]  ;;  %v226_v47 = vld [vmem:[%s8942_s26 + $0xd8] sm:$0xff] }
  0x1d   : > { %7505 = vmatprep.mubr.msk.bf16.mxu0 %vm465_vm1, %v316_v39  ;;  %v324_v43 = vsel %vm304_vm0, %v319_v36, %v323_v29  ;;  %v332_v44 = vsel %vm304_vm0, %v327_v37, %v331_v32  ;;  %v347_v51 = vrot.slane %v9001_v41, 1  ;;  %10377 = vst [vmem:[#allocation5_spill] sm:$0xff] %v9019_v52  ;;  %v9032_v57 = vshrl.u32 %v8982_v30, 16 }
  0x1e   : > { %7506 = vmatmul.mubr.msk.bf16.vlgmr.msra.gmra.mrb[0].mxu0 %vm465_vm1, %v324_v43  ;;  %v343_v50 = vor.u32 %v8998_v40, %v339_v48  ;;  %v340_v56 = vsel %vm304_vm0, %v335_v49, %v339_v48  ;;  %v9037_v60 = vshrl.u32 %v9009_v45, 16  ;;  %v9040_v61 = vshll.u32 %v9019_v52, 16 }
  0x1f   : > { %7542 = vmatpush3.bf16.msra.mxu0 %v8813_v2  ;;  %7509 = vmatprep.mubr.msk.bf16.mxu0 %vm465_vm1, %v332_v44  ;;  %v355_v62 = vrot.slane %v9027_v54, 1  ;;  %v9047_v1 = vpack.c.bf16 %v216_v58, %v215_v55  ;;  %v351_v2 = vor.u32 %v9032_v57, %v347_v51  ;;  %v9053_v5 = vpack.c.bf16 %v218_v0, %v217_v63  ;;  %v228_v0 = vld [vmem:[%s8942_s26 + $0xe8] sm:$0xff] }
  0x20   : > { %7543 = vmatprep.subr.bf16.mxu0 %v8814_v42  ;;  %v348_v59 = vsel %vm304_vm0, %v343_v50, %v347_v51  ;;  %v363_v4 = vrot.slane %v9040_v61, 1  ;;  %v9063_v14 = vshrl.u32 %v9019_v52, 16  ;;  %v9075_v25 = vpack.c.bf16 %v220_v9, %v219_v6  ;;  %v229_v6 = vld [vmem:[%s8942_s26 + $0xf0] sm:$0xff]  ;;  %v230_v9 = vld [vmem:[%s8942_s26 + $0xf8] sm:$0xff] }
  0x21   : > { %10378 = vst [vmem:[#allocation6_spill] sm:$0xff] %v9047_v1  ;;  %v359_v3 = vor.u32 %v9037_v60, %v355_v62  ;;  %10379 = vst [vmem:[#allocation7_spill] sm:$0xff] %v9053_v5  ;;  %v9057_v8 = vshll.u32 %v9047_v1, 16  ;;  %v356_v13 = vsel %vm304_vm0, %v351_v2, %v355_v62  ;;  %v9068_v18 = vshrl.u32 %v9047_v1, 16 }
  0x22   : > { %v9071_v19 = vshll.u32 %v9053_v5, 16  ;;  %10380 = vst [vmem:[#allocation8_spill] sm:$0xff] %v9075_v25  ;;  %v9077_v28 = vpack.c.bf16 %v222_v15, %v221_v12  ;;  %v367_v29 = vor.u32 %v9063_v14, %v363_v4  ;;  %v9086_v36 = vshrl.u32 %v9053_v5, 16 }
  0x23   : > { %7544 = vmatpush3.bf16.msra.mxu0 %v8814_v42  ;;  %v364_v16 = vsel %vm304_vm0, %v359_v3, %v363_v4  ;;  %v371_v20 = vrot.slane %v9057_v8, 1  ;;  %v9089_v37 = vshll.u32 %v9075_v25, 16  ;;  %v9092_v39 = vshrl.u32 %v9075_v25, 16 }
  0x24   : > { %7581 = vmatprep.subr.bf16.mxu0 %v9024_v53  ;;  %10381 = vst [vmem:[#allocation9_spill] sm:$0xff] %v9077_v28  ;;  %v379_v34 = vrot.slane %v9071_v19, 1  ;;  %v9095_v42 = vshll.u32 %v9077_v28, 16  ;;  %v9098_v44 = vpack.c.bf16 %v224_v35, %v223_v31  ;;  %v9112_v58 = vpack.c.bf16 %v226_v47, %v225_v46  ;;  %v231_v35 = vld [vmem:[%s8942_s26 + $0x100] sm:$0xff] }
  0x25   : > { %v375_v32 = vor.u32 %v9068_v18, %v371_v20  ;;  %v372_v43 = vsel %vm304_vm0, %v367_v29, %v371_v20  ;;  %v387_v49 = vrot.slane %v9089_v37, 1  ;;  %v9117_v63 = vshrl.u32 %v9077_v28, 16 }
  0x26   : > { %7510 = vmatmul.mubr.msk.bf16.gmra.mrb[4].mxu0 %vm465_vm1, %v340_v56  ;;  %10382 = vst [vmem:[#allocation10_spill] sm:$0xff] %v9098_v44  ;;  %v383_v50 = vor.u32 %v9086_v36, %v379_v34  ;;  %v395_v51 = vrot.slane %v9095_v42, 1  ;;  %v9109_v55 = vshll.u32 %v9098_v44, 16  ;;  %10383 = vst [vmem:[#allocation11_spill] sm:$0xff] %v9112_v58  ;;  %v9122_v3 = vshrl.u32 %v9098_v44, 16 }
  0x27   : > { %7513 = vmatprep.mubr.msk.bf16.mxu0 %vm465_vm1, %v348_v59  ;;  %v380_v48 = vsel %vm304_vm0, %v375_v32, %v379_v34  ;;  %v391_v56 = vor.u32 %v9092_v39, %v387_v49  ;;  %v227_v59 = vld [vmem:[%s8942_s26 + $0xe0] sm:$0xff]  ;;  %v9125_v4 = vshll.u32 %v9112_v58, 16  ;;  %v9137_v29 = vpack.c.bf16 %v230_v9, %v229_v6 }
  0x28   : > { %v388_v62 = vsel %vm304_vm0, %v383_v50, %v387_v49  ;;  %v403_v12 = vrot.slane %v9109_v55, 1  ;;  %v399_v15 = vor.u32 %v9117_v63, %v395_v51  ;;  %v9144_v34 = vshrl.u32 %v9112_v58, 16  ;;  %v233_v49 = vld [vmem:[%s8942_s26 + $0x110] sm:$0xff]  ;;  %v234_v50 = vld [vmem:[%s8942_s26 + $0x118] sm:$0xff] }
  0x29   : > { %v396_v2 = vsel %vm304_vm0, %v391_v56, %v395_v51  ;;  %v411_v20 = vrot.slane %v9125_v4, 1 }
  0x2a   : > { %v404_v32 = vsel %vm304_vm0, %v399_v15, %v403_v12 }
  0x2e   : > { %7514 = vmatmul.mubr.msk.bf16.gmra.mrb[8].mxu0 %vm465_vm1, %v356_v13  ;;  %v9131_v13 = vpack.c.bf16 %v228_v0, %v227_v59  ;;  %v415_v59 = vor.u32 %v9144_v34, %v411_v20 }
  0x2f   : > { %7517 = vmatprep.mubr.msk.bf16.mxu0 %vm465_vm1, %v364_v16  ;;  %v407_v16 = vor.u32 %v9122_v3, %v403_v12  ;;  %v9172_v12 = vshrl.u32 %v9137_v29, 16 }
  0x30   : > { %10384 = vst [vmem:[#allocation12_spill] sm:$0xff] %v9131_v13  ;;  %v9140_v31 = vshll.u32 %v9131_v13, 16  ;;  %v9150_v47 = vshrl.u32 %v9131_v13, 16 }
  0x31   : > { %v412_v46 = vsel %vm304_vm0, %v407_v16, %v411_v20 }
  0x32   : > { %v419_v51 = vrot.slane %v9140_v31, 1 }
  0x34   : > { %v420_v9 = vsel %vm304_vm0, %v415_v59, %v419_v51 }
  0x36   : > { %7518 = vmatmul.mubr.msk.bf16.gmra.mrb[12].mxu0 %vm465_vm1, %v372_v43  ;;  %v232_v43 = vld [vmem:[%s8942_s26 + $0x108] sm:$0xff] }
  0x37   : > { %7521 = vmatprep.mubr.msk.bf16.mxu0 %vm465_vm1, %v380_v48  ;;  %v9153_v48 = vshll.u32 %v9137_v29, 16  ;;  %v9159_v56 = vpack.c.bf16 %v232_v43, %v231_v35 }
  0x39   : > { %v427_v0 = vrot.slane %v9153_v48, 1  ;;  %v9168_v6 = vshll.u32 %v9159_v56, 16  ;;  %v9176_v16 = vshrl.u32 %v9159_v56, 16 }
  0x3b   : > { %v435_v35 = vrot.slane %v9168_v6, 1  ;;  %v431_v43 = vor.u32 %v9172_v12, %v427_v0 }
  0x3e   : > { %7522 = vmatmul.mubr.msk.bf16.gmra.mrb[16].mxu0 %vm465_vm1, %v388_v62  ;;  %v423_v62 = vor.u32 %v9150_v47, %v419_v51  ;;  %v436_v51 = vsel %vm304_vm0, %v431_v43, %v435_v35  ;;  %v948_v43 = vrot.slane %v8952_v10, 1 }
  0x3f   : > { %7525 = vmatprep.mubr.msk.bf16.mxu0 %vm465_vm1, %v396_v2  ;;  %v9165_v2 = vpack.c.bf16 %v234_v50, %v233_v49  ;;  %v439_v49 = vor.u32 %v9176_v16, %v435_v35  ;;  %v8816_v35 = vld [vmem:[%s10346_s1 + $0x28] sm:$0xff]  }
  0x40   : > { %v428_v15 = vsel %vm304_vm0, %v423_v62, %v427_v0 }
  0x41   : > { %10385 = vst [vmem:[#allocation13_spill] sm:$0xff] %v9165_v2  ;;  %v9179_v20 = vshll.u32 %v9165_v2, 16  ;;  %v9196_v59 = vshrl.u32 %v9165_v2, 16 }
  0x43   : > { %v443_v50 = vrot.slane %v9179_v20, 1 }
  0x45   : > { %v447_v0 = vor.u32 %v9196_v59, %v443_v50 }
  0x46   : > { %7526 = vmatmul.mubr.msk.bf16.gmra.mrb[20].mxu0 %vm465_vm1, %v404_v32  ;;  %v9182_v32 = vld [vmem:[%s8942_s26 + $0x120] sm:$0xff] }
  0x47   : > { %7529 = vmatprep.mubr.msk.bf16.mxu0 %vm465_vm1, %v412_v46  ;;  %v9190_v46 = vpack.c.bf16 %v9182_v32, %v9182_v32 }
  0x49   : > { %v449_v62 = vshll.u32 %v9190_v46, 16 }
  0x4e   : > { %7530 = vmatmul.mubr.msk.bf16.gmra.mrb[24].mxu0 %vm465_vm1, %v420_v9  ;;  %v444_v9 = vsel %vm304_vm0, %v439_v49, %v443_v50  ;;  %v950_v50 = vrot.slane %v8954_v11, 1 }
  0x4f   : > { %7533 = vmatprep.mubr.msk.bf16.mxu0 %vm465_vm1, %v428_v15  ;;  %v451_v15 = vrot.slane %v449_v62, 1 }
  0x50   : > { %v951_v62 = vsel %vm946_vm2, %v948_v43, %v950_v50 }
  0x51   : > { %v452_v22 = vsel %vm304_vm0, %v447_v0, %v451_v15  ;;  %v954_v0 = vrot.slane %v8977_v27, 1  ;;  %v956_v15 = vrot.slane %v8982_v30, 1 }
  0x56   : > { %7534 = vmatmul.mubr.msk.bf16.gmra.mrb[28].mxu0 %vm465_vm1, %v436_v51  ;;  %v952_v51 = vrot.slane %v8961_v17, 1 }
  0x57   : > { %7537 = vmatprep.mubr.msk.bf16.mxu0 %vm465_vm1, %v444_v9 }
  0x58   : > { %v953_v9 = vsel %vm946_vm2, %v950_v50, %v952_v51 }
  0x5e   : > { %7538 = vmatmul.mubr.msk.bf16.gmra.mrb[32].mxu0 %vm465_vm1, %v452_v22  ;;  %v8817_v22 = vld [vmem:[%s10346_s1 + $0x30] sm:$0xff]  }
  0x5f   : > { %7545 = vmatprep.mubr.msk.bf16.mxu0 %vm465_vm1, %v8948_v7 }
  0x66   : > { %7546 = vmatmul.mubr.msk.bf16.vlgmr.msra.gmra.mrb[0].mxu0 %vm465_vm1, %v8952_v10 }
  0x67   : > { %7582 = vmatpush3.bf16.msra.mxu0 %v9024_v53  ;;  %7549 = vmatprep.mubr.msk.bf16.mxu0 %vm465_vm1, %v8954_v11  ;;  %v947_v53 = vrot.slane %v8948_v7, 1  ;;  %v8818_v7 = vld [vmem:[%s10346_s1 + $0x38] sm:$0xff]  }
  0x68   : > { %7583 = vmatprep.subr.bf16.mxu0 %v8816_v35 }
  0x69   : > { %v949_v49 = vsel %vm946_vm2, %v947_v53, %v948_v43  ;;  %v955_v53 = vsel %vm946_vm2, %v952_v51, %v954_v0  ;;  %v957_v43 = vsel %vm946_vm2, %v954_v0, %v956_v15  ;;  %v962_v51 = vrot.slane %v9047_v1, 1 }
  0x6b   : > { %7584 = vmatpush3.bf16.msra.mxu0 %v8816_v35  ;;  %v8819_v35 = vld [vmem:[%s10346_s1 + $0x40] sm:$0xff]  }
  0x6c   : > { %7621 = vmatprep.subr.bf16.mxu0 %v8817_v22 }
  0x6e   : > { %7550 = vmatmul.mubr.msk.bf16.gmra.mrb[4].mxu0 %vm465_vm1, %v8961_v17 }
  0x6f   : > { %7553 = vmatprep.mubr.msk.bf16.mxu0 %vm465_vm1, %v8977_v27 }
  0x76   : > { %7554 = vmatmul.mubr.msk.bf16.gmra.mrb[8].mxu0 %vm465_vm1, %v8982_v30 }
  0x77   : > { %7557 = vmatprep.mubr.msk.bf16.mxu0 %vm465_vm1, %v9009_v45 }
  0x7e   : > { %7558 = vmatmul.mubr.msk.bf16.gmra.mrb[12].mxu0 %vm465_vm1, %v9019_v52 }
  0x7f   : > { %7561 = vmatprep.mubr.msk.bf16.mxu0 %vm465_vm1, %v9047_v1 }
  0x86   : > { %7562 = vmatmul.mubr.msk.bf16.gmra.mrb[16].mxu0 %vm465_vm1, %v9053_v5 }
  0x87   : > { %7565 = vmatprep.mubr.msk.bf16.mxu0 %vm465_vm1, %v9075_v25 }
  0x8e   : > { %7566 = vmatmul.mubr.msk.bf16.gmra.mrb[20].mxu0 %vm465_vm1, %v9077_v28 }
  0x8f   : > { %7569 = vmatprep.mubr.msk.bf16.mxu0 %vm465_vm1, %v9098_v44 }
  0x96   : > { %7570 = vmatmul.mubr.msk.bf16.gmra.mrb[24].mxu0 %vm465_vm1, %v9112_v58 }
  0x97   : > { %7573 = vmatprep.mubr.msk.bf16.mxu0 %vm465_vm1, %v9131_v13 }
  0x9e   : > { %7574 = vmatmul.mubr.msk.bf16.gmra.mrb[28].mxu0 %vm465_vm1, %v9137_v29 }
  0x9f   : > { %7577 = vmatprep.mubr.msk.bf16.mxu0 %vm465_vm1, %v9159_v56 }
  0xa6   : > { %7578 = vmatmul.mubr.msk.bf16.gmra.mrb[32].mxu0 %vm465_vm1, %v9165_v2 }
  0xa7   : > { %7585 = vmatprep.mubr.msk.bf16.mxu0 %vm465_vm1, %v949_v49  ;;  %v960_v49 = vrot.slane %v9019_v52, 1 }
  0xa9   : > { %v963_v0 = vsel %vm946_vm2, %v960_v49, %v962_v51 }
  0xae   : > { %7586 = vmatmul.mubr.msk.bf16.vlgmr.msra.gmra.mrb[0].mxu0 %vm465_vm1, %v951_v62 }
  0xaf   : > { %7622 = vmatpush3.bf16.msra.mxu0 %v8817_v22  ;;  %7589 = vmatprep.mubr.msk.bf16.mxu0 %vm465_vm1, %v953_v9  ;;  %v958_v22 = vrot.slane %v9009_v45, 1 }
  0xb0   : > { %7623 = vmatprep.subr.bf16.mxu0 %v8818_v7 }
  0xb1   : > { %v959_v50 = vsel %vm946_vm2, %v956_v15, %v958_v22  ;;  %v961_v21 = vsel %vm946_vm2, %v958_v22, %v960_v49  ;;  %v966_v15 = vrot.slane %v9075_v25, 1  ;;  %v968_v22 = vrot.slane %v9077_v28, 1 }
  0xb2   : > { %v970_v49 = vrot.slane %v9098_v44, 1 }
  0xb3   : > { %7624 = vmatpush3.bf16.msra.mxu0 %v8818_v7  ;;  %v964_v7 = vrot.slane %v9053_v5, 1  ;;  %v969_v45 = vsel %vm946_vm2, %v966_v15, %v968_v22 }
  0xb4   : > { %7661 = vmatprep.subr.bf16.mxu0 %v8819_v35  ;;  %v971_v5 = vsel %vm946_vm2, %v968_v22, %v970_v49  ;;  %v978_v22 = vrot.slane %v9159_v56, 1 }
  0xb5   : > { %v965_v30 = vsel %vm946_vm2, %v962_v51, %v964_v7  ;;  %v967_v52 = vsel %vm946_vm2, %v964_v7, %v966_v15  ;;  %v972_v51 = vrot.slane %v9112_v58, 1  ;;  %v974_v7 = vrot.slane %v9131_v13, 1 }
  0xb6   : > { %7590 = vmatmul.mubr.msk.bf16.gmra.mrb[4].mxu0 %vm465_vm1, %v955_v53  ;;  %v976_v15 = vrot.slane %v9137_v29, 1 }
  0xb7   : > { %7593 = vmatprep.mubr.msk.bf16.mxu0 %vm465_vm1, %v957_v43  ;;  %v973_v1 = vsel %vm946_vm2, %v970_v49, %v972_v51  ;;  %v975_v28 = vsel %vm946_vm2, %v972_v51, %v974_v7  ;;  %v980_v49 = vrot.slane %v9165_v2, 1  ;;  %v982_v51 = vrot.slane %v9190_v46, 1  ;;  %v8820_v2 = vld [vmem:[%s10346_s1 + $0x48] sm:$0xff]   ;;  %v8821_v46 = vld [vmem:[%s10346_s1 + $0x50] sm:$0xff]  }
  0xb8   : > { %v977_v25 = vsel %vm946_vm2, %v974_v7, %v976_v15  ;;  %v979_v58 = vsel %vm946_vm2, %v976_v15, %v978_v22 }
  0xb9   : > { %v981_v44 = vsel %vm946_vm2, %v978_v22, %v980_v49  ;;  %v983_v7 = vsel %vm946_vm2, %v980_v49, %v982_v51  ;;  %v1524_v22 = vrot.slane %v8998_v40, 1 }
  0xbe   : > { %7594 = vmatmul.mubr.msk.bf16.gmra.mrb[8].mxu0 %vm465_vm1, %v959_v50 }
  0xbf   : > { %7597 = vmatprep.mubr.msk.bf16.mxu0 %vm465_vm1, %v961_v21 }
  0xc6   : > { %7598 = vmatmul.mubr.msk.bf16.gmra.mrb[12].mxu0 %vm465_vm1, %v963_v0 }
  0xc7   : > { %7601 = vmatprep.mubr.msk.bf16.mxu0 %vm465_vm1, %v965_v30 }
  0xce   : > { %7602 = vmatmul.mubr.msk.bf16.gmra.mrb[16].mxu0 %vm465_vm1, %v967_v52 }
  0xcf   : > { %7605 = vmatprep.mubr.msk.bf16.mxu0 %vm465_vm1, %v969_v45 }
  0xd6   : > { %7606 = vmatmul.mubr.msk.bf16.gmra.mrb[20].mxu0 %vm465_vm1, %v971_v5 }
  0xd7   : > { %7609 = vmatprep.mubr.msk.bf16.mxu0 %vm465_vm1, %v973_v1 }
  0xde   : > { %7610 = vmatmul.mubr.msk.bf16.gmra.mrb[24].mxu0 %vm465_vm1, %v975_v28 }
  0xdf   : > { %7613 = vmatprep.mubr.msk.bf16.mxu0 %vm465_vm1, %v977_v25 }
  0xe6   : > { %7614 = vmatmul.mubr.msk.bf16.gmra.mrb[28].mxu0 %vm465_vm1, %v979_v58 }
  0xe7   : > { %7617 = vmatprep.mubr.msk.bf16.mxu0 %vm465_vm1, %v981_v44 }
  0xee   : > { %7618 = vmatmul.mubr.msk.bf16.gmra.mrb[32].mxu0 %vm465_vm1, %v983_v7 }
  0xef   : > { %7625 = vmatprep.mubr.msk.bf16.mxu0 %vm465_vm1, %v951_v62 }
  0xf6   : > { %7626 = vmatmul.mubr.msk.bf16.vlgmr.msra.gmra.mrb[0].mxu0 %vm465_vm1, %v953_v9 }
  0xf7   : > { %7662 = vmatpush3.bf16.msra.mxu0 %v8819_v35  ;;  %7629 = vmatprep.mubr.msk.bf16.mxu0 %vm465_vm1, %v955_v53 }
  0xf8   : > { %7663 = vmatprep.subr.bf16.mxu0 %v8820_v2 }
  0xfb   : > { %7664 = vmatpush3.bf16.msra.mxu0 %v8820_v2  ;;  %v236_v2 = vld [vmem:[%s8942_s26 + $0x128] sm:$0xff] }
  0xfc   : > { %7701 = vmatprep.subr.bf16.mxu0 %v8821_v46  ;;  %v9330_v62 = vpack.c.bf16 %v236_v2, %v9182_v32  ;;  %v1528_v2 = vrot.slane %v9032_v57, 1 }
  0xfe   : > { %7630 = vmatmul.mubr.msk.bf16.gmra.mrb[4].mxu0 %vm465_vm1, %v957_v43 }
  0xff   : > { %7633 = vmatprep.mubr.msk.bf16.mxu0 %vm465_vm1, %v959_v50  ;;  %v1520_v50 = vrot.slane %v8994_v38, 1 }
 0x106   : > { %7634 = vmatmul.mubr.msk.bf16.gmra.mrb[8].mxu0 %vm465_vm1, %v961_v21  ;;  %v1272_v21 = vrot.slane %v9330_v62, 1 }
 0x107   : > { %7637 = vmatprep.mubr.msk.bf16.mxu0 %vm465_vm1, %v963_v0  ;;  %v1521_v0 = vrot.slane %v8975_v26, 2 }
 0x10e   : > { %7638 = vmatmul.mubr.msk.bf16.gmra.mrb[12].mxu0 %vm465_vm1, %v965_v30  ;;  %v9336_v30 = vld [vmem:[%s8942_s26 + $0x130] sm:$0xff] }
 0x10f   : > { %7641 = vmatprep.mubr.msk.bf16.mxu0 %vm465_vm1, %v967_v52 }
 0x116   : > { %7642 = vmatmul.mubr.msk.bf16.gmra.mrb[16].mxu0 %vm465_vm1, %v969_v45  ;;  %v10386_v45 = vshll.u32 %v8952_v10, 16 }
 0x117   : > { %7645 = vmatprep.mubr.msk.bf16.mxu0 %vm465_vm1, %v971_v5  ;;  %v1273_v5 = vsel %vm946_vm2, %v980_v49, %v1272_v21  ;;  %v1525_v49 = vrot.slane %v8986_v33, 2 }
 0x118   : > { %v1514_v52 = vrot.slane %v10386_v45, 2 }
 0x119   : > { %v1526_v51 = vor.u32 %v1525_v49, %v1524_v22  ;;  %v1544_v49 = vrot.slane %v9086_v36, 1 }
 0x11e   : > { %7646 = vmatmul.mubr.msk.bf16.gmra.mrb[20].mxu0 %vm465_vm1, %v973_v1  ;;  %v9342_v1 = vpack.c.bf16 %v9336_v30, %v9336_v30 }
 0x11f   : > { %7649 = vmatprep.mubr.msk.bf16.mxu0 %vm465_vm1, %v975_v28  ;;  %v10387_v28 = vshrl.u32 %v8952_v10, 16 }
 0x120   : > { %v1274_v9 = vrot.slane %v9342_v1, 1 }
 0x121   : > { %v1513_v32 = vrot.slane %v10387_v28, 1  ;;  %v8822_v28 = vld [vmem:[%s10346_s1 + $0x58] sm:$0xff]  }
 0x122   : > { %v1275_v43 = vsel %vm946_vm2, %v1272_v21, %v1274_v9  ;;  %v1529_v21 = vrot.slane %v9001_v41, 2 }
 0x123   : > { %v1515_v35 = vor.u32 %v1514_v52, %v1513_v32  ;;  %v1532_v52 = vrot.slane %v9037_v60, 1 }
 0x124   : > { %v1530_v32 = vor.u32 %v1529_v21, %v1528_v2  ;;  %v1549_v2 = vrot.slane %v9089_v37, 2 }
 0x126   : > { %7650 = vmatmul.mubr.msk.bf16.gmra.mrb[24].mxu0 %vm465_vm1, %v977_v25  ;;  %v1516_v25 = vrot.slane %v8972_v24, 1  ;;  %v1531_v9 = vsel %vm1512_vm3, %v1526_v51, %v1530_v32 }
 0x127   : > { %7653 = vmatprep.mubr.msk.bf16.mxu0 %vm465_vm1, %v979_v58  ;;  %v1517_v58 = vrot.slane %v8969_v23, 2 }
 0x129   : > { %v1518_v53 = vor.u32 %v1517_v58, %v1516_v25  ;;  %v9374_v58 = vld [vmem:[%s10346_s1 + $0x60] sm:$0xff]  }
 0x12b   : > { %v1519_v15 = vsel %vm1512_vm3, %v1515_v35, %v1518_v53  ;;  %v1536_v35 = vrot.slane %v9063_v14, 1 }
 0x12e   : > { %7654 = vmatmul.mubr.msk.bf16.gmra.mrb[28].mxu0 %vm465_vm1, %v981_v44  ;;  %v1522_v44 = vor.u32 %v1521_v0, %v1520_v50  ;;  %v1541_v50 = vrot.slane %v9057_v8, 2 }
 0x12f   : > { %7657 = vmatprep.mubr.msk.bf16.mxu0 %vm465_vm1, %v1273_v5  ;;  %v1533_v5 = vrot.slane %v9027_v54, 2 }
 0x130   : > { %v1523_v7 = vsel %vm1512_vm3, %v1518_v53, %v1522_v44  ;;  %v1527_v45 = vsel %vm1512_vm3, %v1522_v44, %v1526_v51  ;;  %v1537_v53 = vrot.slane %v9040_v61, 2  ;;  %v1545_v44 = vrot.slane %v9071_v19, 2 }
 0x131   : > { %v1534_v25 = vor.u32 %v1533_v5, %v1532_v52  ;;  %v1552_v5 = vrot.slane %v9117_v63, 1 }
 0x132   : > { %v1538_v0 = vor.u32 %v1537_v53, %v1536_v35  ;;  %v1546_v21 = vor.u32 %v1545_v44, %v1544_v49 }
 0x134   : > { %v1539_v22 = vsel %vm1512_vm3, %v1534_v25, %v1538_v0 }
 0x136   : > { %7658 = vmatmul.mubr.msk.bf16.gmra.mrb[32].mxu0 %vm465_vm1, %v1275_v43  ;;  %v1535_v43 = vsel %vm1512_vm3, %v1530_v32, %v1534_v25  ;;  %v1556_v25 = vrot.slane %v9122_v3, 1 }
 0x137   : > { %7665 = vmatprep.mubr.msk.bf16.mxu0 %vm465_vm1, %v1519_v15 }
 0x13e   : > { %7666 = vmatmul.mubr.msk.bf16.vlgmr.msra.gmra.mrb[0].mxu0 %vm465_vm1, %v1523_v7  ;;  %v1548_v7 = vrot.slane %v9092_v39, 1 }
 0x13f   : > { %7702 = vmatpush3.bf16.msra.mxu0 %v8821_v46  ;;  %7669 = vmatprep.mubr.msk.bf16.mxu0 %vm465_vm1, %v1527_v45  ;;  %v1540_v46 = vrot.slane %v9068_v18, 1 }
 0x140   : > { %7703 = vmatprep.subr.bf16.mxu0 %v8822_v28  ;;  %v1550_v45 = vor.u32 %v1549_v2, %v1548_v7  ;;  %v1568_v7 = vrot.slane %v9172_v12, 1  ;;  %v1569_v2 = vrot.slane %v9153_v48, 2 }
 0x141   : > { %v1542_v15 = vor.u32 %v1541_v50, %v1540_v46  ;;  %v1560_v46 = vrot.slane %v9144_v34, 1  ;;  %v1561_v50 = vrot.slane %v9125_v4, 2 }
 0x142   : > { %v1551_v32 = vsel %vm1512_vm3, %v1546_v21, %v1550_v45 }
 0x143   : > { %7704 = vmatpush3.bf16.msra.mxu0 %v8822_v28  ;;  %v1543_v51 = vsel %vm1512_vm3, %v1538_v0, %v1542_v15  ;;  %v1547_v52 = vsel %vm1512_vm3, %v1542_v15, %v1546_v21  ;;  %v1553_v28 = vrot.slane %v9095_v42, 2  ;;  %v1564_v15 = vrot.slane %v9150_v47, 1 }
 0x144   : > { %7741 = vmatprep.subr.bf16.mxu0 %v9374_v58  ;;  %v1562_v49 = vor.u32 %v1561_v50, %v1560_v46 }
 0x145   : > { %v1554_v35 = vor.u32 %v1553_v28, %v1552_v5  ;;  %v1570_v5 = vor.u32 %v1569_v2, %v1568_v7 }
 0x146   : > { %7670 = vmatmul.mubr.msk.bf16.gmra.mrb[4].mxu0 %vm465_vm1, %v1531_v9  ;;  %v1557_v9 = vrot.slane %v9109_v55, 2 }
 0x147   : > { %7673 = vmatprep.mubr.msk.bf16.mxu0 %vm465_vm1, %v1535_v43  ;;  %v1555_v43 = vsel %vm1512_vm3, %v1550_v45, %v1554_v35  ;;  %v1572_v45 = vrot.slane %v9176_v16, 1 }
 0x148   : > { %v1558_v53 = vor.u32 %v1557_v9, %v1556_v25  ;;  %v10372_v25 = vshll.u32 %v9330_v62, 16 }
 0x14a   : > { %v1559_v0 = vsel %vm1512_vm3, %v1554_v35, %v1558_v53  ;;  %v1576_v35 = vrot.slane %v9196_v59, 1  ;;  %v1586_v50 = vrot.slane %v10372_v25, 2  ;;  %v10395_v25 = vld [vmem:[#allocation10_spill] sm:$0xff] }
 0x14e   : > { %7674 = vmatmul.mubr.msk.bf16.gmra.mrb[8].mxu0 %vm465_vm1, %v1539_v22  ;;  %v1565_v22 = vrot.slane %v9140_v31, 2 }
 0x14f   : > { %7677 = vmatprep.mubr.msk.bf16.mxu0 %vm465_vm1, %v1543_v51  ;;  %v1563_v51 = vsel %vm1512_vm3, %v1558_v53, %v1562_v49  ;;  %v1577_v53 = vrot.slane %v9179_v20, 2 }
 0x150   : > { %v1566_v44 = vor.u32 %v1565_v22, %v1564_v15  ;;  %v1590_v15 = vshrl.u32 %v9342_v1, 16  ;;  %v1593_v22 = vshll.u32 %v9342_v1, 16 }
 0x152   : > { %v1567_v21 = vsel %vm1512_vm3, %v1562_v49, %v1566_v44  ;;  %v1571_v9 = vsel %vm1512_vm3, %v1566_v44, %v1570_v5  ;;  %v1595_v7 = vrot.slane %v1593_v22, 2  ;;  %v8825_v22 = vld [vmem:[%s10346_s1 + $0x70] sm:$0xff]  }
 0x156   : > { %7678 = vmatmul.mubr.msk.bf16.gmra.mrb[12].mxu0 %vm465_vm1, %v1547_v52  ;;  %v1573_v52 = vrot.slane %v9168_v6, 2 }
 0x157   : > { %7681 = vmatprep.mubr.msk.bf16.mxu0 %vm465_vm1, %v1551_v32  ;;  %v10373_v32 = vshrl.u32 %v9330_v62, 16 }
 0x158   : > { %v1574_v28 = vor.u32 %v1573_v52, %v1572_v45  ;;  %v1883_v45 = vrot.slane %v8952_v10, 2  ;;  %v1884_v52 = vrot.slane %v8954_v11, 2  ;;  %v8824_v10 = vld [vmem:[%s10346_s1 + $0x68] sm:$0xff]  }
 0x159   : > { %v1583_v46 = vrot.slane %v10373_v32, 1 }
 0x15b   : > { %v1587_v49 = vor.u32 %v1586_v50, %v1583_v46  ;;  %v10388_v46 = vld [vmem:[#allocation3_spill] sm:$0xff] }
 0x15c   : > { %v1890_v50 = vrot.slane %v10388_v46, 2 }
 0x15e   : > { %7682 = vmatmul.mubr.msk.bf16.gmra.mrb[16].mxu0 %vm465_vm1, %v1555_v43  ;;  %v1575_v43 = vsel %vm1512_vm3, %v1570_v5, %v1574_v28 }
 0x15f   : > { %7685 = vmatprep.mubr.msk.bf16.mxu0 %vm465_vm1, %v1559_v0  ;;  %v1578_v0 = vor.u32 %v1577_v53, %v1576_v35  ;;  %v1888_v35 = vrot.slane %v8977_v27, 2 }
 0x161   : > { %v1579_v44 = vsel %vm1512_vm3, %v1574_v28, %v1578_v0  ;;  %v1588_v2 = vsel %vm1512_vm3, %v1578_v0, %v1587_v49  ;;  %v1886_v28 = vrot.slane %v8961_v17, 2  ;;  %v10389_v0 = vld [vmem:[#allocation4_spill] sm:$0xff] }
 0x163   : > { %v1887_v53 = vsel %vm1882_vm4, %v1884_v52, %v1886_v28 }
 0x166   : > { %7686 = vmatmul.mubr.msk.bf16.gmra.mrb[20].mxu0 %vm465_vm1, %v1563_v51  ;;  %v1592_v51 = vrot.slane %v1590_v15, 1  ;;  %v1892_v15 = vrot.slane %v10389_v0, 2 }
 0x167   : > { %7689 = vmatprep.mubr.msk.bf16.mxu0 %vm465_vm1, %v1567_v21 }
 0x168   : > { %v1596_v21 = vor.u32 %v1595_v7, %v1592_v51  ;;  %v10391_v7 = vld [vmem:[#allocation6_spill] sm:$0xff] }
 0x16a   : > { %v1597_v5 = vsel %vm1512_vm3, %v1587_v49, %v1596_v21  ;;  %v1891_v49 = vsel %vm1882_vm4, %v1888_v35, %v1890_v50 }
 0x16e   : > { %7690 = vmatmul.mubr.msk.bf16.gmra.mrb[24].mxu0 %vm465_vm1, %v1571_v9  ;;  %v1885_v9 = vsel %vm1882_vm4, %v1883_v45, %v1884_v52  ;;  %v10392_v52 = vld [vmem:[#allocation7_spill] sm:$0xff] }
 0x16f   : > { %7693 = vmatprep.mubr.msk.bf16.mxu0 %vm465_vm1, %v1575_v43  ;;  %v1889_v43 = vsel %vm1882_vm4, %v1886_v28, %v1888_v35 }
 0x176   : > { %7694 = vmatmul.mubr.msk.bf16.gmra.mrb[28].mxu0 %vm465_vm1, %v1579_v44  ;;  %v1893_v44 = vsel %vm1882_vm4, %v1890_v50, %v1892_v15  ;;  %v10394_v50 = vld [vmem:[#allocation9_spill] sm:$0xff] }
 0x177   : > { %7697 = vmatprep.mubr.msk.bf16.mxu0 %vm465_vm1, %v1588_v2  ;;  %v1896_v2 = vrot.slane %v10391_v7, 2 }
 0x17e   : > { %7698 = vmatmul.mubr.msk.bf16.gmra.mrb[32].mxu0 %vm465_vm1, %v1597_v5  ;;  %v1898_v5 = vrot.slane %v10392_v52, 2 }
 0x17f   : > { %7705 = vmatprep.mubr.msk.bf16.mxu0 %vm465_vm1, %v1885_v9  ;;  %v10393_v9 = vld [vmem:[#allocation8_spill] sm:$0xff] }
 0x180   : > { %v1900_v28 = vrot.slane %v10393_v9, 2  ;;  %v1899_v35 = vsel %vm1882_vm4, %v1896_v2, %v1898_v5  ;;  %v10396_v9 = vld [vmem:[#allocation11_spill] sm:$0xff] }
 0x186   : > { %7706 = vmatmul.mubr.msk.bf16.vlgmr.msra.gmra.mrb[0].mxu0 %vm465_vm1, %v1887_v53 }
 0x187   : > { %7742 = vmatpush3.bf16.msra.mxu0 %v9374_v58  ;;  %7709 = vmatprep.mubr.msk.bf16.mxu0 %vm465_vm1, %v1889_v43  ;;  %v10390_v58 = vld [vmem:[#allocation5_spill] sm:$0xff] }
 0x188   : > { %7743 = vmatprep.subr.bf16.mxu0 %v8824_v10  ;;  %v1894_v51 = vrot.slane %v10390_v58, 2 }
 0x18a   : > { %v1895_v21 = vsel %vm1882_vm4, %v1892_v15, %v1894_v51  ;;  %v1897_v45 = vsel %vm1882_vm4, %v1894_v51, %v1896_v2  ;;  %v1902_v15 = vrot.slane %v10394_v50, 2  ;;  %v1904_v51 = vrot.slane %v10395_v25, 2 }
 0x18b   : > { %7744 = vmatpush3.bf16.msra.mxu0 %v8824_v10  ;;  %v1901_v10 = vsel %vm1882_vm4, %v1898_v5, %v1900_v28  ;;  %v1906_v2 = vrot.slane %v10396_v9, 2  ;;  %v1908_v5 = vrot.slane %v9131_v13, 2  ;;  %v10397_v13 = vld [vmem:[#allocation13_spill] sm:$0xff] }
 0x18c   : > { %7781 = vmatprep.subr.bf16.mxu0 %v8825_v22  ;;  %v1903_v32 = vsel %vm1882_vm4, %v1900_v28, %v1902_v15  ;;  %v1905_v7 = vsel %vm1882_vm4, %v1902_v15, %v1904_v51  ;;  %v1910_v28 = vrot.slane %v9137_v29, 2  ;;  %v1912_v15 = vrot.slane %v9159_v56, 2 }
 0x18d   : > { %v1907_v52 = vsel %vm1882_vm4, %v1904_v51, %v1906_v2  ;;  %v1909_v58 = vsel %vm1882_vm4, %v1906_v2, %v1908_v5  ;;  %v1914_v51 = vrot.slane %v10397_v13, 2  ;;  %v1916_v2 = vrot.slane %v9330_v62, 2  ;;  %v8826_v13 = vld [vmem:[%s10346_s1 + $0x78] sm:$0xff]  }
 0x18e   : > { %7710 = vmatmul.mubr.msk.bf16.gmra.mrb[4].mxu0 %vm465_vm1, %v1891_v49  ;;  %v1911_v25 = vsel %vm1882_vm4, %v1908_v5, %v1910_v28  ;;  %v1913_v50 = vsel %vm1882_vm4, %v1910_v28, %v1912_v15  ;;  %v1918_v5 = vrot.slane %v9342_v1, 2  ;;  %v9508_v1 = vld [vmem:[%s10346_s1 + $0x80] sm:$0xff]  }
 0x18f   : > { %7713 = vmatprep.mubr.msk.bf16.mxu0 %vm465_vm1, %v1893_v44  ;;  %v1915_v9 = vsel %vm1882_vm4, %v1912_v15, %v1914_v51  ;;  %v1917_v0 = vsel %vm1882_vm4, %v1914_v51, %v1916_v2  ;;  %v2450_v51 = vrot.slane %v8969_v23, 3 }
 0x190   : > { %v1919_v28 = vsel %vm1882_vm4, %v1916_v2, %v1918_v5  ;;  %v2452_v5 = vrot.slane %v8994_v38, 2 }
 0x196   : > { %7714 = vmatmul.mubr.msk.bf16.gmra.mrb[8].mxu0 %vm465_vm1, %v1895_v21 }
 0x197   : > { %7717 = vmatprep.mubr.msk.bf16.mxu0 %vm465_vm1, %v1897_v45 }
 0x19e   : > { %7718 = vmatmul.mubr.msk.bf16.gmra.mrb[12].mxu0 %vm465_vm1, %v1899_v35 }
 0x19f   : > { %7721 = vmatprep.mubr.msk.bf16.mxu0 %vm465_vm1, %v1901_v10 }
 0x1a6   : > { %7722 = vmatmul.mubr.msk.bf16.gmra.mrb[16].mxu0 %vm465_vm1, %v1903_v32 }
 0x1a7   : > { %7725 = vmatprep.mubr.msk.bf16.mxu0 %vm465_vm1, %v1905_v7 }
 0x1ae   : > { %7726 = vmatmul.mubr.msk.bf16.gmra.mrb[20].mxu0 %vm465_vm1, %v1907_v52 }
 0x1af   : > { %7729 = vmatprep.mubr.msk.bf16.mxu0 %vm465_vm1, %v1909_v58 }
 0x1b6   : > { %7730 = vmatmul.mubr.msk.bf16.gmra.mrb[24].mxu0 %vm465_vm1, %v1911_v25 }
 0x1b7   : > { %7733 = vmatprep.mubr.msk.bf16.mxu0 %vm465_vm1, %v1913_v50 }
 0x1be   : > { %7734 = vmatmul.mubr.msk.bf16.gmra.mrb[28].mxu0 %vm465_vm1, %v1915_v9 }
 0x1bf   : > { %7737 = vmatprep.mubr.msk.bf16.mxu0 %vm465_vm1, %v1917_v0 }
 0x1c6   : > { %7738 = vmatmul.mubr.msk.bf16.gmra.mrb[32].mxu0 %vm465_vm1, %v1919_v28  ;;  %v2453_v28 = vrot.slane %v8975_v26, 3  ;;  %v253_v26 = vld [vmem:[%s10348_s3 + $0x68] sm:$0xff] }
 0x1c7   : > { %7745 = vmatprep.mubr.msk.bf16.mxu0 %vm465_vm1, %v1887_v53  ;;  %v8892_v53 = vmov 0  }
 0x1c8   : > { %8809 = vset.pattern.permute.xlu0 %v8892_v53  ;;  %8810 = vset.pattern.permute.xlu1 %v8892_v53  ;;  %v251_v53 = vld [vmem:[%s10348_s3 + $0x58] sm:$0xff]  ;;  %v2454_v38 = vor.u32 %v2453_v28, %v2452_v5  ;;  %v2472_v28 = vrot.slane %v9068_v18, 2  ;;  %v264_v18 = vld [vmem:[%s10348_s3 + $0xc0] sm:$0xff] }
 0x1ce   : > { %7746 = vmatmul.mubr.msk.bf16.vlgmr.msra.gmra.mrb[0].mxu0 %vm465_vm1, %v1889_v43  ;;  %v242_v43 = vld [vmem:[%s10348_s3 + $0x10] sm:$0xff] }
 0x1cf   : > { %7782 = vmatpush3.bf16.msra.mxu0 %v8825_v22  ;;  %7749 = vmatprep.mubr.msk.bf16.mxu0 %vm465_vm1, %v1891_v49  ;;  %v243_v22 = vld [vmem:[%s10348_s3 + $0x18] sm:$0xff]  ;;  %v244_v49 = vld [vmem:[%s10348_s3 + $0x20] sm:$0xff] }
 0x1d0   : > { %7783 = vmatprep.subr.bf16.mxu0 %v8826_v13  ;;  %3183 = vperm.xlu1 %8810, %v242_v43   ;;  %v2456_v43 = vrot.slane %v8998_v40, 2  ;;  %v256_v40 = vld [vmem:[%s10348_s3 + $0x80] sm:$0xff] }
 0x1d3   : > { %7784 = vmatpush3.bf16.msra.mxu0 %v8826_v13  ;;  %v240_v13 = vld [vmem:[%s10348_s3] sm:$0xff] }
 0x1d4   : > { %7821 = vmatprep.subr.bf16.mxu0 %v9508_v1  ;;  %3173 = vperm.xlu0 %8809, %v240_v13  }
 0x1d5   : > { %3188 = vperm.xlu1 %8810, %v243_v22  }
 0x1d6   : > { %7750 = vmatmul.mubr.msk.bf16.gmra.mrb[4].mxu0 %vm465_vm1, %v1893_v44  ;;  %v238_v44 = vld [vmem:[%s8942_s26 + $0x138] sm:$0xff] }
 0x1d7   : > { %7753 = vmatprep.mubr.msk.bf16.mxu0 %vm465_vm1, %v1895_v21  ;;  %v9544_v21 = vpack.c.bf16 %v238_v44, %v9336_v30  ;;  %v249_v30 = vld [vmem:[%s10348_s3 + $0x48] sm:$0xff]  ;;  %v2461_v44 = vrot.slane %v9001_v41, 3 }
 0x1d8   : > { %v257_v41 = vld [vmem:[%s10348_s3 + $0x88] sm:$0xff] }
 0x1de   : > { %7754 = vmatmul.mubr.msk.bf16.gmra.mrb[8].mxu0 %vm465_vm1, %v1897_v45  ;;  %v248_v45 = vld [vmem:[%s10348_s3 + $0x40] sm:$0xff] }
 0x1df   : > { %7757 = vmatprep.mubr.msk.bf16.mxu0 %vm465_vm1, %v1899_v35  ;;  %v239_v35 = vld [vmem:[%s8942_s26 + $0x140] sm:$0x3f] }
 0x1e0   : > { %v9563_v15 = vpack.c.bf16 %v239_v35, %v239_v35 }
 0x1e6   : > { %7758 = vmatmul.mubr.msk.bf16.gmra.mrb[12].mxu0 %vm465_vm1, %v1901_v10  ;;  %v250_v10 = vld [vmem:[%s10348_s3 + $0x50] sm:$0xff] }
 0x1e7   : > { %7761 = vmatprep.mubr.msk.bf16.mxu0 %vm465_vm1, %v1903_v32  ;;  %v241_v32 = vld [vmem:[%s10348_s3 + $0x8] sm:$0xff] }
 0x1e8   : > { %3178 = vperm.xlu0 %8809, %v241_v32   ;;  %v2457_v32 = vrot.slane %v8986_v33, 3 }
 0x1ea   : > { %v2458_v33 = vor.u32 %v2457_v32, %v2456_v43  ;;  %v2484_v32 = vrot.slane %v9117_v63, 2  ;;  %v270_v63 = vld [vmem:[%s10348_s3 + $0xf0] sm:$0xff] }
 0x1ec   : > { %3193 = vperm.xlu0 %8809, %v244_v49   ;;  %v2460_v49 = vrot.slane %v9032_v57, 2  ;;  %v258_v57 = vld [vmem:[%s10348_s3 + $0x90] sm:$0xff] }
 0x1ee   : > { %7762 = vmatmul.mubr.msk.bf16.gmra.mrb[16].mxu0 %vm465_vm1, %v1905_v7  ;;  %v245_v7 = vld [vmem:[%s10348_s3 + $0x28] sm:$0xff] }
 0x1ef   : > { %7765 = vmatprep.mubr.msk.bf16.mxu0 %vm465_vm1, %v1907_v52  ;;  %3198 = vperm.xlu1 %8810, %v245_v7   ;;  %v2208_v52 = vrot.slane %v9544_v21, 2  ;;  %v255_v7 = vld [vmem:[%s10348_s3 + $0x78] sm:$0xff] }
 0x1f6   : > { %7766 = vmatmul.mubr.msk.bf16.gmra.mrb[20].mxu0 %vm465_vm1, %v1909_v58  ;;  %v246_v58 = vld [vmem:[%s10348_s3 + $0x30] sm:$0xff] }
 0x1f7   : > { %7769 = vmatprep.mubr.msk.bf16.mxu0 %vm465_vm1, %v1911_v25  ;;  %3203 = vperm.xlu0 %8809, %v246_v58   ;;  %v247_v25 = vld [vmem:[%s10348_s3 + $0x38] sm:$0xff]  ;;  %v2462_v58 = vor.u32 %v2461_v44, %v2460_v49 }
 0x1f8   : > { %3208 = vperm.xlu1 %8810, %v247_v25   ;;  %v2459_v25 = vsel %vm2448_vm5, %v2454_v38, %v2458_v33  ;;  %v267_v49 = vld [vmem:[%s10348_s3 + $0xd8] sm:$0xff] }
 0x1f9   : > { %v2463_v35 = vsel %vm2448_vm5, %v2458_v33, %v2462_v58  ;;  %v2489_v33 = vrot.slane %v9109_v55, 3 }
 0x1fb   : > { %3213 = vperm.xlu0 %8809, %v248_v45   ;;  %v2464_v45 = vrot.slane %v9037_v60, 2  ;;  %v259_v60 = vld [vmem:[%s10348_s3 + $0x98] sm:$0xff] }
 0x1fc   : > { %3218 = vperm.xlu1 %8810, %v249_v30   ;;  %v2468_v30 = vrot.slane %v9063_v14, 2 }
 0x1fe   : > { %7770 = vmatmul.mubr.msk.bf16.gmra.mrb[24].mxu0 %vm465_vm1, %v1913_v50  ;;  %v2209_v50 = vsel %vm1882_vm4, %v1916_v2, %v2208_v52  ;;  %v252_v2 = vld [vmem:[%s10348_s3 + $0x60] sm:$0xff] }
 0x1ff   : > { %7773 = vmatprep.mubr.msk.bf16.mxu0 %vm465_vm1, %v1915_v9  ;;  %v2449_v9 = vrot.slane %v8972_v24, 2  ;;  %3223 = vperm.xlu0 %8809, %v250_v10   ;;  %v2210_v24 = vrot.slane %v9563_v15, 2  ;;  %v2469_v10 = vrot.slane %v9040_v61, 3 }
 0x200   : > { %3228 = vperm.xlu1 %8810, %v251_v53  }
 0x201   : > { %v2451_v23 = vor.u32 %v2450_v51, %v2449_v9  ;;  %v2211_v13 = vsel %vm1882_vm4, %v2208_v52, %v2210_v24  ;;  %v2465_v52 = vrot.slane %v9027_v54, 3  ;;  %v260_v54 = vld [vmem:[%s10348_s3 + $0xa0] sm:$0xff]  ;;  %v2470_v14 = vor.u32 %v2469_v10, %v2468_v30  ;;  %v261_v9 = vld [vmem:[%s10348_s3 + $0xa8] sm:$0xff]  ;;  %v262_v51 = vld [vmem:[%s10348_s3 + $0xb0] sm:$0xff] }
 0x202   : > { %v2477_v24 = vrot.slane %v9071_v19, 3  ;;  %v265_v19 = vld [vmem:[%s10348_s3 + $0xc8] sm:$0xff]  ;;  %v2497_v30 = vrot.slane %v9140_v31, 3 }
 0x203   : > { %3233 = vperm.xlu0 %8809, %v252_v2   ;;  %v2455_v22 = vsel %vm2448_vm5, %v2451_v23, %v2454_v38  ;;  %v2466_v61 = vor.u32 %v2465_v52, %v2464_v45  ;;  %v2476_v2 = vrot.slane %v9086_v36, 2  ;;  %v263_v23 = vld [vmem:[%s10348_s3 + $0xb8] sm:$0xff]  ;;  %v266_v36 = vld [vmem:[%s10348_s3 + $0xd0] sm:$0xff] }
 0x204   : > { %3238 = vperm.xlu1 %8810, %v253_v26  }
 0x205   : > { %v2467_v5 = vsel %vm2448_vm5, %v2462_v58, %v2466_v61  ;;  %v2471_v53 = vsel %vm2448_vm5, %v2466_v61, %v2470_v14  ;;  %v2478_v38 = vor.u32 %v2477_v24, %v2476_v2  ;;  %v10399_v24 = vshll.u32 %v9330_v62, 16 }
 0x206   : > { %7774 = vmatmul.mubr.msk.bf16.gmra.mrb[28].mxu0 %vm465_vm1, %v1917_v0  ;;  %v254_v0 = vld [vmem:[%s10348_s3 + $0x70] sm:$0xff] }
 0x207   : > { %7777 = vmatprep.mubr.msk.bf16.mxu0 %vm465_vm1, %v2209_v50  ;;  %3243 = vperm.xlu0 %8809, %v254_v0   ;;  %v8828_v50 = vld [vmem:[%s10346_s1 + $0x88] sm:$0xff]   ;;  %v2480_v0 = vrot.slane %v9092_v39, 2  ;;  %v268_v39 = vld [vmem:[%s10348_s3 + $0xe0] sm:$0xff] }
 0x208   : > { %3248 = vperm.xlu1 %8810, %v255_v7  }
 0x20b   : > { %3253 = vperm.xlu0 %8809, %v256_v40   ;;  %v2488_v40 = vrot.slane %v9122_v3, 2  ;;  %v272_v3 = vld [vmem:[%s10348_s3 + $0x100] sm:$0xff] }
 0x20c   : > { %3258 = vperm.xlu1 %8810, %v257_v41   ;;  %v2492_v41 = vrot.slane %v9144_v34, 2  ;;  %v274_v34 = vld [vmem:[%s10348_s3 + $0x110] sm:$0xff] }
 0x20d   : > { %v2490_v55 = vor.u32 %v2489_v33, %v2488_v40  ;;  %v10401_v40 = vld [vmem:[#allocation5_spill] sm:$0xff] }
 0x20e   : > { %7778 = vmatmul.mubr.msk.bf16.gmra.mrb[32].mxu0 %vm465_vm1, %v2211_v13  ;;  %v2481_v13 = vrot.slane %v9089_v37, 3  ;;  %v2828_v33 = vrot.slane %v10401_v40, 3 }
 0x20f   : > { %7785 = vmatprep.mubr.msk.bf16.mxu0 %vm465_vm1, %v2455_v22  ;;  %3263 = vperm.xlu0 %8809, %v258_v57   ;;  %v2485_v22 = vrot.slane %v9095_v42, 3  ;;  %v269_v42 = vld [vmem:[%s10348_s3 + $0xe8] sm:$0xff]  ;;  %v2493_v57 = vrot.slane %v9125_v4, 3 }
 0x210   : > { %3268 = vperm.xlu1 %8810, %v259_v60   ;;  %v2482_v37 = vor.u32 %v2481_v13, %v2480_v0  ;;  %v273_v4 = vld [vmem:[%s10348_s3 + $0x108] sm:$0xff]  ;;  %v2501_v60 = vrot.slane %v9153_v48, 3 }
 0x211   : > { %v2486_v44 = vor.u32 %v2485_v22, %v2484_v32  ;;  %v2494_v45 = vor.u32 %v2493_v57, %v2492_v41  ;;  %v2819_v22 = vrot.slane %v8954_v11, 3  ;;  %v10400_v11 = vld [vmem:[#allocation4_spill] sm:$0xff]  ;;  %v10403_v57 = vld [vmem:[#allocation7_spill] sm:$0xff] }
 0x212   : > { %v2483_v7 = vsel %vm2448_vm5, %v2478_v38, %v2482_v37 }
 0x213   : > { %3273 = vperm.xlu0 %8809, %v260_v54   ;;  %v2487_v58 = vsel %vm2448_vm5, %v2482_v37, %v2486_v44  ;;  %v2491_v52 = vsel %vm2448_vm5, %v2486_v44, %v2490_v55  ;;  %v2495_v10 = vsel %vm2448_vm5, %v2490_v55, %v2494_v45  ;;  %v275_v54 = vld [vmem:[%s10348_s3 + $0x118] sm:$0xff]  ;;  %v2822_v44 = vrot.slane %v8977_v27, 3  ;;  %v10402_v27 = vld [vmem:[#allocation6_spill] sm:$0xff] }
 0x214   : > { %3278 = vperm.xlu1 %8810, %v261_v9   ;;  %v2508_v9 = vrot.slane %v9196_v59, 2  ;;  %v2513_v59 = vrot.slane %v10399_v24, 3 }
 0x216   : > { %7786 = vmatmul.mubr.msk.bf16.vlgmr.msra.gmra.mrb[0].mxu0 %vm465_vm1, %v2459_v25  ;;  %v271_v25 = vld [vmem:[%s10348_s3 + $0xf8] sm:$0xff] }
 0x217   : > { %7822 = vmatpush3.bf16.msra.mxu0 %v9508_v1  ;;  %7789 = vmatprep.mubr.msk.bf16.mxu0 %vm465_vm1, %v2463_v35  ;;  %v2473_v1 = vrot.slane %v9057_v8, 3  ;;  %v2496_v35 = vrot.slane %v9150_v47, 2 }
 0x218   : > { %7823 = vmatprep.subr.bf16.mxu0 %v8828_v50  ;;  %3283 = vperm.xlu0 %8809, %v262_v51   ;;  %v2509_v51 = vrot.slane %v9179_v20, 3 }
 0x219   : > { %v2474_v8 = vor.u32 %v2473_v1, %v2472_v28  ;;  %3288 = vperm.xlu1 %8810, %v263_v23   ;;  %v2498_v61 = vor.u32 %v2497_v30, %v2496_v35  ;;  %v2517_v1 = vshrl.u32 %v9544_v21, 16 }
 0x21a   : > { %v2510_v28 = vor.u32 %v2509_v51, %v2508_v9  ;;  %v2846_v51 = vrot.slane %v9159_v56, 3  ;;  %v2854_v56 = vrot.slane %v9563_v15, 3 }
 0x21b   : > { %7824 = vmatpush3.bf16.msra.mxu0 %v8828_v50  ;;  %v2475_v26 = vsel %vm2448_vm5, %v2470_v14, %v2474_v8  ;;  %v2479_v43 = vsel %vm2448_vm5, %v2474_v8, %v2478_v38  ;;  %v2500_v50 = vrot.slane %v9172_v12, 2  ;;  %v2499_v31 = vsel %vm2448_vm5, %v2494_v45, %v2498_v61  ;;  %v10404_v45 = vld [vmem:[#allocation8_spill] sm:$0xff] }
 0x21c   : > { %3293 = vperm.xlu0 %8809, %v264_v18   ;;  %v2504_v14 = vrot.slane %v9176_v16, 2  ;;  %v2505_v12 = vrot.slane %v9168_v6, 3  ;;  %v10398_v6 = vshrl.u32 %v9330_v62, 16  ;;  %v2519_v23 = vrot.slane %v2517_v1, 2 }
 0x21d   : > { %3298 = vperm.xlu1 %8810, %v265_v19   ;;  %v2502_v47 = vor.u32 %v2501_v60, %v2500_v50  ;;  %v2526_v38 = vshrl.u32 %v9563_v15, 16  ;;  %v2529_v19 = vshll.u32 %v9563_v15, 16  ;;  %v10407_v60 = vld [vmem:[#allocation11_spill] sm:$0xff] }
 0x21e   : > { %7790 = vmatmul.mubr.msk.bf16.gmra.mrb[4].mxu0 %vm465_vm1, %v2467_v5  ;;  %v2506_v5 = vor.u32 %v2505_v12, %v2504_v14  ;;  %v2512_v2 = vrot.slane %v10398_v6, 2  ;;  %v2844_v12 = vrot.slane %v9137_v29, 3  ;;  %v2850_v29 = vrot.slane %v9330_v62, 3  ;;  %v8829_v62 = vld [vmem:[%s10347_s2 + $0x10] sm:$0xff]  }
 0x21f   : > { %7793 = vmatprep.mubr.msk.bf16.mxu0 %vm465_vm1, %v2471_v53  ;;  %v2503_v48 = vsel %vm2448_vm5, %v2498_v61, %v2502_v47  ;;  %v2520_v53 = vshll.u32 %v9544_v21, 16  ;;  %v2528_v0 = vrot.slane %v2526_v38, 2  ;;  %v2531_v13 = vrot.slane %v2529_v19, 3  ;;  %7861 = vmatprep.subr.bf16.mxu1 %v8829_v62 }
 0x220   : > { %3303 = vperm.xlu0 %8809, %v266_v36   ;;  %v2507_v16 = vsel %vm2448_vm5, %v2502_v47, %v2506_v5  ;;  %v2511_v20 = vsel %vm2448_vm5, %v2506_v5, %v2510_v28  ;;  %v2514_v8 = vor.u32 %v2513_v59, %v2512_v2  ;;  %v10409_v5 = vld [vmem:[#allocation13_spill] sm:$0xff]  ;;  %v2847_v1 = vsel %vm2818_vm6, %v2844_v12, %v2846_v51 }
 0x221   : > { %3308 = vperm.xlu1 %8810, %v267_v49   ;;  %v2522_v18 = vrot.slane %v2520_v53, 3  ;;  %v2532_v32 = vor.u32 %v2531_v13, %v2528_v0  ;;  %v2820_v49 = vrot.slane %v8961_v17, 3  ;;  %v2826_v17 = vrot.slane %v10400_v11, 3  ;;  %7862 = vmatpush3.bf16.msra.mxu1 %v8829_v62 }
 0x222   : > { %v8893_v59 = vmov 0.0  }
 0x223   : > { %v2523_v36 = vor.u32 %v2522_v18, %v2519_v23  ;;  %v2821_v37 = vsel %vm2818_vm6, %v2819_v22, %v2820_v49  ;;  %v2829_v41 = vsel %vm2818_vm6, %v2826_v17, %v2828_v33  ;;  %3391 = vst.msk [vmem:[#allocation2 + $0x20] sm:$0xff] %vm465_vm1, %v8893_v59  ;;  %3392 = vst.msk [vmem:[#allocation2 + $0x28] sm:$0xff] %vm465_vm1, %v8893_v59  ;;  %v9870_v18 = vld [vmem:[%s10347_s2] sm:$0xff]  }
 0x224   : > { %3313 = vperm.xlu0 %8809, %v268_v39   ;;  %3387 = vst.msk [vmem:[#allocation2] sm:$0xff] %vm465_vm1, %v8893_v59  ;;  %3388 = vst.msk [vmem:[#allocation2 + $0x8] sm:$0xff] %vm465_vm1, %v8893_v59 }
 0x225   : > { %3318 = vperm.xlu1 %8810, %v269_v42   ;;  %v2533_v39 = vsel %vm2448_vm5, %v2523_v36, %v2532_v32  ;;  %v2824_v42 = vrot.slane %v10388_v46, 3  ;;  %v2830_v46 = vrot.slane %v10402_v27, 3  ;;  %3389 = vst.msk [vmem:[#allocation2 + $0x10] sm:$0xff] %vm465_vm1, %v8893_v59  ;;  %3390 = vst.msk [vmem:[#allocation2 + $0x18] sm:$0xff] %vm465_vm1, %v8893_v59 }
 0x226   : > { %7794 = vmatmul.mubr.msk.bf16.gmra.mrb[8].mxu0 %vm465_vm1, %v2475_v26  ;;  %v2515_v26 = vsel %vm2448_vm5, %v2510_v28, %v2514_v8  ;;  %v2848_v28 = vrot.slane %v10409_v5, 3  ;;  %3393 = vst.msk [vmem:[#allocation2 + $0x30] sm:$0xff] %vm465_vm1, %v8893_v59  ;;  %3394 = vst.msk [vmem:[#allocation2 + $0x38] sm:$0xff] %vm465_vm1, %v8893_v59 }
 0x227   : > { %7797 = vmatprep.mubr.msk.bf16.mxu0 %vm465_vm1, %v2479_v43  ;;  %v2524_v43 = vsel %vm2448_vm5, %v2514_v8, %v2523_v36  ;;  %3395 = vst.msk [vmem:[#allocation2 + $0x40] sm:$0xff] %vm465_vm1, %v8893_v59  ;;  %3396 = vst.msk [vmem:[#allocation2 + $0x48] sm:$0xff] %vm465_vm1, %v8893_v59 }
 0x228   : > { %3323 = vperm.xlu0 %8809, %v270_v63   ;;  %v2823_v63 = vsel %vm2818_vm6, %v2820_v49, %v2822_v44  ;;  %v2849_v53 = vsel %vm2818_vm6, %v2846_v51, %v2848_v28  ;;  %v2851_v6 = vsel %vm2818_vm6, %v2848_v28, %v2850_v29  ;;  %3397 = vst.msk [vmem:[#allocation2 + $0x50] sm:$0xff] %vm465_vm1, %v8893_v59  ;;  %3398 = vst.msk [vmem:[#allocation2 + $0x58] sm:$0xff] %vm465_vm1, %v8893_v59 }
 0x229   : > { %3328 = vperm.xlu1 %8810, %v271_v25   ;;  %v2832_v25 = vrot.slane %v10403_v57, 3  ;;  %3399 = vst.msk [vmem:[#allocation2 + $0x60] sm:$0xff] %vm465_vm1, %v8893_v59  ;;  %3400 = vst.msk [vmem:[#allocation2 + $0x68] sm:$0xff] %vm465_vm1, %v8893_v59 }
 0x22a   : > { %3401 = vst.msk [vmem:[#allocation2 + $0x70] sm:$0xff] %vm465_vm1, %v8893_v59  ;;  %3402 = vst.msk [vmem:[#allocation2 + $0x78] sm:$0xff] %vm465_vm1, %v8893_v59 }
 0x22b   : > { %v2833_v55 = vsel %vm2818_vm6, %v2830_v46, %v2832_v25  ;;  %3403 = vst.msk [vmem:[#allocation2 + $0x80] sm:$0xff] %vm465_vm1, %v8893_v59  ;;  %3404 = vst.msk [vmem:[#allocation2 + $0x88] sm:$0xff] %vm465_vm1, %v8893_v59  ;;  %v3523_v15 = vld [vmem:[#allocation2 + $0x1] sm:$0xff] }
 0x22c   : > { %3333 = vperm.xlu0 %8809, %v272_v3   ;;  %v2831_v3 = vsel %vm2818_vm6, %v2828_v33, %v2830_v46  ;;  %3405 = vst.msk [vmem:[#allocation2 + $0x90] sm:$0xff] %vm465_vm1, %v8893_v59  ;;  %3406 = vst.msk [vmem:[#allocation2 + $0x98] sm:$0xff] %vm465_vm1, %v8893_v59 }
 0x22d   : > { %3338 = vperm.xlu1 %8810, %v273_v4   ;;  %v2834_v4 = vrot.slane %v10404_v45, 3  ;;  %3407 = vst.msk [vmem:[#allocation2 + $0xa0] sm:$0xff] %vm465_vm1, %v8893_v59  ;;  %3408 = vst.msk [vmem:[#allocation2 + $0xa8] sm:$0xff] %vm465_vm1, %v8893_v59 }
 0x22e   : > { %7798 = vmatmul.mubr.msk.bf16.gmra.mrb[12].mxu0 %vm465_vm1, %v2483_v7  ;;  %v2825_v7 = vsel %vm2818_vm6, %v2822_v44, %v2824_v42  ;;  %3409 = vst.msk [vmem:[#allocation2 + $0xb0] sm:$0xff] %vm465_vm1, %v8893_v59  ;;  %3410 = vst.msk [vmem:[#allocation2 + $0xb8] sm:$0xff] %vm465_vm1, %v8893_v59 }
 0x22f   : > { %7801 = vmatprep.mubr.msk.bf16.mxu0 %vm465_vm1, %v2487_v58  ;;  %v2827_v58 = vsel %vm2818_vm6, %v2824_v42, %v2826_v17  ;;  %v2835_v35 = vsel %vm2818_vm6, %v2832_v25, %v2834_v4  ;;  %3411 = vst.msk [vmem:[#allocation2 + $0xc0] sm:$0xff] %vm465_vm1, %v8893_v59  ;;  %3412 = vst.msk [vmem:[#allocation2 + $0xc8] sm:$0xff] %vm465_vm1, %v8893_v59 }
 0x230   : > { %3343 = vperm.xlu0 %8809, %v274_v34   ;;  %v10405_v34 = vld [vmem:[#allocation9_spill] sm:$0xff]  ;;  %3413 = vst.msk [vmem:[#allocation2 + $0xd0] sm:$0xff] %vm465_vm1, %v8893_v59  ;;  %3414 = vst.msk [vmem:[#allocation2 + $0xd8] sm:$0xff] %vm465_vm1, %v8893_v59 }
 0x231   : > { %3348 = vperm.xlu1 %8810, %v275_v54   ;;  %v2840_v54 = vrot.slane %v10407_v60, 3  ;;  %3415 = vst.msk [vmem:[#allocation2 + $0xe0] sm:$0xff] %vm465_vm1, %v8893_v59  ;;  %3416 = vst.msk [vmem:[#allocation2 + $0xe8] sm:$0xff] %vm465_vm1, %v8893_v59 }
 0x232   : > { %3417 = vst.msk [vmem:[#allocation2 + $0xf0] sm:$0xff] %vm465_vm1, %v8893_v59  ;;  %3418 = vst.msk [vmem:[#allocation2 + $0xf8] sm:$0xff] %vm465_vm1, %v8893_v59 }
 0x233   : > { %3419 = vst.msk [vmem:[#allocation2 + $0x100] sm:$0xff] %vm465_vm1, %v8893_v59  ;;  %3420 = vst.msk [vmem:[#allocation2 + $0x108] sm:$0xff] %vm465_vm1, %v8893_v59 }
 0x234   : > { %3421 = vst.msk [vmem:[#allocation2 + $0x110] sm:$0xff] %vm465_vm1, %v8893_v59  ;;  %3422 = vst.msk [vmem:[#allocation2 + $0x118] sm:$0xff] %vm465_vm1, %v8893_v59 }
 0x235   : > { %3423 = vst.msk [vmem:[#allocation2 + $0x120] sm:$0xff] %vm465_vm1, %v8893_v59  ;;  %3424 = vst.msk [vmem:[#allocation2 + $0x128] sm:$0xff] %vm465_vm1, %v8893_v59 }
 0x236   : > { %7802 = vmatmul.mubr.msk.bf16.gmra.mrb[16].mxu0 %vm465_vm1, %v2491_v52  ;;  %v2836_v52 = vrot.slane %v10405_v34, 3  ;;  %3425 = vst.msk [vmem:[#allocation2 + $0x130] sm:$0xff] %vm465_vm1, %v8893_v59  ;;  %3426 = vst.msk [vmem:[#allocation2 + $0x138] sm:$0xff] %vm465_vm1, %v8893_v59 }
 0x237   : > { %7805 = vmatprep.mubr.msk.bf16.mxu0 %vm465_vm1, %v2495_v10  ;;  %v10406_v10 = vld [vmem:[#allocation10_spill] sm:$0xff]  ;;  %3428 = vst.msk [vmem:[#allocation2 + $0x140] sm:$0x3f] %vm3427_vm7, %v8893_v59 }
 0x238   : > { %v2837_v30 = vsel %vm2818_vm6, %v2834_v4, %v2836_v52  ;;  %v2838_v50 = vrot.slane %v10406_v10, 3 }
 0x23a   : > { %v2839_v61 = vsel %vm2818_vm6, %v2836_v52, %v2838_v50  ;;  %v2841_v47 = vsel %vm2818_vm6, %v2838_v50, %v2840_v54 }
 0x23e   : > { %7806 = vmatmul.mubr.msk.bf16.gmra.mrb[20].mxu0 %vm465_vm1, %v2499_v31  ;;  %v10408_v31 = vld [vmem:[#allocation12_spill] sm:$0xff] }
 0x23f   : > { %7809 = vmatprep.mubr.msk.bf16.mxu0 %vm465_vm1, %v2503_v48  ;;  %v2842_v14 = vrot.slane %v10408_v31, 3 }
 0x241   : > { %v2843_v48 = vsel %vm2818_vm6, %v2840_v54, %v2842_v14  ;;  %v2845_v9 = vsel %vm2818_vm6, %v2842_v14, %v2844_v12 }
 0x246   : > { %7810 = vmatmul.mubr.msk.bf16.gmra.mrb[24].mxu0 %vm465_vm1, %v2507_v16  ;;  %v2852_v16 = vrot.slane %v9544_v21, 3  ;;  %v8830_v21 = vld [vmem:[%s10347_s2 + $0x18] sm:$0xff]  }
 0x247   : > { %7813 = vmatprep.mubr.msk.bf16.mxu0 %vm465_vm1, %v2511_v20  ;;  %7863 = vmatprep.subr.bf16.mxu1 %v8830_v21  ;;  %v3524_v20 = vld [vmem:[#allocation2 + $0x9] sm:$0xff] }
 0x248   : > { %v2853_v2 = vsel %vm2818_vm6, %v2850_v29, %v2852_v16  ;;  %v2855_v24 = vsel %vm2818_vm6, %v2852_v16, %v2854_v56  ;;  %7864 = vmatpush3.bf16.msra.mxu1 %v8830_v21  ;;  %v3559_v23 = vpack.c.bf16 %v3524_v20, %v3523_v15 }
 0x249   : > { %7901 = vmatprep.subr.bf16.mxu1 %v9870_v18 }
 0x24a   : > { %7865 = vmatprep.mubr.msk.bf16.mxu1 %vm465_vm1, %v3559_v23  ;;  %v9906_v23 = vld [vmem:[%s10347_s2 + $0x20] sm:$0xff]  }
 0x24e   : > { %7814 = vmatmul.mubr.msk.bf16.gmra.mrb[28].mxu0 %vm465_vm1, %v2515_v26 }
 0x24f   : > { %7817 = vmatprep.mubr.msk.bf16.mxu0 %vm465_vm1, %v2524_v43  ;;  %v3184_v38 = vpop.permute.xlu1 %3183 }
 0x253   : > { %v3174_v8 = vpop.permute.xlu0 %3173 }
 0x254   : > { %v3189_v36 = vpop.permute.xlu1 %3188 }
 0x256   : > { %7818 = vmatmul.mubr.msk.bf16.gmra.mrb[32].mxu0 %vm465_vm1, %v2533_v39 }
 0x257   : > { %7825 = vmatprep.mubr.msk.bf16.mxu0 %vm465_vm1, %v2821_v37 }
 0x25e   : > { %7826 = vmatmul.mubr.msk.bf16.vlgmr.msra.gmra.mrb[0].mxu0 %vm465_vm1, %v2823_v63 }
 0x25f   : > { %7829 = vmatprep.mubr.msk.bf16.mxu0 %vm465_vm1, %v2825_v7 }
 0x266   : > { %7830 = vmatmul.mubr.msk.bf16.gmra.mrb[4].mxu0 %vm465_vm1, %v2827_v58 }
 0x267   : > { %7833 = vmatprep.mubr.msk.bf16.mxu0 %vm465_vm1, %v2829_v41  ;;  %v3179_v19 = vpop.permute.xlu0 %3178 }
 0x26b   : > { %v3194_v26 = vpop.permute.xlu0 %3193 }
 0x26e   : > { %7834 = vmatmul.mubr.msk.bf16.gmra.mrb[8].mxu0 %vm465_vm1, %v2831_v3  ;;  %v3199_v0 = vpop.permute.xlu1 %3198 }
 0x26f   : > { %7837 = vmatprep.mubr.msk.bf16.mxu0 %vm465_vm1, %v2833_v55 }
 0x276   : > { %7838 = vmatmul.mubr.msk.bf16.gmra.mrb[12].mxu0 %vm465_vm1, %v2835_v35  ;;  %v3204_v13 = vpop.permute.xlu0 %3203 }
 0x277   : > { %7841 = vmatprep.mubr.msk.bf16.mxu0 %vm465_vm1, %v2837_v30  ;;  %v3209_v43 = vpop.permute.xlu1 %3208 }
 0x27a   : > { %v3214_v32 = vpop.permute.xlu0 %3213 }
 0x27b   : > { %v9873_v22 = vpop.permute.xlu1 %3218 }
 0x27e   : > { %7842 = vmatmul.mubr.msk.bf16.gmra.mrb[16].mxu0 %vm465_vm1, %v2839_v61  ;;  %v3224_v49 = vpop.permute.xlu0 %3223 }
 0x27f   : > { %7845 = vmatprep.mubr.msk.bf16.mxu0 %vm465_vm1, %v2841_v47  ;;  %v9875_v39 = vpop.permute.xlu1 %3228 }
 0x282   : > { %v9877_v37 = vpop.permute.xlu0 %3233 }
 0x283   : > { %v9879_v7 = vpop.permute.xlu1 %3238 }
 0x286   : > { %7846 = vmatmul.mubr.msk.bf16.gmra.mrb[20].mxu0 %vm465_vm1, %v2843_v48  ;;  %v9882_v57 = vpop.permute.xlu0 %3243 }
 0x287   : > { %7849 = vmatprep.mubr.msk.bf16.mxu0 %vm465_vm1, %v2845_v9  ;;  %v9886_v3 = vpop.permute.xlu1 %3248 }
 0x28a   : > { %v9889_v50 = vpop.permute.xlu0 %3253 }
 0x28b   : > { %v9892_v47 = vpop.permute.xlu1 %3258 }
 0x28e   : > { %7850 = vmatmul.mubr.msk.bf16.gmra.mrb[24].mxu0 %vm465_vm1, %v2847_v1  ;;  %v8832_v1 = vld [vmem:[%s10347_s2 + $0x8] sm:$0xff]   ;;  %v3264_v16 = vpop.permute.xlu0 %3263 }
 0x28f   : > { %7853 = vmatprep.mubr.msk.bf16.mxu0 %vm465_vm1, %v2849_v53  ;;  %v3269_v21 = vpop.permute.xlu1 %3268 }
 0x296   : > { %7854 = vmatmul.mubr.msk.bf16.gmra.mrb[28].mxu0 %vm465_vm1, %v2851_v6 }
 0x297   : > { %7857 = vmatprep.mubr.msk.bf16.mxu0 %vm465_vm1, %v2853_v2 }
 0x29e   : > { %7858 = vmatmul.mubr.msk.bf16.gmra.mrb[32].mxu0 %vm465_vm1, %v2855_v24 }
 0x331   : > { %v7827_v44 = vpop.f32.mrb[0].mxu0 }
 0x332   : > { %v3137_v42 = vmax.f32 %v7827_v44, 0.0  ;;  %v2956_v63 = vpop.f32.mrb[1].mxu0  ;;  %v9917_v44 = vpop.permute.xlu1 %3278 }
 0x333   : > { %v3135_v11 = vmax.f32 %v2956_v63, 0.0  ;;  %v7828_v17 = vpop.f32.mrb[2].mxu0 }
 0x334   : > { %v3353_v40 = vmul.f32 %v3184_v38, %v3137_v42  ;;  %v3138_v33 = vmax.f32 %v7828_v17, 0.0  ;;  %v2959_v58 = vpop.f32.mrb[3].mxu0 }
 0x335   : > { %v3351_v41 = vmul.f32 %v3174_v8, %v3135_v11  ;;  %v3136_v27 = vmax.f32 %v2959_v58, 0.0 }
 0x336   : > { %3431 = vst.msk [vmem:[#allocation2 + $0x23] sm:$0xff] %vm465_vm1, %v3353_v40  ;;  %v3354_v46 = vmul.f32 %v3189_v36, %v3138_v33 }
 0x337   : > { %3429 = vst.msk [vmem:[#allocation2 + $0x13] sm:$0xff] %vm465_vm1, %v3351_v41  ;;  %v3352_v25 = vmul.f32 %v3179_v19, %v3136_v27 }
 0x338   : > { %3432 = vst.msk [vmem:[#allocation2 + $0x2b] sm:$0xff] %vm465_vm1, %v3354_v46 }
 0x339   : > { %3430 = vst.msk [vmem:[#allocation2 + $0x1b] sm:$0xff] %vm465_vm1, %v3352_v25  ;;  %v7831_v55 = vpop.f32.mrb[4].mxu0 }
 0x33a   : > { %v3141_v45 = vmax.f32 %v7831_v55, 0.0  ;;  %v2972_v4 = vpop.f32.mrb[5].mxu0 }
 0x33b   : > { %v3139_v34 = vmax.f32 %v2972_v4, 0.0  ;;  %v7832_v52 = vpop.f32.mrb[6].mxu0 }
 0x33c   : > { %v3357_v35 = vmul.f32 %v3204_v13, %v3141_v45  ;;  %v3142_v30 = vmax.f32 %v7832_v52, 0.0  ;;  %v2975_v10 = vpop.f32.mrb[7].mxu0  ;;  %v3289_v45 = vpop.permute.xlu1 %3288 }
 0x33d   : > { %v3355_v60 = vmul.f32 %v3194_v26, %v3139_v34  ;;  %v3140_v54 = vmax.f32 %v2975_v10, 0.0 }
 0x33e   : > { %3435 = vst.msk [vmem:[#allocation2 + $0x43] sm:$0xff] %vm465_vm1, %v3357_v35  ;;  %v3358_v61 = vmul.f32 %v3209_v43, %v3142_v30  ;;  %v3525_v12 = vld [vmem:[#allocation2 + $0x11] sm:$0xff] }
 0x33f   : > { %3433 = vst.msk [vmem:[#allocation2 + $0x33] sm:$0xff] %vm465_vm1, %v3355_v60  ;;  %v3356_v31 = vmul.f32 %v3199_v0, %v3140_v54  ;;  %v3528_v14 = vld [vmem:[#allocation2 + $0x29] sm:$0xff]  ;;  %v9913_v0 = vpop.permute.xlu0 %3273 }
 0x340   : > { %3436 = vst.msk [vmem:[#allocation2 + $0x4b] sm:$0xff] %vm465_vm1, %v3358_v61  ;;  %v3526_v48 = vld [vmem:[#allocation2 + $0x19] sm:$0xff]  ;;  %v3527_v9 = vld [vmem:[#allocation2 + $0x21] sm:$0xff] }
 0x341   : > { %3434 = vst.msk [vmem:[#allocation2 + $0x3b] sm:$0xff] %vm465_vm1, %v3356_v31  ;;  %v7835_v51 = vpop.f32.mrb[8].mxu0  ;;  %v3560_v5 = vpack.c.bf16 %v3526_v48, %v3525_v12  ;;  %v3561_v28 = vpack.c.bf16 %v3528_v14, %v3527_v9  ;;  %v3299_v12 = vpop.permute.xlu1 %3298 }
 0x342   : > { %v3145_v53 = vmax.f32 %v7835_v51, 0.0  ;;  %v2988_v29 = vpop.f32.mrb[9].mxu0 }
 0x343   : > { %v3143_v6 = vmax.f32 %v2988_v29, 0.0  ;;  %v7836_v2 = vpop.f32.mrb[10].mxu0  ;;  %7866 = vmatmul.mubr.msk.bf16.vlgmr.msra.gmra.mrb[0].mxu1 %vm465_vm1, %v3560_v5  ;;  %v3284_v41 = vpop.permute.xlu0 %3283 }
 0x344   : > { %v3361_v56 = vmul.f32 %v3224_v49, %v3145_v53  ;;  %v3146_v24 = vmax.f32 %v7836_v2, 0.0  ;;  %7902 = vmatpush3.bf16.msra.mxu1 %v9870_v18  ;;  %v2991_v62 = vpop.f32.mrb[11].mxu0  ;;  %7869 = vmatprep.mubr.msk.bf16.mxu1 %vm465_vm1, %v3561_v28 }
 0x345   : > { %v3359_v15 = vmul.f32 %v3214_v32, %v3143_v6  ;;  %v3144_v20 = vmax.f32 %v2991_v62, 0.0  ;;  %7903 = vmatprep.subr.bf16.mxu1 %v8832_v1 }
 0x346   : > { %3439 = vst.msk [vmem:[#allocation2 + $0x63] sm:$0xff] %vm465_vm1, %v3361_v56  ;;  %v3362_v8 = vmul.f32 %v9875_v39, %v3146_v24  ;;  %v3529_v19 = vld [vmem:[#allocation2 + $0x31] sm:$0xff] }
 0x347   : > { %3437 = vst.msk [vmem:[#allocation2 + $0x53] sm:$0xff] %vm465_vm1, %v3359_v15  ;;  %v3360_v18 = vmul.f32 %v9873_v22, %v3144_v20  ;;  %v3532_v38 = vld [vmem:[#allocation2 + $0x49] sm:$0xff]  ;;  %v3294_v54 = vpop.permute.xlu0 %3293 }
 0x348   : > { %3440 = vst.msk [vmem:[#allocation2 + $0x6b] sm:$0xff] %vm465_vm1, %v3362_v8  ;;  %v3530_v36 = vld [vmem:[#allocation2 + $0x39] sm:$0xff]  ;;  %v3531_v26 = vld [vmem:[#allocation2 + $0x41] sm:$0xff]  ;;  %7904 = vmatpush3.bf16.msra.mxu1 %v8832_v1 }
 0x349   : > { %3438 = vst.msk [vmem:[#allocation2 + $0x5b] sm:$0xff] %vm465_vm1, %v3360_v18  ;;  %v7839_v13 = vpop.f32.mrb[12].mxu0  ;;  %v3562_v43 = vpack.c.bf16 %v3530_v36, %v3529_v19  ;;  %v3563_v32 = vpack.c.bf16 %v3532_v38, %v3531_v26  ;;  %7941 = vmatprep.subr.bf16.mxu1 %v9906_v23 }
 0x34a   : > { %v3149_v49 = vmax.f32 %v7839_v13, 0.0  ;;  %v3004_v39 = vpop.f32.mrb[13].mxu0 }
 0x34b   : > { %v3147_v22 = vmax.f32 %v3004_v39, 0.0  ;;  %v7840_v42 = vpop.f32.mrb[14].mxu0  ;;  %7870 = vmatmul.mubr.msk.bf16.gmra.mrb[4].mxu1 %vm465_vm1, %v3562_v43  ;;  %v3304_v6 = vpop.permute.xlu0 %3303 }
 0x34c   : > { %v3365_v63 = vmul.f32 %v9882_v57, %v3149_v49  ;;  %v3150_v11 = vmax.f32 %v7840_v42, 0.0  ;;  %v3007_v17 = vpop.f32.mrb[15].mxu0  ;;  %7873 = vmatprep.mubr.msk.bf16.mxu1 %vm465_vm1, %v3563_v32 }
 0x34d   : > { %v3363_v40 = vmul.f32 %v9877_v37, %v3147_v22  ;;  %v3148_v33 = vmax.f32 %v3007_v17, 0.0 }
 0x34e   : > { %3443 = vst.msk [vmem:[#allocation2 + $0x83] sm:$0xff] %vm465_vm1, %v3365_v63  ;;  %v3366_v58 = vmul.f32 %v9886_v3, %v3150_v11  ;;  %v3533_v57 = vld [vmem:[#allocation2 + $0x51] sm:$0xff] }
 0x34f   : > { %3441 = vst.msk [vmem:[#allocation2 + $0x73] sm:$0xff] %vm465_vm1, %v3363_v40  ;;  %v3364_v27 = vmul.f32 %v9879_v7, %v3148_v33  ;;  %v3536_v46 = vld [vmem:[#allocation2 + $0x69] sm:$0xff]  ;;  %v3314_v13 = vpop.permute.xlu0 %3313 }
 0x350   : > { %3444 = vst.msk [vmem:[#allocation2 + $0x8b] sm:$0xff] %vm465_vm1, %v3366_v58  ;;  %v3534_v25 = vld [vmem:[#allocation2 + $0x59] sm:$0xff]  ;;  %v3535_v55 = vld [vmem:[#allocation2 + $0x61] sm:$0xff] }
 0x351   : > { %3442 = vst.msk [vmem:[#allocation2 + $0x7b] sm:$0xff] %vm465_vm1, %v3364_v27  ;;  %v7843_v37 = vpop.f32.mrb[16].mxu0  ;;  %v3564_v4 = vpack.c.bf16 %v3534_v25, %v3533_v57  ;;  %v3565_v34 = vpack.c.bf16 %v3536_v46, %v3535_v55 }
 0x352   : > { %v3153_v52 = vmax.f32 %v7843_v37, 0.0  ;;  %v3020_v35 = vpop.f32.mrb[17].mxu0 }
 0x353   : > { %v3151_v3 = vmax.f32 %v3020_v35, 0.0  ;;  %v7844_v30 = vpop.f32.mrb[18].mxu0  ;;  %7874 = vmatmul.mubr.msk.bf16.gmra.mrb[8].mxu1 %vm465_vm1, %v3564_v4 }
 0x354   : > { %v3369_v10 = vmul.f32 %v3264_v16, %v3153_v52  ;;  %v3154_v7 = vmax.f32 %v7844_v30, 0.0  ;;  %v3023_v60 = vpop.f32.mrb[19].mxu0  ;;  %7877 = vmatprep.mubr.msk.bf16.mxu1 %vm465_vm1, %v3565_v34 }
 0x355   : > { %v3367_v61 = vmul.f32 %v9889_v50, %v3151_v3  ;;  %v3152_v31 = vmax.f32 %v3023_v60, 0.0 }
 0x356   : > { %3447 = vst.msk [vmem:[#allocation2 + $0xa3] sm:$0xff] %vm465_vm1, %v3369_v10  ;;  %v3370_v14 = vmul.f32 %v3269_v21, %v3154_v7  ;;  %v3537_v51 = vld [vmem:[#allocation2 + $0x71] sm:$0xff]  ;;  %v3309_v21 = vpop.permute.xlu1 %3308 }
 0x357   : > { %3445 = vst.msk [vmem:[#allocation2 + $0x93] sm:$0xff] %vm465_vm1, %v3367_v61  ;;  %v3368_v48 = vmul.f32 %v9892_v47, %v3152_v31  ;;  %v3540_v9 = vld [vmem:[#allocation2 + $0x89] sm:$0xff] }
 0x358   : > { %3448 = vst.msk [vmem:[#allocation2 + $0xab] sm:$0xff] %vm465_vm1, %v3370_v14  ;;  %v3538_v5 = vld [vmem:[#allocation2 + $0x79] sm:$0xff]  ;;  %v3539_v28 = vld [vmem:[#allocation2 + $0x81] sm:$0xff] }
 0x359   : > { %3446 = vst.msk [vmem:[#allocation2 + $0x9b] sm:$0xff] %vm465_vm1, %v3368_v48  ;;  %v7847_v1 = vpop.f32.mrb[20].mxu0  ;;  %v3566_v53 = vpack.c.bf16 %v3538_v5, %v3537_v51  ;;  %v3567_v50 = vpack.c.bf16 %v3540_v9, %v3539_v28 }
 0x35a   : > { %v3157_v29 = vmax.f32 %v7847_v1, 0.0  ;;  %v3036_v16 = vpop.f32.mrb[21].mxu0  ;;  %v3319_v22 = vpop.permute.xlu1 %3318 }
 0x35b   : > { %v3155_v2 = vmax.f32 %v3036_v16, 0.0  ;;  %v7848_v56 = vpop.f32.mrb[22].mxu0  ;;  %7878 = vmatmul.mubr.msk.bf16.gmra.mrb[12].mxu1 %vm465_vm1, %v3566_v53 }
 0x35c   : > { %v3373_v24 = vmul.f32 %v3284_v41, %v3157_v29  ;;  %v3158_v47 = vmax.f32 %v7848_v56, 0.0  ;;  %v3039_v62 = vpop.f32.mrb[23].mxu0  ;;  %7881 = vmatprep.mubr.msk.bf16.mxu1 %vm465_vm1, %v3567_v50  ;;  %v3324_v41 = vpop.permute.xlu0 %3323 }
 0x35d   : > { %v3371_v15 = vmul.f32 %v9913_v0, %v3155_v2  ;;  %v3156_v20 = vmax.f32 %v3039_v62, 0.0 }
 0x35e   : > { %3451 = vst.msk [vmem:[#allocation2 + $0xc3] sm:$0xff] %vm465_vm1, %v3373_v24  ;;  %v3374_v8 = vmul.f32 %v3289_v45, %v3158_v47  ;;  %v3541_v19 = vld [vmem:[#allocation2 + $0x91] sm:$0xff]  ;;  %v3329_v45 = vpop.permute.xlu1 %3328 }
 0x35f   : > { %3449 = vst.msk [vmem:[#allocation2 + $0xb3] sm:$0xff] %vm465_vm1, %v3371_v15  ;;  %v3372_v18 = vmul.f32 %v9917_v44, %v3156_v20  ;;  %v3544_v38 = vld [vmem:[#allocation2 + $0xa9] sm:$0xff] }
 0x360   : > { %3452 = vst.msk [vmem:[#allocation2 + $0xcb] sm:$0xff] %vm465_vm1, %v3374_v8  ;;  %v3542_v36 = vld [vmem:[#allocation2 + $0x99] sm:$0xff]  ;;  %v3543_v26 = vld [vmem:[#allocation2 + $0xa1] sm:$0xff] }
 0x361   : > { %3450 = vst.msk [vmem:[#allocation2 + $0xbb] sm:$0xff] %vm465_vm1, %v3372_v18  ;;  %v7851_v43 = vpop.f32.mrb[24].mxu0  ;;  %v3568_v32 = vpack.c.bf16 %v3542_v36, %v3541_v19  ;;  %v3569_v0 = vpack.c.bf16 %v3544_v38, %v3543_v26 }
 0x362   : > { %v3161_v49 = vmax.f32 %v7851_v43, 0.0  ;;  %v3052_v39 = vpop.f32.mrb[25].mxu0 }
 0x363   : > { %v3159_v42 = vmax.f32 %v3052_v39, 0.0  ;;  %v7852_v63 = vpop.f32.mrb[26].mxu0  ;;  %7882 = vmatmul.mubr.msk.bf16.gmra.mrb[16].mxu1 %vm465_vm1, %v3568_v32  ;;  %v3465_v32 = vld [vmem:[#allocation2] sm:$0xff] }
 0x364   : > { %v3377_v44 = vmul.f32 %v3304_v6, %v3161_v49  ;;  %v3162_v11 = vmax.f32 %v7852_v63, 0.0  ;;  %v3055_v17 = vpop.f32.mrb[27].mxu0  ;;  %7885 = vmatprep.mubr.msk.bf16.mxu1 %vm465_vm1, %v3569_v0  ;;  %v3466_v0 = vld [vmem:[#allocation2 + $0x8] sm:$0xff]  ;;  %v3468_v63 = vld [vmem:[#allocation2 + $0x18] sm:$0xff] }
 0x365   : > { %v3375_v40 = vmul.f32 %v3294_v54, %v3159_v42  ;;  %v3160_v33 = vmax.f32 %v3055_v17, 0.0  ;;  %v3334_v54 = vpop.permute.xlu0 %3333  ;;  %v3467_v17 = vld [vmem:[#allocation2 + $0x10] sm:$0xff] }
 0x366   : > { %3455 = vst.msk [vmem:[#allocation2 + $0xe3] sm:$0xff] %vm465_vm1, %v3377_v44  ;;  %v3378_v58 = vmul.f32 %v3309_v21, %v3162_v11  ;;  %v3545_v57 = vld [vmem:[#allocation2 + $0xb1] sm:$0xff]  ;;  %v3469_v44 = vld [vmem:[#allocation2 + $0x20] sm:$0xff]  ;;  %v3470_v11 = vld [vmem:[#allocation2 + $0x28] sm:$0xff] }
 0x367   : > { %3453 = vst.msk [vmem:[#allocation2 + $0xd3] sm:$0xff] %vm465_vm1, %v3375_v40  ;;  %v3376_v27 = vmul.f32 %v3299_v12, %v3160_v33  ;;  %v3548_v46 = vld [vmem:[#allocation2 + $0xc9] sm:$0xff]  ;;  %v3339_v12 = vpop.permute.xlu1 %3338  ;;  %v3502_v40 = vpack.c.bf16 %v3468_v63, %v3467_v17  ;;  %v10010_v63 = vld [vmem:[%s10347_s2 + $0x40] sm:$0xff]  }
 0x368   : > { %3456 = vst.msk [vmem:[#allocation2 + $0xeb] sm:$0xff] %vm465_vm1, %v3378_v58  ;;  %v3546_v25 = vld [vmem:[#allocation2 + $0xb9] sm:$0xff]  ;;  %v3547_v55 = vld [vmem:[#allocation2 + $0xc1] sm:$0xff]  ;;  %v3503_v58 = vpack.c.bf16 %v3470_v11, %v3469_v44  ;;  %v4077_v17 = vld [vmem:[#allocation2 + $0x4a] sm:$0xff] }
 0x369   : > { %3454 = vst.msk [vmem:[#allocation2 + $0xdb] sm:$0xff] %vm465_vm1, %v3376_v27  ;;  %v7855_v37 = vpop.f32.mrb[28].mxu0  ;;  %v3570_v4 = vpack.c.bf16 %v3546_v25, %v3545_v57  ;;  %v3571_v34 = vpack.c.bf16 %v3548_v46, %v3547_v55  ;;  %v3344_v6 = vpop.permute.xlu0 %3343  ;;  %v8834_v33 = vld [vmem:[%s10347_s2 + $0x28] sm:$0xff]   ;;  %v3472_v27 = vld [vmem:[#allocation2 + $0x38] sm:$0xff]  ;;  %v3473_v46 = vld [vmem:[#allocation2 + $0x40] sm:$0xff] }
 0x36a   : > { %v3165_v52 = vmax.f32 %v7855_v37, 0.0  ;;  %v3068_v35 = vpop.f32.mrb[29].mxu0  ;;  %v3474_v57 = vld [vmem:[#allocation2 + $0x48] sm:$0xff]  ;;  %v3471_v25 = vld [vmem:[#allocation2 + $0x30] sm:$0xff]  ;;  %v3477_v37 = vld [vmem:[#allocation2 + $0x60] sm:$0xff] }
 0x36b   : > { %v3163_v3 = vmax.f32 %v3068_v35, 0.0  ;;  %v7856_v30 = vpop.f32.mrb[30].mxu0  ;;  %7886 = vmatmul.mubr.msk.bf16.gmra.mrb[20].mxu1 %vm465_vm1, %v3570_v4  ;;  %v3349_v21 = vpop.permute.xlu1 %3348  ;;  %v3504_v55 = vpack.c.bf16 %v3472_v27, %v3471_v25  ;;  %v3478_v4 = vld [vmem:[#allocation2 + $0x68] sm:$0xff]  ;;  %v4075_v44 = vld [vmem:[#allocation2 + $0x3a] sm:$0xff] }
 0x36c   : > { %v3381_v10 = vmul.f32 %v3324_v41, %v3165_v52  ;;  %v3166_v7 = vmax.f32 %v7856_v30, 0.0  ;;  %v3071_v60 = vpop.f32.mrb[31].mxu0  ;;  %7889 = vmatprep.mubr.msk.bf16.mxu1 %vm465_vm1, %v3571_v34  ;;  %v9976_v41 = vld [vmem:[%s10347_s2 + $0x30] sm:$0xff]   ;;  %v3507_v35 = vpack.c.bf16 %v3478_v4, %v3477_v37  ;;  %v3481_v30 = vld [vmem:[#allocation2 + $0x80] sm:$0xff] }
 0x36d   : > { %v3379_v61 = vmul.f32 %v3314_v13, %v3163_v3  ;;  %v3164_v31 = vmax.f32 %v3071_v60, 0.0  ;;  %v3475_v34 = vld [vmem:[#allocation2 + $0x50] sm:$0xff]  ;;  %v3480_v3 = vld [vmem:[#allocation2 + $0x78] sm:$0xff]  ;;  %v4076_v11 = vld [vmem:[#allocation2 + $0x42] sm:$0xff] }
 0x36e   : > { %3459 = vst.msk [vmem:[#allocation2 + $0x103] sm:$0xff] %vm465_vm1, %v3381_v10  ;;  %v3382_v14 = vmul.f32 %v3329_v45, %v3166_v7  ;;  %v3549_v51 = vld [vmem:[#allocation2 + $0xd1] sm:$0xff]  ;;  %v3505_v45 = vpack.c.bf16 %v3474_v57, %v3473_v46  ;;  %v3482_v10 = vld [vmem:[#allocation2 + $0x88] sm:$0xff] }
 0x36f   : > { %3457 = vst.msk [vmem:[#allocation2 + $0xf3] sm:$0xff] %vm465_vm1, %v3379_v61  ;;  %v3380_v48 = vmul.f32 %v3319_v22, %v3164_v31  ;;  %v3552_v9 = vld [vmem:[#allocation2 + $0xe9] sm:$0xff]  ;;  %v3501_v22 = vpack.c.bf16 %v3466_v0, %v3465_v32  ;;  %v3484_v61 = vld [vmem:[#allocation2 + $0x98] sm:$0xff]  ;;  %v3485_v31 = vld [vmem:[#allocation2 + $0xa0] sm:$0xff] }
 0x370   : > { %3460 = vst.msk [vmem:[#allocation2 + $0x10b] sm:$0xff] %vm465_vm1, %v3382_v14  ;;  %v3550_v5 = vld [vmem:[#allocation2 + $0xd9] sm:$0xff]  ;;  %v3551_v28 = vld [vmem:[#allocation2 + $0xe1] sm:$0xff]  ;;  %v3479_v7 = vld [vmem:[#allocation2 + $0x70] sm:$0xff] }
 0x371   : > { %3458 = vst.msk [vmem:[#allocation2 + $0xfb] sm:$0xff] %vm465_vm1, %v3380_v48  ;;  %v7859_v1 = vpop.f32.mrb[32].mxu0  ;;  %v3572_v53 = vpack.c.bf16 %v3550_v5, %v3549_v51  ;;  %v3573_v50 = vpack.c.bf16 %v3552_v9, %v3551_v28  ;;  %v3508_v60 = vpack.c.bf16 %v3480_v3, %v3479_v7  ;;  %v3486_v14 = vld [vmem:[#allocation2 + $0xa8] sm:$0xff]  ;;  %v3488_v51 = vld [vmem:[#allocation2 + $0xb8] sm:$0xff]  ;;  %v3489_v5 = vld [vmem:[#allocation2 + $0xc0] sm:$0xff] }
 0x372   : > { %v3169_v29 = vmax.f32 %v7859_v1, 0.0  ;;  %v3084_v16 = vpop.f32.mrb[33].mxu0  ;;  %v3511_v9 = vpack.c.bf16 %v3486_v14, %v3485_v31  ;;  %v3490_v28 = vld [vmem:[#allocation2 + $0xc8] sm:$0xff]  ;;  %v3487_v1 = vld [vmem:[#allocation2 + $0xb0] sm:$0xff] }
 0x373   : > { %v3167_v2 = vmax.f32 %v3084_v16, 0.0  ;;  %v7860_v56 = vpop.f32.mrb[34].mxu0  ;;  %7890 = vmatmul.mubr.msk.bf16.gmra.mrb[24].mxu1 %vm465_vm1, %v3572_v53  ;;  %v3512_v53 = vpack.c.bf16 %v3488_v51, %v3487_v1  ;;  %v3493_v16 = vld [vmem:[#allocation2 + $0xe0] sm:$0xff]  ;;  %v4073_v0 = vld [vmem:[#allocation2 + $0x2a] sm:$0xff]  ;;  %v4078_v57 = vld [vmem:[#allocation2 + $0x52] sm:$0xff] }
 0x374   : > { %v3385_v24 = vmul.f32 %v3344_v6, %v3169_v29  ;;  %v3170_v47 = vmax.f32 %v7860_v56, 0.0  ;;  %v3087_v62 = vpop.f32.mrb[35].mxu0  ;;  %7893 = vmatprep.mubr.msk.bf16.mxu1 %vm465_vm1, %v3573_v50  ;;  %v3513_v50 = vpack.c.bf16 %v3490_v28, %v3489_v5  ;;  %v3492_v29 = vld [vmem:[#allocation2 + $0xd8] sm:$0xff]  ;;  %v3494_v6 = vld [vmem:[#allocation2 + $0xe8] sm:$0xff] }
 0x375   : > { %v3383_v15 = vmul.f32 %v3334_v54, %v3167_v2  ;;  %v3168_v20 = vmax.f32 %v3087_v62, 0.0  ;;  %v3509_v54 = vpack.c.bf16 %v3482_v10, %v3481_v30  ;;  %v3491_v2 = vld [vmem:[#allocation2 + $0xd0] sm:$0xff]  ;;  %v4072_v32 = vld [vmem:[#allocation2 + $0x22] sm:$0xff] }
 0x376   : > { %3463 = vst.msk [vmem:[#allocation2 + $0x123] sm:$0xff] %vm465_vm1, %v3385_v24  ;;  %v3386_v8 = vmul.f32 %v3349_v21, %v3170_v47  ;;  %v3553_v19 = vld [vmem:[#allocation2 + $0xf1] sm:$0xff]  ;;  %v3514_v56 = vpack.c.bf16 %v3492_v29, %v3491_v2  ;;  %v3515_v24 = vpack.c.bf16 %v3494_v6, %v3493_v16  ;;  %v4080_v27 = vld [vmem:[#allocation2 + $0x62] sm:$0xff] }
 0x377   : > { %3461 = vst.msk [vmem:[#allocation2 + $0x113] sm:$0xff] %vm465_vm1, %v3383_v15  ;;  %v3384_v18 = vmul.f32 %v3339_v12, %v3168_v20  ;;  %v3556_v38 = vld [vmem:[#allocation2 + $0x109] sm:$0xff]  ;;  %v4082_v4 = vld [vmem:[#allocation2 + $0x72] sm:$0xff] }
 0x378   : > { %3464 = vst.msk [vmem:[#allocation2 + $0x12b] sm:$0xff] %vm465_vm1, %v3386_v8  ;;  %v3554_v36 = vld [vmem:[#allocation2 + $0xf9] sm:$0xff]  ;;  %v3555_v26 = vld [vmem:[#allocation2 + $0x101] sm:$0xff]  ;;  %v3483_v12 = vld [vmem:[#allocation2 + $0x90] sm:$0xff] }
 0x379   : > { %3462 = vst.msk [vmem:[#allocation2 + $0x11b] sm:$0xff] %vm465_vm1, %v3384_v18  ;;  %v3574_v13 = vpack.c.bf16 %v3554_v36, %v3553_v19  ;;  %v3575_v43 = vpack.c.bf16 %v3556_v38, %v3555_v26  ;;  %v3510_v48 = vpack.c.bf16 %v3484_v61, %v3483_v12  ;;  %v3496_v47 = vld [vmem:[#allocation2 + $0xf8] sm:$0xff]  ;;  %v3497_v62 = vld [vmem:[#allocation2 + $0x100] sm:$0xff]  ;;  %v3498_v21 = vld [vmem:[#allocation2 + $0x108] sm:$0xff] }
 0x37a   : > { %v3495_v15 = vld [vmem:[#allocation2 + $0xf0] sm:$0xff]  ;;  %v3517_v8 = vpack.c.bf16 %v3498_v21, %v3497_v62  ;;  %v4068_v18 = vld [vmem:[#allocation2 + $0x2] sm:$0xff] }
 0x37b   : > { %7894 = vmatmul.mubr.msk.bf16.gmra.mrb[28].mxu1 %vm465_vm1, %v3574_v13  ;;  %v3516_v20 = vpack.c.bf16 %v3496_v47, %v3495_v15  ;;  %v4069_v38 = vld [vmem:[#allocation2 + $0xa] sm:$0xff]  ;;  %v4088_v3 = vld [vmem:[#allocation2 + $0xa2] sm:$0xff]  ;;  %v4086_v10 = vld [vmem:[#allocation2 + $0x92] sm:$0xff] }
 0x37c   : > { %7897 = vmatprep.mubr.msk.bf16.mxu1 %vm465_vm1, %v3575_v43  ;;  %v4104_v26 = vpack.c.bf16 %v4069_v38, %v4068_v18  ;;  %v4071_v43 = vld [vmem:[#allocation2 + $0x1a] sm:$0xff]  ;;  %v4081_v46 = vld [vmem:[#allocation2 + $0x6a] sm:$0xff]  ;;  %v4092_v61 = vld [vmem:[#allocation2 + $0xc2] sm:$0xff] }
 0x37d   : > { %v4085_v37 = vld [vmem:[#allocation2 + $0x8a] sm:$0xff]  ;;  %v4090_v14 = vld [vmem:[#allocation2 + $0xb2] sm:$0xff]  ;;  %v4096_v51 = vld [vmem:[#allocation2 + $0xe2] sm:$0xff] }
 0x37e   : > { %v3557_v49 = vld [vmem:[#allocation2 + $0x111] sm:$0xff]  ;;  %v4100_v29 = vld [vmem:[#allocation2 + $0x102] sm:$0xff] }
 0x37f   : > { %v3499_v36 = vld [vmem:[#allocation2 + $0x110] sm:$0xff]  ;;  %v8838_v21 = vld [vmem:[%s10347_s2 + $0x48] sm:$0xff]   ;;  %v4745_v18 = vld [vmem:[#allocation2 + $0x1b] sm:$0xff] }
 0x380   : > { %v3558_v39 = vld [vmem:[#allocation2 + $0x119] sm:$0xff]  ;;  %v4089_v30 = vld [vmem:[#allocation2 + $0xaa] sm:$0xff] }
 0x381   : > { %v3576_v42 = vpack.c.bf16 %v3558_v39, %v3557_v49  ;;  %v3500_v19 = vld [vmem:[#allocation2 + $0x118] sm:$0xff]  ;;  %v4093_v31 = vld [vmem:[#allocation2 + $0xca] sm:$0xff] }
 0x382   : > { %v3518_v13 = vpack.c.bf16 %v3500_v19, %v3499_v36  ;;  %v4070_v49 = vld [vmem:[#allocation2 + $0x12] sm:$0xff]  ;;  %v4097_v5 = vld [vmem:[#allocation2 + $0xea] sm:$0xff] }
 0x383   : > { %7898 = vmatmul.mubr.msk.bf16.gmra.mrb[32].mxu1 %vm465_vm1, %v3576_v42  ;;  %v9995_v39 = vpack.c.bf16 %v4071_v43, %v4070_v49  ;;  %v10000_v42 = vpack.c.bf16 %v4073_v0, %v4072_v32  ;;  %v4094_v28 = vld [vmem:[#allocation2 + $0xd2] sm:$0xff]  ;;  %v4101_v16 = vld [vmem:[#allocation2 + $0x10a] sm:$0xff] }
 0x384   : > { %7905 = vmatprep.mubr.msk.bf16.mxu1 %vm465_vm1, %v3501_v22  ;;  %v8836_v22 = vld [vmem:[%s10347_s2 + $0x38] sm:$0xff]   ;;  %v8839_v15 = vld [vmem:[%s10347_s2 + $0x50] sm:$0xff]   ;;  %v4746_v43 = vld [vmem:[#allocation2 + $0x23] sm:$0xff] }
 0x385   : > { %v4098_v6 = vld [vmem:[#allocation2 + $0xf2] sm:$0xff] }
 0x386   : > { %v4102_v47 = vld [vmem:[#allocation2 + $0x112] sm:$0xff] }
 0x387   : > { %v4744_v19 = vld [vmem:[#allocation2 + $0x13] sm:$0xff] }
 0x388   : > { %v4780_v36 = vpack.c.bf16 %v4745_v18, %v4744_v19  ;;  %v4748_v0 = vld [vmem:[#allocation2 + $0x33] sm:$0xff]  ;;  %v5084_v18 = vld [vmem:[#allocation2 + $0x24] sm:$0xff] }
 0x389   : > { %v8840_v49 = vld [vmem:[%s10347_s2 + $0x58] sm:$0xff]   ;;  %v8842_v19 = vld [vmem:[%s10347_s2 + $0x68] sm:$0xff]  }
 0x38b   : > { %7906 = vmatmul.mubr.msk.bf16.vlgmr.msra.gmra.mrb[0].mxu1 %vm465_vm1, %v3502_v40  ;;  %v4074_v40 = vld [vmem:[#allocation2 + $0x32] sm:$0xff] }
 0x38c   : > { %7942 = vmatpush3.bf16.msra.mxu1 %v9906_v23  ;;  %7909 = vmatprep.mubr.msk.bf16.mxu1 %vm465_vm1, %v3503_v58  ;;  %v3476_v23 = vld [vmem:[#allocation2 + $0x58] sm:$0xff]  ;;  %v10013_v58 = vpack.c.bf16 %v4077_v17, %v4076_v11 }
 0x38d   : > { %7943 = vmatprep.subr.bf16.mxu1 %v8834_v33  ;;  %v3506_v52 = vpack.c.bf16 %v3476_v23, %v3475_v34  ;;  %v4084_v23 = vld [vmem:[#allocation2 + $0x82] sm:$0xff]  ;;  %v4752_v17 = vld [vmem:[#allocation2 + $0x53] sm:$0xff] }
 0x390   : > { %7944 = vmatpush3.bf16.msra.mxu1 %v8834_v33  ;;  %v4107_v33 = vpack.c.bf16 %v4075_v44, %v4074_v40  ;;  %v4750_v44 = vld [vmem:[#allocation2 + $0x43] sm:$0xff] }
 0x391   : > { %7981 = vmatprep.subr.bf16.mxu1 %v9976_v41 }
 0x393   : > { %7910 = vmatmul.mubr.msk.bf16.gmra.mrb[4].mxu1 %vm465_vm1, %v3504_v55  ;;  %v4110_v55 = vpack.c.bf16 %v4081_v46, %v4080_v27  ;;  %v4756_v46 = vld [vmem:[#allocation2 + $0x73] sm:$0xff] }
 0x394   : > { %7913 = vmatprep.mubr.msk.bf16.mxu1 %vm465_vm1, %v3505_v45  ;;  %v4083_v45 = vld [vmem:[#allocation2 + $0x7a] sm:$0xff] }
 0x395   : > { %v4111_v34 = vpack.c.bf16 %v4083_v45, %v4082_v4  ;;  %v4758_v45 = vld [vmem:[#allocation2 + $0x83] sm:$0xff] }
 0x39b   : > { %7914 = vmatmul.mubr.msk.bf16.gmra.mrb[8].mxu1 %vm465_vm1, %v3506_v52  ;;  %v4112_v52 = vpack.c.bf16 %v4085_v37, %v4084_v23  ;;  %v4760_v37 = vld [vmem:[#allocation2 + $0x93] sm:$0xff] }
 0x39c   : > { %7917 = vmatprep.mubr.msk.bf16.mxu1 %vm465_vm1, %v3507_v35  ;;  %v4087_v35 = vld [vmem:[#allocation2 + $0x9a] sm:$0xff] }
 0x39d   : > { %v4113_v7 = vpack.c.bf16 %v4087_v35, %v4086_v10  ;;  %v4762_v35 = vld [vmem:[#allocation2 + $0xa3] sm:$0xff] }
 0x3a3   : > { %7918 = vmatmul.mubr.msk.bf16.gmra.mrb[12].mxu1 %vm465_vm1, %v3508_v60  ;;  %v4114_v60 = vpack.c.bf16 %v4089_v30, %v4088_v3  ;;  %v4764_v30 = vld [vmem:[#allocation2 + $0xb3] sm:$0xff] }
 0x3a4   : > { %7921 = vmatprep.mubr.msk.bf16.mxu1 %vm465_vm1, %v3509_v54  ;;  %v4091_v54 = vld [vmem:[#allocation2 + $0xba] sm:$0xff] }
 0x3a5   : > { %v4115_v12 = vpack.c.bf16 %v4091_v54, %v4090_v14  ;;  %v4766_v54 = vld [vmem:[#allocation2 + $0xc3] sm:$0xff] }
 0x3ab   : > { %7922 = vmatmul.mubr.msk.bf16.gmra.mrb[16].mxu1 %vm465_vm1, %v3510_v48  ;;  %v4116_v48 = vpack.c.bf16 %v4093_v31, %v4092_v61  ;;  %v4768_v31 = vld [vmem:[#allocation2 + $0xd3] sm:$0xff] }
 0x3ac   : > { %7925 = vmatprep.mubr.msk.bf16.mxu1 %vm465_vm1, %v3511_v9  ;;  %v4095_v9 = vld [vmem:[#allocation2 + $0xda] sm:$0xff] }
 0x3ad   : > { %v4117_v1 = vpack.c.bf16 %v4095_v9, %v4094_v28  ;;  %v4770_v9 = vld [vmem:[#allocation2 + $0xe3] sm:$0xff] }
 0x3b3   : > { %7926 = vmatmul.mubr.msk.bf16.gmra.mrb[20].mxu1 %vm465_vm1, %v3512_v53  ;;  %v4118_v53 = vpack.c.bf16 %v4097_v5, %v4096_v51  ;;  %v4772_v5 = vld [vmem:[#allocation2 + $0xf3] sm:$0xff] }
 0x3b4   : > { %7929 = vmatprep.mubr.msk.bf16.mxu1 %vm465_vm1, %v3513_v50  ;;  %v4099_v50 = vld [vmem:[#allocation2 + $0xfa] sm:$0xff] }
 0x3b5   : > { %v4119_v2 = vpack.c.bf16 %v4099_v50, %v4098_v6  ;;  %v4774_v50 = vld [vmem:[#allocation2 + $0x103] sm:$0xff] }
 0x3bb   : > { %7930 = vmatmul.mubr.msk.bf16.gmra.mrb[24].mxu1 %vm465_vm1, %v3514_v56  ;;  %v4120_v56 = vpack.c.bf16 %v4101_v16, %v4100_v29  ;;  %v4776_v16 = vld [vmem:[#allocation2 + $0x113] sm:$0xff] }
 0x3bc   : > { %7933 = vmatprep.mubr.msk.bf16.mxu1 %vm465_vm1, %v3515_v24  ;;  %v4103_v24 = vld [vmem:[#allocation2 + $0x11a] sm:$0xff] }
 0x3bd   : > { %v4121_v62 = vpack.c.bf16 %v4103_v24, %v4102_v47  ;;  %v5083_v24 = vld [vmem:[#allocation2 + $0x1c] sm:$0xff] }
 0x3be   : > { %v4778_v47 = vld [vmem:[#allocation2 + $0x123] sm:$0xff] }
 0x3c3   : > { %7934 = vmatmul.mubr.msk.bf16.gmra.mrb[28].mxu1 %vm465_vm1, %v3516_v20  ;;  %v4440_v20 = vld [vmem:[#allocation2 + $0x122] sm:$0xff] }
 0x3c4   : > { %7937 = vmatprep.mubr.msk.bf16.mxu1 %vm465_vm1, %v3517_v8  ;;  %v4441_v8 = vld [vmem:[#allocation2 + $0x12a] sm:$0xff] }
 0x3c5   : > { %v4459_v38 = vpack.c.bf16 %v4441_v8, %v4440_v20  ;;  %v5086_v20 = vld [vmem:[#allocation2 + $0x34] sm:$0xff]  ;;  %v5087_v8 = vld [vmem:[#allocation2 + $0x3c] sm:$0xff] }
 0x3cb   : > { %7938 = vmatmul.mubr.msk.bf16.gmra.mrb[32].mxu1 %vm465_vm1, %v3518_v13  ;;  %v4749_v13 = vld [vmem:[#allocation2 + $0x3b] sm:$0xff] }
 0x3cc   : > { %7945 = vmatprep.mubr.msk.bf16.mxu1 %vm465_vm1, %v4104_v26  ;;  %v4747_v26 = vld [vmem:[#allocation2 + $0x2b] sm:$0xff] }
 0x3cd   : > { %v4781_v32 = vpack.c.bf16 %v4747_v26, %v4746_v43  ;;  %v10102_v26 = vld [vmem:[%s10347_s2 + $0x70] sm:$0xff]  }
 0x3ce   : > { %v5090_v43 = vld [vmem:[#allocation2 + $0x54] sm:$0xff] }
 0x3d3   : > { %7946 = vmatmul.mubr.msk.bf16.vlgmr.msra.gmra.mrb[0].mxu1 %vm465_vm1, %v9995_v39 }
 0x3d4   : > { %7982 = vmatpush3.bf16.msra.mxu1 %v9976_v41  ;;  %7949 = vmatprep.mubr.msk.bf16.mxu1 %vm465_vm1, %v10000_v42  ;;  %v4079_v41 = vld [vmem:[#allocation2 + $0x5a] sm:$0xff] }
 0x3d5   : > { %7983 = vmatprep.subr.bf16.mxu1 %v8836_v22  ;;  %v4109_v25 = vpack.c.bf16 %v4079_v41, %v4078_v57  ;;  %v4754_v41 = vld [vmem:[#allocation2 + $0x63] sm:$0xff] }
 0x3d8   : > { %7984 = vmatpush3.bf16.msra.mxu1 %v8836_v22  ;;  %v10068_v22 = vld [vmem:[%s10347_s2 + $0x60] sm:$0xff]  }
 0x3d9   : > { %8021 = vmatprep.subr.bf16.mxu1 %v10010_v63 }
 0x3db   : > { %7950 = vmatmul.mubr.msk.bf16.gmra.mrb[4].mxu1 %vm465_vm1, %v4107_v33 }
 0x3dc   : > { %7953 = vmatprep.mubr.msk.bf16.mxu1 %vm465_vm1, %v10013_v58 }
 0x3e3   : > { %7954 = vmatmul.mubr.msk.bf16.gmra.mrb[8].mxu1 %vm465_vm1, %v4109_v25 }
 0x3e4   : > { %7957 = vmatprep.mubr.msk.bf16.mxu1 %vm465_vm1, %v4110_v55 }
 0x3eb   : > { %7958 = vmatmul.mubr.msk.bf16.gmra.mrb[12].mxu1 %vm465_vm1, %v4111_v34 }
 0x3ec   : > { %7961 = vmatprep.mubr.msk.bf16.mxu1 %vm465_vm1, %v4112_v52 }
 0x3f3   : > { %7962 = vmatmul.mubr.msk.bf16.gmra.mrb[16].mxu1 %vm465_vm1, %v4113_v7 }
 0x3f4   : > { %7965 = vmatprep.mubr.msk.bf16.mxu1 %vm465_vm1, %v4114_v60 }
 0x3fb   : > { %7966 = vmatmul.mubr.msk.bf16.gmra.mrb[20].mxu1 %vm465_vm1, %v4115_v12 }
 0x3fc   : > { %7969 = vmatprep.mubr.msk.bf16.mxu1 %vm465_vm1, %v4116_v48 }
 0x403   : > { %7970 = vmatmul.mubr.msk.bf16.gmra.mrb[24].mxu1 %vm465_vm1, %v4117_v1 }
 0x404   : > { %7973 = vmatprep.mubr.msk.bf16.mxu1 %vm465_vm1, %v4118_v53 }
 0x40b   : > { %7974 = vmatmul.mubr.msk.bf16.gmra.mrb[28].mxu1 %vm465_vm1, %v4119_v2 }
 0x40c   : > { %7977 = vmatprep.mubr.msk.bf16.mxu1 %vm465_vm1, %v4120_v56 }
 0x413   : > { %7978 = vmatmul.mubr.msk.bf16.gmra.mrb[32].mxu1 %vm465_vm1, %v4121_v62 }
 0x414   : > { %7985 = vmatprep.mubr.msk.bf16.mxu1 %vm465_vm1, %v9995_v39  ;;  %v4782_v39 = vpack.c.bf16 %v4749_v13, %v4748_v0  ;;  %v5089_v13 = vld [vmem:[#allocation2 + $0x4c] sm:$0xff]  ;;  %v5088_v0 = vld [vmem:[#allocation2 + $0x44] sm:$0xff] }
 0x41b   : > { %7986 = vmatmul.mubr.msk.bf16.vlgmr.msra.gmra.mrb[0].mxu1 %vm465_vm1, %v10000_v42  ;;  %v4751_v42 = vld [vmem:[#allocation2 + $0x4b] sm:$0xff] }
 0x41c   : > { %8022 = vmatpush3.bf16.msra.mxu1 %v10010_v63  ;;  %7989 = vmatprep.mubr.msk.bf16.mxu1 %vm465_vm1, %v4107_v33  ;;  %v4753_v63 = vld [vmem:[#allocation2 + $0x5b] sm:$0xff]  ;;  %v4783_v11 = vpack.c.bf16 %v4751_v42, %v4750_v44  ;;  %v4755_v33 = vld [vmem:[#allocation2 + $0x6b] sm:$0xff] }
 0x41d   : > { %8023 = vmatprep.subr.bf16.mxu1 %v8838_v21  ;;  %v4784_v40 = vpack.c.bf16 %v4753_v63, %v4752_v17  ;;  %v4785_v27 = vpack.c.bf16 %v4755_v33, %v4754_v41  ;;  %v5094_v42 = vld [vmem:[#allocation2 + $0x74] sm:$0xff]  ;;  %v5095_v63 = vld [vmem:[#allocation2 + $0x7c] sm:$0xff]  ;;  %v5092_v44 = vld [vmem:[#allocation2 + $0x64] sm:$0xff] }
 0x41e   : > { %v5097_v17 = vld [vmem:[#allocation2 + $0x8c] sm:$0xff]  ;;  %v5099_v33 = vld [vmem:[#allocation2 + $0x9c] sm:$0xff] }
 0x420   : > { %8024 = vmatpush3.bf16.msra.mxu1 %v8838_v21 }
 0x421   : > { %8061 = vmatprep.subr.bf16.mxu1 %v8839_v15 }
 0x423   : > { %7990 = vmatmul.mubr.msk.bf16.gmra.mrb[4].mxu1 %vm465_vm1, %v10013_v58  ;;  %v4757_v58 = vld [vmem:[#allocation2 + $0x7b] sm:$0xff] }
 0x424   : > { %7993 = vmatprep.mubr.msk.bf16.mxu1 %vm465_vm1, %v4109_v25  ;;  %v4786_v57 = vpack.c.bf16 %v4757_v58, %v4756_v46  ;;  %v4759_v25 = vld [vmem:[#allocation2 + $0x8b] sm:$0xff] }
 0x425   : > { %v4787_v23 = vpack.c.bf16 %v4759_v25, %v4758_v45  ;;  %v5096_v58 = vld [vmem:[#allocation2 + $0x84] sm:$0xff]  ;;  %v5101_v46 = vld [vmem:[#allocation2 + $0xac] sm:$0xff]  ;;  %v5103_v25 = vld [vmem:[#allocation2 + $0xbc] sm:$0xff] }
 0x426   : > { %v5125_v41 = vpack.c.bf16 %v5097_v17, %v5096_v58  ;;  %v5774_v17 = vld [vmem:[#allocation2 + $0xa5] sm:$0xff]  ;;  %v5777_v58 = vld [vmem:[#allocation2 + $0xbd] sm:$0xff] }
 0x42b   : > { %7994 = vmatmul.mubr.msk.bf16.gmra.mrb[8].mxu1 %vm465_vm1, %v4110_v55  ;;  %v4761_v55 = vld [vmem:[#allocation2 + $0x9b] sm:$0xff] }
 0x42c   : > { %7997 = vmatprep.mubr.msk.bf16.mxu1 %vm465_vm1, %v4111_v34  ;;  %v4788_v4 = vpack.c.bf16 %v4761_v55, %v4760_v37  ;;  %v4763_v34 = vld [vmem:[#allocation2 + $0xab] sm:$0xff] }
 0x42d   : > { %v4789_v3 = vpack.c.bf16 %v4763_v34, %v4762_v35  ;;  %v5100_v55 = vld [vmem:[#allocation2 + $0xa4] sm:$0xff]  ;;  %v5105_v37 = vld [vmem:[#allocation2 + $0xcc] sm:$0xff]  ;;  %v5107_v34 = vld [vmem:[#allocation2 + $0xdc] sm:$0xff] }
 0x42e   : > { %v5127_v45 = vpack.c.bf16 %v5101_v46, %v5100_v55  ;;  %v5778_v46 = vld [vmem:[#allocation2 + $0xc5] sm:$0xff]  ;;  %v5781_v55 = vld [vmem:[#allocation2 + $0xdd] sm:$0xff] }
 0x433   : > { %7998 = vmatmul.mubr.msk.bf16.gmra.mrb[12].mxu1 %vm465_vm1, %v4112_v52  ;;  %v4765_v52 = vld [vmem:[#allocation2 + $0xbb] sm:$0xff] }
 0x434   : > { %8001 = vmatprep.mubr.msk.bf16.mxu1 %vm465_vm1, %v4113_v7  ;;  %v4790_v10 = vpack.c.bf16 %v4765_v52, %v4764_v30  ;;  %v4767_v7 = vld [vmem:[#allocation2 + $0xcb] sm:$0xff] }
 0x435   : > { %v4791_v61 = vpack.c.bf16 %v4767_v7, %v4766_v54  ;;  %v5104_v52 = vld [vmem:[#allocation2 + $0xc4] sm:$0xff]  ;;  %v5109_v30 = vld [vmem:[#allocation2 + $0xec] sm:$0xff]  ;;  %v5111_v7 = vld [vmem:[#allocation2 + $0xfc] sm:$0xff] }
 0x436   : > { %v5129_v35 = vpack.c.bf16 %v5105_v37, %v5104_v52  ;;  %v5782_v37 = vld [vmem:[#allocation2 + $0xe5] sm:$0xff]  ;;  %v5785_v52 = vld [vmem:[#allocation2 + $0xfd] sm:$0xff] }
 0x43b   : > { %8002 = vmatmul.mubr.msk.bf16.gmra.mrb[16].mxu1 %vm465_vm1, %v4114_v60  ;;  %v4769_v60 = vld [vmem:[#allocation2 + $0xdb] sm:$0xff] }
 0x43c   : > { %8005 = vmatprep.mubr.msk.bf16.mxu1 %vm465_vm1, %v4115_v12  ;;  %v4792_v14 = vpack.c.bf16 %v4769_v60, %v4768_v31  ;;  %v4771_v12 = vld [vmem:[#allocation2 + $0xeb] sm:$0xff] }
 0x43d   : > { %v4793_v51 = vpack.c.bf16 %v4771_v12, %v4770_v9  ;;  %v5108_v60 = vld [vmem:[#allocation2 + $0xe4] sm:$0xff]  ;;  %v5113_v31 = vld [vmem:[#allocation2 + $0x10c] sm:$0xff]  ;;  %v5115_v12 = vld [vmem:[#allocation2 + $0x11c] sm:$0xff] }
 0x43e   : > { %v5131_v54 = vpack.c.bf16 %v5109_v30, %v5108_v60  ;;  %v5786_v30 = vld [vmem:[#allocation2 + $0x105] sm:$0xff]  ;;  %v5789_v60 = vld [vmem:[#allocation2 + $0x11d] sm:$0xff] }
 0x443   : > { %8006 = vmatmul.mubr.msk.bf16.gmra.mrb[20].mxu1 %vm465_vm1, %v4116_v48  ;;  %v4773_v48 = vld [vmem:[#allocation2 + $0xfb] sm:$0xff] }
 0x444   : > { %8009 = vmatprep.mubr.msk.bf16.mxu1 %vm465_vm1, %v4117_v1  ;;  %v4794_v28 = vpack.c.bf16 %v4773_v48, %v4772_v5  ;;  %v4775_v1 = vld [vmem:[#allocation2 + $0x10b] sm:$0xff] }
 0x445   : > { %v4795_v29 = vpack.c.bf16 %v4775_v1, %v4774_v50  ;;  %v5112_v48 = vld [vmem:[#allocation2 + $0x104] sm:$0xff] }
 0x446   : > { %v5133_v9 = vpack.c.bf16 %v5113_v31, %v5112_v48  ;;  %v5116_v5 = vld [vmem:[#allocation2 + $0x124] sm:$0xff] }
 0x447   : > { %v8845_v50 = vld [vmem:[%s10347_s2 + $0x80] sm:$0xff]  }
 0x448   : > { %v5793_v48 = vld [vmem:[#allocation2 + $0x13d] sm:$0xff] }
 0x44b   : > { %8010 = vmatmul.mubr.msk.bf16.gmra.mrb[24].mxu1 %vm465_vm1, %v4118_v53  ;;  %v4777_v53 = vld [vmem:[#allocation2 + $0x11b] sm:$0xff] }
 0x44c   : > { %8013 = vmatprep.mubr.msk.bf16.mxu1 %vm465_vm1, %v4119_v2  ;;  %v4796_v6 = vpack.c.bf16 %v4777_v53, %v4776_v16  ;;  %v4779_v2 = vld [vmem:[#allocation2 + $0x12b] sm:$0xff]  ;;  %v8844_v53 = vld [vmem:[%s10347_s2 + $0x78] sm:$0xff]  }
 0x44d   : > { %v5455_v16 = vld [vmem:[#allocation2 + $0x13c] sm:$0xff] }
 0x453   : > { %8014 = vmatmul.mubr.msk.bf16.gmra.mrb[28].mxu1 %vm465_vm1, %v4120_v56  ;;  %v5082_v56 = vld [vmem:[#allocation2 + $0x14] sm:$0xff] }
 0x454   : > { %8017 = vmatprep.mubr.msk.bf16.mxu1 %vm465_vm1, %v4121_v62  ;;  %v4797_v62 = vpack.c.bf16 %v4779_v2, %v4778_v47  ;;  %v5118_v21 = vpack.c.bf16 %v5083_v24, %v5082_v56  ;;  %v5759_v2 = vld [vmem:[#allocation2 + $0x2d] sm:$0xff]  ;;  %v5758_v56 = vld [vmem:[#allocation2 + $0x25] sm:$0xff]  ;;  %v5760_v47 = vld [vmem:[#allocation2 + $0x35] sm:$0xff] }
 0x455   : > { %v5794_v24 = vpack.c.bf16 %v5759_v2, %v5758_v56  ;;  %v6102_v2 = vld [vmem:[#allocation2 + $0x56] sm:$0xff]  ;;  %v6103_v56 = vld [vmem:[#allocation2 + $0x5e] sm:$0xff] }
 0x45b   : > { %8018 = vmatmul.mubr.msk.bf16.gmra.mrb[32].mxu1 %vm465_vm1, %v4459_v38 }
 0x45c   : > { %8025 = vmatprep.mubr.msk.bf16.mxu1 %vm465_vm1, %v4780_v36  ;;  %v10092_v36 = vpack.c.bf16 %v5087_v8, %v5086_v20  ;;  %v5762_v20 = vld [vmem:[#allocation2 + $0x45] sm:$0xff] }
 0x45d   : > { %v8846_v8 = vld [vmem:[%s10347_s2 + $0x88] sm:$0xff]  }
 0x463   : > { %8026 = vmatmul.mubr.msk.bf16.vlgmr.msra.gmra.mrb[0].mxu1 %vm465_vm1, %v4781_v32  ;;  %v5091_v32 = vld [vmem:[#allocation2 + $0x5c] sm:$0xff] }
 0x464   : > { %8062 = vmatpush3.bf16.msra.mxu1 %v8839_v15  ;;  %8029 = vmatprep.mubr.msk.bf16.mxu1 %vm465_vm1, %v4782_v39  ;;  %v5085_v15 = vld [vmem:[#allocation2 + $0x2c] sm:$0xff]  ;;  %v10106_v39 = vpack.c.bf16 %v5091_v32, %v5090_v43  ;;  %v5768_v32 = vld [vmem:[#allocation2 + $0x75] sm:$0xff] }
 0x465   : > { %8063 = vmatprep.subr.bf16.mxu1 %v8840_v49  ;;  %v10087_v38 = vpack.c.bf16 %v5085_v15, %v5084_v18 }
 0x468   : > { %8064 = vmatpush3.bf16.msra.mxu1 %v8840_v49  ;;  %v5121_v49 = vpack.c.bf16 %v5089_v13, %v5088_v0  ;;  %v5766_v13 = vld [vmem:[#allocation2 + $0x65] sm:$0xff]  ;;  %v5769_v0 = vld [vmem:[#allocation2 + $0x7d] sm:$0xff] }
 0x469   : > { %8101 = vmatprep.subr.bf16.mxu1 %v10068_v22 }
 0x46b   : > { %8030 = vmatmul.mubr.msk.bf16.gmra.mrb[4].mxu1 %vm465_vm1, %v4783_v11  ;;  %v5124_v11 = vpack.c.bf16 %v5095_v63, %v5094_v42  ;;  %v5772_v63 = vld [vmem:[#allocation2 + $0x95] sm:$0xff] }
 0x46c   : > { %8033 = vmatprep.mubr.msk.bf16.mxu1 %vm465_vm1, %v4784_v40  ;;  %v5098_v40 = vld [vmem:[#allocation2 + $0x94] sm:$0xff] }
 0x473   : > { %8034 = vmatmul.mubr.msk.bf16.gmra.mrb[8].mxu1 %vm465_vm1, %v4785_v27  ;;  %v5126_v27 = vpack.c.bf16 %v5099_v33, %v5098_v40  ;;  %v5776_v33 = vld [vmem:[#allocation2 + $0xb5] sm:$0xff] }
 0x474   : > { %8037 = vmatprep.mubr.msk.bf16.mxu1 %vm465_vm1, %v4786_v57  ;;  %v5102_v57 = vld [vmem:[#allocation2 + $0xb4] sm:$0xff] }
 0x47b   : > { %8038 = vmatmul.mubr.msk.bf16.gmra.mrb[12].mxu1 %vm465_vm1, %v4787_v23  ;;  %v5128_v23 = vpack.c.bf16 %v5103_v25, %v5102_v57  ;;  %v5780_v25 = vld [vmem:[#allocation2 + $0xd5] sm:$0xff] }
 0x47c   : > { %8041 = vmatprep.mubr.msk.bf16.mxu1 %vm465_vm1, %v4788_v4  ;;  %v5106_v4 = vld [vmem:[#allocation2 + $0xd4] sm:$0xff] }
 0x483   : > { %8042 = vmatmul.mubr.msk.bf16.gmra.mrb[16].mxu1 %vm465_vm1, %v4789_v3  ;;  %v5130_v3 = vpack.c.bf16 %v5107_v34, %v5106_v4  ;;  %v5784_v34 = vld [vmem:[#allocation2 + $0xf5] sm:$0xff] }
 0x484   : > { %8045 = vmatprep.mubr.msk.bf16.mxu1 %vm465_vm1, %v4790_v10  ;;  %v5110_v10 = vld [vmem:[#allocation2 + $0xf4] sm:$0xff] }
 0x48b   : > { %8046 = vmatmul.mubr.msk.bf16.gmra.mrb[20].mxu1 %vm465_vm1, %v4791_v61  ;;  %v5132_v61 = vpack.c.bf16 %v5111_v7, %v5110_v10  ;;  %v5788_v7 = vld [vmem:[#allocation2 + $0x115] sm:$0xff] }
 0x48c   : > { %8049 = vmatprep.mubr.msk.bf16.mxu1 %vm465_vm1, %v4792_v14  ;;  %v5114_v14 = vld [vmem:[#allocation2 + $0x114] sm:$0xff]  ;;  %v5809_v31 = vpack.c.bf16 %v5789_v60, %v5788_v7  ;;  %v8848_v60 = vld [vmem:[%s8942_s26 + $0x28] sm:$0xff] }
 0x493   : > { %8050 = vmatmul.mubr.msk.bf16.gmra.mrb[24].mxu1 %vm465_vm1, %v4793_v51  ;;  %v5134_v51 = vpack.c.bf16 %v5115_v12, %v5114_v14  ;;  %v5792_v12 = vld [vmem:[#allocation2 + $0x135] sm:$0xff] }
 0x494   : > { %8053 = vmatprep.mubr.msk.bf16.mxu1 %vm465_vm1, %v4794_v28  ;;  %v5117_v28 = vld [vmem:[#allocation2 + $0x12c] sm:$0xff] }
 0x495   : > { %v5135_v1 = vpack.c.bf16 %v5117_v28, %v5116_v5  ;;  %v6096_v5 = vld [vmem:[#allocation2 + $0x26] sm:$0xff] }
 0x49b   : > { %8054 = vmatmul.mubr.msk.bf16.gmra.mrb[28].mxu1 %vm465_vm1, %v4795_v29  ;;  %v5454_v29 = vld [vmem:[#allocation2 + $0x134] sm:$0xff] }
 0x49c   : > { %8057 = vmatprep.mubr.msk.bf16.mxu1 %vm465_vm1, %v4796_v6  ;;  %v5473_v6 = vpack.c.bf16 %v5455_v16, %v5454_v29  ;;  %v6100_v16 = vld [vmem:[#allocation2 + $0x46] sm:$0xff] }
 0x4a3   : > { %8058 = vmatmul.mubr.msk.bf16.gmra.mrb[32].mxu1 %vm465_vm1, %v4797_v62  ;;  %v5761_v62 = vld [vmem:[#allocation2 + $0x3d] sm:$0xff] }
 0x4a4   : > { %8065 = vmatprep.mubr.msk.bf16.mxu1 %vm465_vm1, %v5118_v21  ;;  %v5763_v21 = vld [vmem:[#allocation2 + $0x4d] sm:$0xff]  ;;  %v5795_v15 = vpack.c.bf16 %v5761_v62, %v5760_v47  ;;  %v6135_v47 = vpack.c.bf16 %v6103_v56, %v6102_v2  ;;  %v8852_v2 = vld [vmem:[%s8942_s26 + $0x40] sm:$0xff] }
 0x4a5   : > { %v5796_v18 = vpack.c.bf16 %v5763_v21, %v5762_v20  ;;  %v6104_v62 = vld [vmem:[#allocation2 + $0x66] sm:$0xff]  ;;  %v6107_v20 = vld [vmem:[#allocation2 + $0x7e] sm:$0xff]  ;;  %v6483_v56 = vrot.slane %v8852_v2, 3 }
 0x4ab   : > { %8066 = vmatmul.mubr.msk.bf16.vlgmr.msra.gmra.mrb[0].mxu1 %vm465_vm1, %v10087_v38 }
 0x4ac   : > { %8102 = vmatpush3.bf16.msra.mxu1 %v10068_v22  ;;  %8069 = vmatprep.mubr.msk.bf16.mxu1 %vm465_vm1, %v10092_v36  ;;  %v5093_v22 = vld [vmem:[#allocation2 + $0x6c] sm:$0xff] }
 0x4ad   : > { %8103 = vmatprep.subr.bf16.mxu1 %v8842_v19  ;;  %v5123_v59 = vpack.c.bf16 %v5093_v22, %v5092_v44  ;;  %v5770_v22 = vld [vmem:[#allocation2 + $0x85] sm:$0xff]  ;;  %v5773_v44 = vld [vmem:[#allocation2 + $0x9d] sm:$0xff] }
 0x4b0   : > { %8104 = vmatpush3.bf16.msra.mxu1 %v8842_v19  ;;  %v5765_v19 = vld [vmem:[#allocation2 + $0x5d] sm:$0xff] }
 0x4b1   : > { %8141 = vmatprep.subr.bf16.mxu1 %v10102_v26 }
 0x4b3   : > { %8070 = vmatmul.mubr.msk.bf16.gmra.mrb[4].mxu1 %vm465_vm1, %v5121_v49 }
 0x4b4   : > { %8073 = vmatprep.mubr.msk.bf16.mxu1 %vm465_vm1, %v10106_v39 }
 0x4bb   : > { %8074 = vmatmul.mubr.msk.bf16.gmra.mrb[8].mxu1 %vm465_vm1, %v5123_v59 }
 0x4bc   : > { %8077 = vmatprep.mubr.msk.bf16.mxu1 %vm465_vm1, %v5124_v11 }
 0x4c3   : > { %8078 = vmatmul.mubr.msk.bf16.gmra.mrb[12].mxu1 %vm465_vm1, %v5125_v41 }
 0x4c4   : > { %8081 = vmatprep.mubr.msk.bf16.mxu1 %vm465_vm1, %v5126_v27 }
 0x4cb   : > { %8082 = vmatmul.mubr.msk.bf16.gmra.mrb[16].mxu1 %vm465_vm1, %v5127_v45 }
 0x4cc   : > { %8085 = vmatprep.mubr.msk.bf16.mxu1 %vm465_vm1, %v5128_v23 }
 0x4d3   : > { %8086 = vmatmul.mubr.msk.bf16.gmra.mrb[20].mxu1 %vm465_vm1, %v5129_v35 }
 0x4d4   : > { %8089 = vmatprep.mubr.msk.bf16.mxu1 %vm465_vm1, %v5130_v3 }
 0x4db   : > { %8090 = vmatmul.mubr.msk.bf16.gmra.mrb[24].mxu1 %vm465_vm1, %v5131_v54 }
 0x4dc   : > { %8093 = vmatprep.mubr.msk.bf16.mxu1 %vm465_vm1, %v5132_v61 }
 0x4e3   : > { %8094 = vmatmul.mubr.msk.bf16.gmra.mrb[28].mxu1 %vm465_vm1, %v5133_v9 }
 0x4e4   : > { %8097 = vmatprep.mubr.msk.bf16.mxu1 %vm465_vm1, %v5134_v51 }
 0x4eb   : > { %8098 = vmatmul.mubr.msk.bf16.gmra.mrb[32].mxu1 %vm465_vm1, %v5135_v1 }
 0x4ec   : > { %8105 = vmatprep.mubr.msk.bf16.mxu1 %vm465_vm1, %v10087_v38  ;;  %v5764_v38 = vld [vmem:[#allocation2 + $0x55] sm:$0xff] }
 0x4f3   : > { %8106 = vmatmul.mubr.msk.bf16.vlgmr.msra.gmra.mrb[0].mxu1 %vm465_vm1, %v10092_v36  ;;  %v5767_v36 = vld [vmem:[#allocation2 + $0x6d] sm:$0xff] }
 0x4f4   : > { %8142 = vmatpush3.bf16.msra.mxu1 %v10102_v26  ;;  %8109 = vmatprep.mubr.msk.bf16.mxu1 %vm465_vm1, %v5121_v49  ;;  %v5797_v26 = vpack.c.bf16 %v5765_v19, %v5764_v38  ;;  %v5798_v43 = vpack.c.bf16 %v5767_v36, %v5766_v13  ;;  %v5771_v49 = vld [vmem:[#allocation2 + $0x8d] sm:$0xff]  ;;  %v6110_v36 = vld [vmem:[#allocation2 + $0x96] sm:$0xff] }
 0x4f5   : > { %8143 = vmatprep.subr.bf16.mxu1 %v8844_v53  ;;  %v5800_v42 = vpack.c.bf16 %v5771_v49, %v5770_v22  ;;  %v6108_v38 = vld [vmem:[#allocation2 + $0x86] sm:$0xff]  ;;  %v6113_v13 = vld [vmem:[#allocation2 + $0xae] sm:$0xff]  ;;  %v6114_v49 = vld [vmem:[#allocation2 + $0xb6] sm:$0xff] }
 0x4f6   : > { %v6117_v22 = vld [vmem:[#allocation2 + $0xce] sm:$0xff] }
 0x4f8   : > { %8144 = vmatpush3.bf16.msra.mxu1 %v8844_v53  ;;  %v6099_v53 = vld [vmem:[#allocation2 + $0x3e] sm:$0xff] }
 0x4f9   : > { %8181 = vmatprep.subr.bf16.mxu1 %v8845_v50 }
 0x4fb   : > { %8110 = vmatmul.mubr.msk.bf16.gmra.mrb[4].mxu1 %vm465_vm1, %v10106_v39  ;;  %v5799_v39 = vpack.c.bf16 %v5769_v0, %v5768_v32  ;;  %v6112_v32 = vld [vmem:[#allocation2 + $0xa6] sm:$0xff] }
 0x4fc   : > { %8113 = vmatprep.mubr.msk.bf16.mxu1 %vm465_vm1, %v5123_v59  ;;  %v5775_v59 = vld [vmem:[#allocation2 + $0xad] sm:$0xff]  ;;  %v6140_v0 = vpack.c.bf16 %v6113_v13, %v6112_v32 }
 0x4fd   : > { %v5802_v40 = vpack.c.bf16 %v5775_v59, %v5774_v17  ;;  %v6118_v59 = vld [vmem:[#allocation2 + $0xd6] sm:$0xff]  ;;  %v6121_v17 = vld [vmem:[#allocation2 + $0xee] sm:$0xff] }
 0x503   : > { %8114 = vmatmul.mubr.msk.bf16.gmra.mrb[8].mxu1 %vm465_vm1, %v5124_v11  ;;  %v5801_v11 = vpack.c.bf16 %v5773_v44, %v5772_v63  ;;  %v6116_v63 = vld [vmem:[#allocation2 + $0xc6] sm:$0xff] }
 0x504   : > { %8117 = vmatprep.mubr.msk.bf16.mxu1 %vm465_vm1, %v5125_v41  ;;  %v5779_v41 = vld [vmem:[#allocation2 + $0xcd] sm:$0xff]  ;;  %v6142_v44 = vpack.c.bf16 %v6117_v22, %v6116_v63  ;;  %v8856_v22 = vld [vmem:[%s8942_s26 + $0x60] sm:$0xff] }
 0x505   : > { %v5804_v57 = vpack.c.bf16 %v5779_v41, %v5778_v46  ;;  %v6122_v41 = vld [vmem:[#allocation2 + $0xf6] sm:$0xff]  ;;  %v6125_v46 = vld [vmem:[#allocation2 + $0x10e] sm:$0xff] }
 0x506   : > { %v8857_v63 = vld [vmem:[%s8942_s26 + $0x68] sm:$0xff] }
 0x50b   : > { %8118 = vmatmul.mubr.msk.bf16.gmra.mrb[12].mxu1 %vm465_vm1, %v5126_v27  ;;  %v5803_v27 = vpack.c.bf16 %v5777_v58, %v5776_v33  ;;  %v6120_v33 = vld [vmem:[#allocation2 + $0xe6] sm:$0xff] }
 0x50c   : > { %8121 = vmatprep.mubr.msk.bf16.mxu1 %vm465_vm1, %v5127_v45  ;;  %v5783_v45 = vld [vmem:[#allocation2 + $0xed] sm:$0xff]  ;;  %v6144_v58 = vpack.c.bf16 %v6121_v17, %v6120_v33  ;;  %v8858_v17 = vld [vmem:[%s8942_s26 + $0x58] sm:$0xff] }
 0x50d   : > { %v5806_v4 = vpack.c.bf16 %v5783_v45, %v5782_v37  ;;  %v6126_v45 = vld [vmem:[#allocation2 + $0x116] sm:$0xff]  ;;  %v6128_v37 = vld [vmem:[#allocation2 + $0x126] sm:$0xff] }
 0x513   : > { %8122 = vmatmul.mubr.msk.bf16.gmra.mrb[16].mxu1 %vm465_vm1, %v5128_v23  ;;  %v5805_v23 = vpack.c.bf16 %v5781_v55, %v5780_v25  ;;  %v6124_v25 = vld [vmem:[#allocation2 + $0x106] sm:$0xff] }
 0x514   : > { %8125 = vmatprep.mubr.msk.bf16.mxu1 %vm465_vm1, %v5129_v35  ;;  %v5787_v35 = vld [vmem:[#allocation2 + $0x10d] sm:$0xff]  ;;  %v6146_v55 = vpack.c.bf16 %v6125_v46, %v6124_v25 }
 0x515   : > { %v5808_v10 = vpack.c.bf16 %v5787_v35, %v5786_v30  ;;  %v6130_v35 = vld [vmem:[#allocation2 + $0x136] sm:$0xff] }
 0x51b   : > { %8126 = vmatmul.mubr.msk.bf16.gmra.mrb[20].mxu1 %vm465_vm1, %v5130_v3  ;;  %v5807_v3 = vpack.c.bf16 %v5785_v52, %v5784_v34 }
 0x51c   : > { %8129 = vmatprep.mubr.msk.bf16.mxu1 %vm465_vm1, %v5131_v54  ;;  %v5790_v54 = vld [vmem:[#allocation2 + $0x125] sm:$0xff] }
 0x523   : > { %8130 = vmatmul.mubr.msk.bf16.gmra.mrb[24].mxu1 %vm465_vm1, %v5132_v61  ;;  %v5791_v61 = vld [vmem:[#allocation2 + $0x12d] sm:$0xff] }
 0x524   : > { %8133 = vmatprep.mubr.msk.bf16.mxu1 %vm465_vm1, %v5133_v9  ;;  %v5810_v14 = vpack.c.bf16 %v5791_v61, %v5790_v54  ;;  %v5811_v9 = vpack.c.bf16 %v5793_v48, %v5792_v12  ;;  %v6477_v54 = vrot.slane %v8848_v60, 3  ;;  %v8849_v61 = vld [vmem:[%s8942_s26 + $0x10] sm:$0xff] }
 0x525   : > { %v8851_v48 = vld [vmem:[%s8942_s26 + $0x30] sm:$0xff] }
 0x52b   : > { %8134 = vmatmul.mubr.msk.bf16.gmra.mrb[28].mxu1 %vm465_vm1, %v5134_v51  ;;  %v6097_v51 = vld [vmem:[#allocation2 + $0x2e] sm:$0xff] }
 0x52c   : > { %8137 = vmatprep.mubr.msk.bf16.mxu1 %vm465_vm1, %v5135_v1  ;;  %v6132_v28 = vpack.c.bf16 %v6097_v51, %v6096_v5  ;;  %v6098_v1 = vld [vmem:[#allocation2 + $0x36] sm:$0xff] }
 0x52d   : > { %v6133_v29 = vpack.c.bf16 %v6099_v53, %v6098_v1 }
 0x533   : > { %8138 = vmatmul.mubr.msk.bf16.gmra.mrb[32].mxu1 %vm465_vm1, %v5473_v6 }
 0x534   : > { %8145 = vmatprep.mubr.msk.bf16.mxu1 %vm465_vm1, %v5794_v24  ;;  %v6105_v24 = vld [vmem:[#allocation2 + $0x6e] sm:$0xff] }
 0x535   : > { %v6136_v21 = vpack.c.bf16 %v6105_v24, %v6104_v62  ;;  %v8853_v24 = vld [vmem:[%s8942_s26 + $0x48] sm:$0xff] }
 0x53b   : > { %8146 = vmatmul.mubr.msk.bf16.vlgmr.msra.gmra.mrb[0].mxu1 %vm465_vm1, %v5795_v15  ;;  %v6106_v15 = vld [vmem:[#allocation2 + $0x76] sm:$0xff] }
 0x53c   : > { %8182 = vmatpush3.bf16.msra.mxu1 %v8845_v50  ;;  %8149 = vmatprep.mubr.msk.bf16.mxu1 %vm465_vm1, %v5796_v18  ;;  %v6101_v50 = vld [vmem:[#allocation2 + $0x4e] sm:$0xff]  ;;  %v6137_v18 = vpack.c.bf16 %v6107_v20, %v6106_v15  ;;  %v8854_v15 = vld [vmem:[%s8942_s26 + $0x38] sm:$0xff] }
 0x53d   : > { %8183 = vmatprep.subr.bf16.mxu1 %v8846_v8  ;;  %v6134_v6 = vpack.c.bf16 %v6101_v50, %v6100_v16  ;;  %v6481_v20 = vrot.slane %v8854_v15, 3 }
 0x540   : > { %8184 = vmatpush3.bf16.msra.mxu1 %v8846_v8  ;;  %v6109_v8 = vld [vmem:[#allocation2 + $0x8e] sm:$0xff] }
 0x541   : > { %v6138_v19 = vpack.c.bf16 %v6109_v8, %v6108_v38 }
 0x543   : > { %8150 = vmatmul.mubr.msk.bf16.gmra.mrb[4].mxu1 %vm465_vm1, %v5797_v26  ;;  %v6111_v26 = vld [vmem:[#allocation2 + $0x9e] sm:$0xff] }
 0x544   : > { %8153 = vmatprep.mubr.msk.bf16.mxu1 %vm465_vm1, %v5798_v43  ;;  %v6139_v43 = vpack.c.bf16 %v6111_v26, %v6110_v36 }
 0x54b   : > { %8154 = vmatmul.mubr.msk.bf16.gmra.mrb[8].mxu1 %vm465_vm1, %v5799_v39  ;;  %v6115_v39 = vld [vmem:[#allocation2 + $0xbe] sm:$0xff] }
 0x54c   : > { %8157 = vmatprep.mubr.msk.bf16.mxu1 %vm465_vm1, %v5800_v42  ;;  %v6141_v42 = vpack.c.bf16 %v6115_v39, %v6114_v49 }
 0x553   : > { %8158 = vmatmul.mubr.msk.bf16.gmra.mrb[12].mxu1 %vm465_vm1, %v5801_v11  ;;  %v6119_v11 = vld [vmem:[#allocation2 + $0xde] sm:$0xff] }
 0x554   : > { %8161 = vmatprep.mubr.msk.bf16.mxu1 %vm465_vm1, %v5802_v40  ;;  %v6143_v40 = vpack.c.bf16 %v6119_v11, %v6118_v59 }
 0x55b   : > { %8162 = vmatmul.mubr.msk.bf16.gmra.mrb[16].mxu1 %vm465_vm1, %v5803_v27  ;;  %v6123_v27 = vld [vmem:[#allocation2 + $0xfe] sm:$0xff] }
 0x55c   : > { %8165 = vmatprep.mubr.msk.bf16.mxu1 %vm465_vm1, %v5804_v57  ;;  %v6145_v57 = vpack.c.bf16 %v6123_v27, %v6122_v41 }
 0x563   : > { %8166 = vmatmul.mubr.msk.bf16.gmra.mrb[20].mxu1 %vm465_vm1, %v5805_v23  ;;  %v6127_v23 = vld [vmem:[#allocation2 + $0x11e] sm:$0xff] }
 0x564   : > { %8169 = vmatprep.mubr.msk.bf16.mxu1 %vm465_vm1, %v5806_v4  ;;  %v6129_v4 = vld [vmem:[#allocation2 + $0x12e] sm:$0xff]  ;;  %v6147_v34 = vpack.c.bf16 %v6127_v23, %v6126_v45 }
 0x565   : > { %v6148_v52 = vpack.c.bf16 %v6129_v4, %v6128_v37 }
 0x56b   : > { %8170 = vmatmul.mubr.msk.bf16.gmra.mrb[24].mxu1 %vm465_vm1, %v5807_v3  ;;  %v6131_v3 = vld [vmem:[#allocation2 + $0x13e] sm:$0xff] }
 0x56c   : > { %8173 = vmatprep.mubr.msk.bf16.mxu1 %vm465_vm1, %v5808_v10  ;;  %v6149_v30 = vpack.c.bf16 %v6131_v3, %v6130_v35  ;;  %v8847_v10 = vld [vmem:[%s8942_s26 + $0x20] sm:$0xff]  ;;  %v8861_v35 = vld [vmem:[%s8942_s26 + $0x88] sm:$0xff] }
 0x56d   : > { %v6475_v7 = vrot.slane %v8847_v10, 3  ;;  %v6501_v3 = vrot.slane %v8861_v35, 3  ;;  %v8874_v35 = vld [vmem:[%s8942_s26 + $0xd8] sm:$0xff] }
 0x56f   : > { %v6478_v51 = vsel %vm2818_vm6, %v6475_v7, %v6477_v54 }
 0x573   : > { %8174 = vmatmul.mubr.msk.bf16.gmra.mrb[28].mxu1 %vm465_vm1, %v5809_v31  ;;  %v6472_v31 = vrot.slane %v8849_v61, 3  ;;  %v8863_v61 = vld [vmem:[%s8942_s26 + $0x90] sm:$0xff] }
 0x574   : > { %8177 = vmatprep.mubr.msk.bf16.mxu1 %vm465_vm1, %v5810_v14  ;;  %v8850_v14 = vld [vmem:[%s8942_s26 + $0x18] sm:$0xff] }
 0x575   : > { %v6473_v12 = vrot.slane %v8850_v14, 3 }
 0x577   : > { %v6474_v5 = vsel %vm2818_vm6, %v6472_v31, %v6473_v12  ;;  %v6503_v31 = vrot.slane %v8863_v61, 3 }
 0x57b   : > { %8178 = vmatmul.mubr.msk.bf16.gmra.mrb[32].mxu1 %vm465_vm1, %v5811_v9  ;;  %v6479_v9 = vrot.slane %v8851_v48, 3 }
 0x57c   : > { %8185 = vmatprep.mubr.msk.bf16.mxu1 %vm465_vm1, %v6132_v28 }
 0x57d   : > { %v6480_v1 = vsel %vm2818_vm6, %v6477_v54, %v6479_v9  ;;  %v6482_v36 = vsel %vm2818_vm6, %v6479_v9, %v6481_v20  ;;  %v6504_v9 = vsel %vm2818_vm6, %v6501_v3, %v6503_v31 }
 0x583   : > { %8186 = vmatmul.mubr.msk.bf16.vlgmr.msra.gmra.mrb[0].mxu1 %vm465_vm1, %v6133_v29  ;;  %v6476_v29 = vsel %vm2818_vm6, %v6473_v12, %v6475_v7  ;;  %v8862_v7 = vld [vmem:[%s8942_s26 + $0x78] sm:$0xff] }
 0x584   : > { %8189 = vmatprep.mubr.msk.bf16.mxu1 %vm465_vm1, %v6134_v6  ;;  %v6497_v60 = vrot.slane %v8862_v7, 3 }
 0x58b   : > { %8190 = vmatmul.mubr.msk.bf16.gmra.mrb[4].mxu1 %vm465_vm1, %v6135_v47  ;;  %v6485_v47 = vrot.slane %v8853_v24, 3  ;;  %v8866_v24 = vld [vmem:[%s8942_s26 + $0x98] sm:$0xff] }
 0x58c   : > { %8193 = vmatprep.mubr.msk.bf16.mxu1 %vm465_vm1, %v6136_v21 }
 0x593   : > { %8194 = vmatmul.mubr.msk.bf16.gmra.mrb[8].mxu1 %vm465_vm1, %v6137_v18  ;;  %v8855_v18 = vld [vmem:[%s8942_s26 + $0x50] sm:$0xff] }
 0x594   : > { %8197 = vmatprep.mubr.msk.bf16.mxu1 %vm465_vm1, %v6138_v19  ;;  %v6487_v38 = vrot.slane %v8855_v18, 3  ;;  %v6486_v19 = vsel %vm2818_vm6, %v6483_v56, %v6485_v47 }
 0x596   : > { %v6488_v13 = vsel %vm2818_vm6, %v6485_v47, %v6487_v38  ;;  %v6505_v47 = vrot.slane %v8866_v24, 3 }
 0x59b   : > { %8198 = vmatmul.mubr.msk.bf16.gmra.mrb[12].mxu1 %vm465_vm1, %v6139_v43 }
 0x59c   : > { %8201 = vmatprep.mubr.msk.bf16.mxu1 %vm465_vm1, %v6140_v0  ;;  %v6484_v0 = vsel %vm2818_vm6, %v6481_v20, %v6483_v56 }
 0x5a3   : > { %8202 = vmatmul.mubr.msk.bf16.gmra.mrb[16].mxu1 %vm465_vm1, %v6141_v42  ;;  %v6491_v42 = vrot.slane %v8856_v22, 3 }
 0x5a4   : > { %8205 = vmatprep.mubr.msk.bf16.mxu1 %vm465_vm1, %v6142_v44  ;;  %v6493_v44 = vrot.slane %v8857_v63, 3  ;;  %v8870_v63 = vld [vmem:[%s8942_s26 + $0xb8] sm:$0xff] }
 0x5a6   : > { %v6494_v27 = vsel %vm2818_vm6, %v6491_v42, %v6493_v44 }
 0x5ab   : > { %8206 = vmatmul.mubr.msk.bf16.gmra.mrb[20].mxu1 %vm465_vm1, %v6143_v40  ;;  %v6489_v40 = vrot.slane %v8858_v17, 3 }
 0x5ac   : > { %8209 = vmatprep.mubr.msk.bf16.mxu1 %vm465_vm1, %v6144_v58  ;;  %v8859_v58 = vld [vmem:[%s8942_s26 + $0x70] sm:$0xff] }
 0x5ad   : > { %v6495_v41 = vrot.slane %v8859_v58, 3  ;;  %v6490_v46 = vsel %vm2818_vm6, %v6487_v38, %v6489_v40  ;;  %v6492_v23 = vsel %vm2818_vm6, %v6489_v40, %v6491_v42 }
 0x5af   : > { %v6496_v25 = vsel %vm2818_vm6, %v6493_v44, %v6495_v41  ;;  %v6498_v12 = vsel %vm2818_vm6, %v6495_v41, %v6497_v60  ;;  %v6513_v44 = vrot.slane %v8870_v63, 3 }
 0x5b3   : > { %8210 = vmatmul.mubr.msk.bf16.gmra.mrb[24].mxu1 %vm465_vm1, %v6145_v57 }
 0x5b4   : > { %8213 = vmatprep.mubr.msk.bf16.mxu1 %vm465_vm1, %v6146_v55 }
 0x5bb   : > { %8214 = vmatmul.mubr.msk.bf16.gmra.mrb[28].mxu1 %vm465_vm1, %v6147_v34  ;;  %v8860_v34 = vld [vmem:[%s8942_s26 + $0x80] sm:$0xff] }
 0x5bc   : > { %8217 = vmatprep.mubr.msk.bf16.mxu1 %vm465_vm1, %v6148_v52  ;;  %v6499_v52 = vrot.slane %v8860_v34, 3 }
 0x5be   : > { %v6502_v14 = vsel %vm2818_vm6, %v6499_v52, %v6501_v3  ;;  %v6521_v3 = vrot.slane %v8874_v35, 3 }
 0x5c3   : > { %8218 = vmatmul.mubr.msk.bf16.gmra.mrb[32].mxu1 %vm465_vm1, %v6149_v30 }
 0x656   : > { %v8187_v28 = vpop.f32.mrb[0].mxu1 }
 0x657   : > { %v6583_v53 = vadd.f32 %v8187_v28, %v6478_v51  ;;  %v6255_v50 = vpop.f32.mrb[1].mxu1  ;;  %v6500_v28 = vsel %vm2818_vm6, %v6497_v60, %v6499_v52 }
 0x658   : > { %v6581_v16 = vadd.f32 %v6474_v5, %v6255_v50  ;;  %v8188_v6 = vpop.f32.mrb[2].mxu1  ;;  %v8864_v50 = vld [vmem:[%s8942_s26 + $0xa0] sm:$0xff] }
 0x659   : > { %6619 = vst.msk [vmem:[%s10202_s30 + $0x10] sm:$0xff] %vm465_vm1, %v6583_v53  ;;  %v6584_v62 = vadd.f32 %v8188_v6, %v6480_v1  ;;  %v6258_v21 = vpop.f32.mrb[3].mxu1 }
 0x65a   : > { %6617 = vst.msk [vmem:[%s10202_s30] sm:$0xff] %vm465_vm1, %v6581_v16  ;;  %v6582_v8 = vadd.f32 %v6476_v29, %v6258_v21  ;;  %v6507_v29 = vrot.slane %v8864_v50, 3  ;;  %v8865_v16 = vld [vmem:[%s8942_s26 + $0xa8] sm:$0xff]  ;;  %v8867_v21 = vld [vmem:[%s8942_s26 + $0xb0] sm:$0xff] }
 0x65b   : > { %6620 = vst.msk [vmem:[%s10202_s30 + $0x18] sm:$0xff] %vm465_vm1, %v6584_v62  ;;  %v6509_v6 = vrot.slane %v8865_v16, 3  ;;  %v6511_v15 = vrot.slane %v8867_v21, 3  ;;  %v8878_v16 = vld [vmem:[%s8942_s26 + $0xf8] sm:$0xff] }
 0x65c   : > { %6618 = vst.msk [vmem:[%s10202_s30 + $0x8] sm:$0xff] %vm465_vm1, %v6582_v8  ;;  %v6506_v8 = vsel %vm2818_vm6, %v6503_v31, %v6505_v47 }
 0x65d   : > { %v6510_v20 = vsel %vm2818_vm6, %v6507_v29, %v6509_v6  ;;  %v6512_v38 = vsel %vm2818_vm6, %v6509_v6, %v6511_v15  ;;  %v6529_v6 = vrot.slane %v8878_v16, 3 }
 0x65e   : > { %v8191_v26 = vpop.f32.mrb[4].mxu1 }
 0x65f   : > { %v6587_v43 = vadd.f32 %v8191_v26, %v6486_v19  ;;  %v6271_v32 = vpop.f32.mrb[5].mxu1  ;;  %v6508_v26 = vsel %vm2818_vm6, %v6505_v47, %v6507_v29 }
 0x660   : > { %v6585_v49 = vadd.f32 %v6482_v36, %v6271_v32  ;;  %v8192_v39 = vpop.f32.mrb[6].mxu1  ;;  %v8868_v32 = vld [vmem:[%s8942_s26 + $0xc0] sm:$0xff] }
 0x661   : > { %6623 = vst.msk [vmem:[%s10202_s30 + $0x30] sm:$0xff] %vm465_vm1, %v6587_v43  ;;  %v6588_v59 = vadd.f32 %v8192_v39, %v6488_v13  ;;  %v6274_v11 = vpop.f32.mrb[7].mxu1 }
 0x662   : > { %6621 = vst.msk [vmem:[%s10202_s30 + $0x20] sm:$0xff] %vm465_vm1, %v6585_v49  ;;  %v6586_v33 = vadd.f32 %v6484_v0, %v6274_v11  ;;  %v6515_v0 = vrot.slane %v8868_v32, 3  ;;  %v8869_v49 = vld [vmem:[%s8942_s26 + $0xc8] sm:$0xff]  ;;  %v8871_v11 = vld [vmem:[%s8942_s26 + $0xd0] sm:$0xff] }
 0x663   : > { %6624 = vst.msk [vmem:[%s10202_s30 + $0x38] sm:$0xff] %vm465_vm1, %v6588_v59  ;;  %v6517_v39 = vrot.slane %v8869_v49, 3  ;;  %v6519_v17 = vrot.slane %v8871_v11, 3  ;;  %v8882_v49 = vld [vmem:[%s8942_s26 + $0x118] sm:$0xff] }
 0x664   : > { %6622 = vst.msk [vmem:[%s10202_s30 + $0x28] sm:$0xff] %vm465_vm1, %v6586_v33  ;;  %v6514_v33 = vsel %vm2818_vm6, %v6511_v15, %v6513_v44 }
 0x665   : > { %v6518_v40 = vsel %vm2818_vm6, %v6515_v0, %v6517_v39  ;;  %v6520_v41 = vsel %vm2818_vm6, %v6517_v39, %v6519_v17  ;;  %v6537_v39 = vrot.slane %v8882_v49, 3 }
 0x666   : > { %v8195_v57 = vpop.f32.mrb[8].mxu1 }
 0x667   : > { %v6591_v55 = vadd.f32 %v8195_v57, %v6494_v27  ;;  %v6287_v45 = vpop.f32.mrb[9].mxu1  ;;  %v6516_v57 = vsel %vm2818_vm6, %v6513_v44, %v6515_v0 }
 0x668   : > { %v6589_v37 = vadd.f32 %v6490_v46, %v6287_v45  ;;  %v8196_v4 = vpop.f32.mrb[10].mxu1  ;;  %v8872_v45 = vld [vmem:[%s8942_s26 + $0xe0] sm:$0xff] }
 0x669   : > { %6627 = vst.msk [vmem:[%s10202_s30 + $0x50] sm:$0xff] %vm465_vm1, %v6591_v55  ;;  %v6592_v30 = vadd.f32 %v8196_v4, %v6496_v25  ;;  %v6290_v10 = vpop.f32.mrb[11].mxu1 }
 0x66a   : > { %6625 = vst.msk [vmem:[%s10202_s30 + $0x40] sm:$0xff] %vm465_vm1, %v6589_v37  ;;  %v6590_v54 = vadd.f32 %v6492_v23, %v6290_v10  ;;  %v6523_v23 = vrot.slane %v8872_v45, 3  ;;  %v8873_v37 = vld [vmem:[%s8942_s26 + $0xe8] sm:$0xff]  ;;  %v8875_v10 = vld [vmem:[%s8942_s26 + $0xf0] sm:$0xff] }
 0x66b   : > { %6628 = vst.msk [vmem:[%s10202_s30 + $0x58] sm:$0xff] %vm465_vm1, %v6592_v30  ;;  %v6525_v4 = vrot.slane %v8873_v37, 3  ;;  %v6527_v7 = vrot.slane %v8875_v10, 3 }
 0x66c   : > { %6626 = vst.msk [vmem:[%s10202_s30 + $0x48] sm:$0xff] %vm465_vm1, %v6590_v54  ;;  %v6522_v54 = vsel %vm2818_vm6, %v6519_v17, %v6521_v3 }
 0x66d   : > { %v6526_v60 = vsel %vm2818_vm6, %v6523_v23, %v6525_v4  ;;  %v6528_v31 = vsel %vm2818_vm6, %v6525_v4, %v6527_v7 }
 0x66e   : > { %v8199_v48 = vpop.f32.mrb[12].mxu1 }
 0x66f   : > { %v6595_v51 = vadd.f32 %v8199_v48, %v6502_v14  ;;  %v6303_v5 = vpop.f32.mrb[13].mxu1  ;;  %v6524_v48 = vsel %vm2818_vm6, %v6521_v3, %v6523_v23 }
 0x670   : > { %v6593_v1 = vadd.f32 %v6498_v12, %v6303_v5  ;;  %v8200_v53 = vpop.f32.mrb[14].mxu1  ;;  %v8876_v5 = vld [vmem:[%s8942_s26 + $0x100] sm:$0xff] }
 0x671   : > { %6631 = vst.msk [vmem:[%s10202_s30 + $0x70] sm:$0xff] %vm465_vm1, %v6595_v51  ;;  %v6596_v2 = vadd.f32 %v8200_v53, %v6504_v9  ;;  %v6306_v56 = vpop.f32.mrb[15].mxu1 }
 0x672   : > { %6629 = vst.msk [vmem:[%s10202_s30 + $0x60] sm:$0xff] %vm465_vm1, %v6593_v1  ;;  %v6594_v62 = vadd.f32 %v6500_v28, %v6306_v56  ;;  %v6531_v28 = vrot.slane %v8876_v5, 3  ;;  %v8877_v1 = vld [vmem:[%s8942_s26 + $0x108] sm:$0xff]  ;;  %v8879_v56 = vld [vmem:[%s8942_s26 + $0x110] sm:$0xff] }
 0x673   : > { %6632 = vst.msk [vmem:[%s10202_s30 + $0x78] sm:$0xff] %vm465_vm1, %v6596_v2  ;;  %v6533_v53 = vrot.slane %v8877_v1, 3  ;;  %v6535_v24 = vrot.slane %v8879_v56, 3 }
 0x674   : > { %6630 = vst.msk [vmem:[%s10202_s30 + $0x68] sm:$0xff] %vm465_vm1, %v6594_v62  ;;  %v6530_v62 = vsel %vm2818_vm6, %v6527_v7, %v6529_v6 }
 0x675   : > { %v6534_v47 = vsel %vm2818_vm6, %v6531_v28, %v6533_v53  ;;  %v6536_v15 = vsel %vm2818_vm6, %v6533_v53, %v6535_v24 }
 0x676   : > { %v8203_v18 = vpop.f32.mrb[16].mxu1 }
 0x677   : > { %v6599_v19 = vadd.f32 %v8203_v18, %v6510_v20  ;;  %v6319_v36 = vpop.f32.mrb[17].mxu1  ;;  %v6532_v18 = vsel %vm2818_vm6, %v6529_v6, %v6531_v28 }
 0x678   : > { %v6597_v13 = vadd.f32 %v6506_v8, %v6319_v36  ;;  %v8204_v43 = vpop.f32.mrb[18].mxu1  ;;  %v8880_v36 = vld [vmem:[%s8942_s26 + $0x120] sm:$0xff] }
 0x679   : > { %6635 = vst.msk [vmem:[%s10202_s30 + $0x90] sm:$0xff] %vm465_vm1, %v6599_v19  ;;  %v6600_v22 = vadd.f32 %v8204_v43, %v6512_v38  ;;  %v6322_v42 = vpop.f32.mrb[19].mxu1 }
 0x67a   : > { %6633 = vst.msk [vmem:[%s10202_s30 + $0x80] sm:$0xff] %vm465_vm1, %v6597_v13  ;;  %v6598_v59 = vadd.f32 %v6508_v26, %v6322_v42  ;;  %v6539_v26 = vrot.slane %v8880_v36, 3  ;;  %v8881_v13 = vld [vmem:[%s8942_s26 + $0x128] sm:$0xff]  ;;  %v8883_v42 = vld [vmem:[%s8942_s26 + $0x130] sm:$0xff] }
 0x67b   : > { %6636 = vst.msk [vmem:[%s10202_s30 + $0x98] sm:$0xff] %vm465_vm1, %v6600_v22  ;;  %v6541_v43 = vrot.slane %v8881_v13, 3  ;;  %v6543_v63 = vrot.slane %v8883_v42, 3 }
 0x67c   : > { %6634 = vst.msk [vmem:[%s10202_s30 + $0x88] sm:$0xff] %vm465_vm1, %v6598_v59  ;;  %v6538_v59 = vsel %vm2818_vm6, %v6535_v24, %v6537_v39 }
 0x67d   : > { %v6542_v44 = vsel %vm2818_vm6, %v6539_v26, %v6541_v43  ;;  %v6544_v17 = vsel %vm2818_vm6, %v6541_v43, %v6543_v63 }
 0x67e   : > { %v8207_v58 = vpop.f32.mrb[20].mxu1 }
 0x67f   : > { %v6603_v27 = vadd.f32 %v8207_v58, %v6518_v40  ;;  %v6335_v46 = vpop.f32.mrb[21].mxu1  ;;  %v6540_v58 = vsel %vm2818_vm6, %v6537_v39, %v6539_v26 }
 0x680   : > { %v6601_v25 = vadd.f32 %v6514_v33, %v6335_v46  ;;  %v8208_v55 = vpop.f32.mrb[22].mxu1 }
 0x681   : > { %6639 = vst.msk [vmem:[%s10202_s30 + $0xb0] sm:$0xff] %vm465_vm1, %v6603_v27  ;;  %v6604_v34 = vadd.f32 %v8208_v55, %v6520_v41  ;;  %v6338_v52 = vpop.f32.mrb[23].mxu1 }
 0x682   : > { %6637 = vst.msk [vmem:[%s10202_s30 + $0xa0] sm:$0xff] %vm465_vm1, %v6601_v25  ;;  %v6602_v30 = vadd.f32 %v6516_v57, %v6338_v52 }
 0x683   : > { %6640 = vst.msk [vmem:[%s10202_s30 + $0xb8] sm:$0xff] %vm465_vm1, %v6604_v34 }
 0x684   : > { %6638 = vst.msk [vmem:[%s10202_s30 + $0xa8] sm:$0xff] %vm465_vm1, %v6602_v30 }
 0x686   : > { %v8211_v61 = vpop.f32.mrb[24].mxu1 }
 0x687   : > { %v6607_v14 = vadd.f32 %v8211_v61, %v6526_v60  ;;  %v6351_v12 = vpop.f32.mrb[25].mxu1 }
 0x688   : > { %v6605_v9 = vadd.f32 %v6522_v54, %v6351_v12  ;;  %v8212_v51 = vpop.f32.mrb[26].mxu1 }
 0x689   : > { %6643 = vst.msk [vmem:[%s10202_s30 + $0xd0] sm:$0xff] %vm465_vm1, %v6607_v14  ;;  %v6608_v50 = vadd.f32 %v8212_v51, %v6528_v31  ;;  %v6354_v29 = vpop.f32.mrb[27].mxu1 }
 0x68a   : > { %6641 = vst.msk [vmem:[%s10202_s30 + $0xc0] sm:$0xff] %vm465_vm1, %v6605_v9  ;;  %v6606_v2 = vadd.f32 %v6524_v48, %v6354_v29 }
 0x68b   : > { %6644 = vst.msk [vmem:[%s10202_s30 + $0xd8] sm:$0xff] %vm465_vm1, %v6608_v50 }
 0x68c   : > { %6642 = vst.msk [vmem:[%s10202_s30 + $0xc8] sm:$0xff] %vm465_vm1, %v6606_v2 }
 0x68e   : > { %v8215_v21 = vpop.f32.mrb[28].mxu1 }
 0x68f   : > { %v6611_v20 = vadd.f32 %v8215_v21, %v6534_v47  ;;  %v6367_v8 = vpop.f32.mrb[29].mxu1 }
 0x690   : > { %v6609_v38 = vadd.f32 %v6530_v62, %v6367_v8  ;;  %v8216_v19 = vpop.f32.mrb[30].mxu1 }
 0x691   : > { %6647 = vst.msk [vmem:[%s10202_s30 + $0xf0] sm:$0xff] %vm465_vm1, %v6611_v20  ;;  %v6612_v32 = vadd.f32 %v8216_v19, %v6536_v15  ;;  %v6370_v0 = vpop.f32.mrb[31].mxu1 }
 0x692   : > { %6645 = vst.msk [vmem:[%s10202_s30 + $0xe0] sm:$0xff] %vm465_vm1, %v6609_v38  ;;  %v6610_v22 = vadd.f32 %v6532_v18, %v6370_v0 }
 0x693   : > { %6648 = vst.msk [vmem:[%s10202_s30 + $0xf8] sm:$0xff] %vm465_vm1, %v6612_v32 }
 0x694   : > { %6646 = vst.msk [vmem:[%s10202_s30 + $0xe8] sm:$0xff] %vm465_vm1, %v6610_v22 }
 0x696   : > { %v8219_v11 = vpop.f32.mrb[32].mxu1 }
 0x697   : > { %v6615_v40 = vadd.f32 %v8219_v11, %v6542_v44  ;;  %v6383_v33 = vpop.f32.mrb[33].mxu1 }
 0x698   : > { %v6613_v41 = vadd.f32 %v6538_v59, %v6383_v33  ;;  %v8220_v27 = vpop.f32.mrb[34].mxu1 }
 0x699   : > { %6651 = vst.msk [vmem:[%s10202_s30 + $0x110] sm:$0xff] %vm465_vm1, %v6615_v40  ;;  %v6616_v46 = vadd.f32 %v8220_v27, %v6544_v17  ;;  %v6386_v57 = vpop.f32.mrb[35].mxu1 }
 0x69a   : > { %6649 = vst.msk [vmem:[%s10202_s30 + $0x100] sm:$0xff] %vm465_vm1, %v6613_v41  ;;  %v6614_v25 = vadd.f32 %v6540_v58, %v6386_v57 }
 0x69b   : > { %6652 = vst.msk [vmem:[%s10202_s30 + $0x118] sm:$0xff] %vm465_vm1, %v6616_v46 }
 0x69c   : > { %6650 = vst.msk [vmem:[%s10202_s30 + $0x108] sm:$0xff] %vm465_vm1, %v6614_v25 }
 0x69d PF: > { %s14_s15 = sadd.s32 1, %s8890_s15  }
 0x69e   : > { %p11_p4 = scmp.ge.s32.totalorder %s14_s15, 4  }
 0x6a0   :  { %13 = sbr.rel (!%p11_p4) target bundleno = 1 (0x1), region = 82 }

</bundles_post_ra>
